<compile_context>
chip_gen: v5e
topology: v5e:2x2
jax: 0.10.0
libtpu: 0.0.40
codegen_flags: <defaults>
</compile_context>

<pallas_src>
import functools

import jax
import jax.numpy as jnp
from jax.experimental import pallas as pl
from jax.experimental.pallas import tpu as pltpu


def rnn_fused_kernel(seq_ref, topic_ref,
                     w_x_ref, b_x_ref,
                     w_hh_ref,
                     w_out_ref, b_out_ref,
                     out_ref, h_out_ref, c_out_ref,
                     gx_scr, hs_scr):
    """Whole forward in one invocation (grid=(1,)).

    seq_ref   : (T*B, D)   time-major sequence, flattened to 2-D (dense rows)
    topic_ref : (B, H)     h0 == c0
    w_x_ref   : (D, 4H)    fused  W_in^T @ W_ih^T
    b_x_ref   : (1, 4H)    fused  b_in @ W_ih^T + b_ih + b_hh
    w_hh_ref  : (H, 4H)
    w_out_ref : (H, D)
    out_ref   : (T*B, D)
    h_out_ref : (B, H)     final h_T
    c_out_ref : (B, H)     final c_T
    gx_scr    : (T*B, 4H)  precomputed input-path gates
    hs_scr    : (T*B, H)   per-step hidden states (for the deferred out-proj)
    """
    B, H = topic_ref.shape
    T = seq_ref.shape[0] // B

    # ---- Phase 1: hoisted input path, one big MXU matmul over all steps ----
    gx_scr[...] = (jnp.dot(seq_ref[...], w_x_ref[...],
                           preferred_element_type=jnp.float32)
                   + b_x_ref[...])

    # ---- Phase 2: serial LSTM recurrence (only h @ W_hh per step) ----------
    h0 = topic_ref[...].astype(jnp.float32)

    def step(t, carry):
        h, c = carry
        row = pl.multiple_of(t * B, B)
        gates = (gx_scr[pl.ds(row, B), :]
                 + jnp.dot(h, w_hh_ref[...],
                           preferred_element_type=jnp.float32))
        # PyTorch gate order: i, f, g, o (gate slices are 128-lane aligned).
        i_g = jax.nn.sigmoid(gates[:, 0 * H:1 * H])
        f_g = jax.nn.sigmoid(gates[:, 1 * H:2 * H])
        g_g = jnp.tanh(gates[:, 2 * H:3 * H])
        o_g = jax.nn.sigmoid(gates[:, 3 * H:4 * H])
        c_new = f_g * c + i_g * g_g
        h_new = o_g * jnp.tanh(c_new)
        hs_scr[pl.ds(row, B), :] = h_new
        return h_new, c_new

    h_T, c_T = jax.lax.fori_loop(0, T, step, (h0, h0), unroll=True)

    # ---- Phase 3: deferred output projection, one big MXU matmul -----------
    out_ref[...] = (jnp.dot(hs_scr[...], w_out_ref[...],
                            preferred_element_type=jnp.float32)
                    + b_out_ref[...]).astype(out_ref.dtype)
    h_out_ref[...] = h_T.astype(h_out_ref.dtype)
    c_out_ref[...] = c_T.astype(c_out_ref.dtype)


@jax.jit
def rnn_forward(sequence, topic, params):
    """sequence: (T, B, D) float32, topic: (1, B, H) float32."""
    T, B, D = sequence.shape
    H = params["w_hh_t"].shape[0]

    # Wrapper-side fusion of the non-recurrent path (one-time cost):
    #   x @ W_in^T @ W_ih^T + (b_in @ W_ih^T + b_ih + b_hh)
    w_x = params["w_in_t"] @ params["w_ih_t"]                       # (D, 4H)
    b_x = params["b_in"] @ params["w_ih_t"] + params["b_ih"] + params["b_hh"]

    seq2d = sequence.reshape(T * B, D)   # contiguous, free reshape in HBM
    topic2d = topic[0]

    out2d, h_T, c_T = pl.pallas_call(
        rnn_fused_kernel,
        out_shape=(
            jax.ShapeDtypeStruct((T * B, D), jnp.float32),
            jax.ShapeDtypeStruct((B, H), jnp.float32),
            jax.ShapeDtypeStruct((B, H), jnp.float32),
        ),
        grid_spec=pltpu.PrefetchScalarGridSpec(
            num_scalar_prefetch=0,
            grid=(1,),
            in_specs=[
                pl.BlockSpec((T * B, D), lambda i: (0, 0)),      # seq2d
                pl.BlockSpec((B, H), lambda i: (0, 0)),          # topic (h0/c0)
                pl.BlockSpec((D, 4 * H), lambda i: (0, 0)),      # fused W_x
                pl.BlockSpec((1, 4 * H), lambda i: (0, 0)),      # fused b_x
                pl.BlockSpec((H, 4 * H), lambda i: (0, 0)),      # W_hh^T
                pl.BlockSpec((H, D), lambda i: (0, 0)),          # W_out^T
                pl.BlockSpec((1, D), lambda i: (0, 0)),          # b_out
            ],
            out_specs=[
                pl.BlockSpec((T * B, D), lambda i: (0, 0)),      # output_seq
                pl.BlockSpec((B, H), lambda i: (0, 0)),          # h_T
                pl.BlockSpec((B, H), lambda i: (0, 0)),          # c_T
            ],
            scratch_shapes=[
                pltpu.VMEM((T * B, 4 * H), jnp.float32),         # gates_x
                pltpu.VMEM((T * B, H), jnp.float32),             # hidden states
            ],
        ),
        compiler_params=pltpu.CompilerParams(
            dimension_semantics=("arbitrary",)),   # single (serial) invocation
    )(seq2d, topic2d, w_x, b_x, params["w_hh_t"],
      params["w_out_t"], params["b_out"])

    return out2d.reshape(T, B, D), h_T[None], c_T[None]


def rnn_reference(sequence, topic, params):
    """Pure-JAX reference with the original (unfused) math."""
    H = params["w_hh_t"].shape[0]
    x_in = sequence @ params["w_in_t"] + params["b_in"]  # (T, B, H)

    def step(carry, x_t):
        h, c = carry
        gates = (x_t @ params["w_ih_t"] + params["b_ih"]
                 + h @ params["w_hh_t"] + params["b_hh"])
        i_g = jax.nn.sigmoid(gates[:, 0 * H:1 * H])
        f_g = jax.nn.sigmoid(gates[:, 1 * H:2 * H])
        g_g = jnp.tanh(gates[:, 2 * H:3 * H])
        o_g = jax.nn.sigmoid(gates[:, 3 * H:4 * H])
        c_new = f_g * c + i_g * g_g
        h_new = o_g * jnp.tanh(c_new)
        return (h_new, c_new), h_new

    h0 = topic[0]
    c0 = topic[0]
    (h_T, c_T), hs = jax.lax.scan(step, (h0, c0), x_in)
    out = hs @ params["w_out_t"] + params["b_out"]
    return out, h_T[None], c_T[None]


def make_params(key, D, H):
    """Deterministic parameter init (shapes mirror the PyTorch module)."""
    ks = jax.random.split(key, 8)
    s = 0.1
    return {
        # nn.Linear(D, H):  stored transposed, 2-D bias
        "w_in_t":  (s * jax.random.normal(ks[0], (D, H))).astype(jnp.float32),
        "b_in":    (s * jax.random.normal(ks[1], (1, H))).astype(jnp.float32),
        # nn.LSTM(H, H, 1): W_ih (4H, H), W_hh (4H, H) stored transposed
        "w_ih_t":  (s * jax.random.normal(ks[2], (H, 4 * H))).astype(jnp.float32),
        "b_ih":    (s * jax.random.normal(ks[3], (1, 4 * H))).astype(jnp.float32),
        "w_hh_t":  (s * jax.random.normal(ks[4], (H, 4 * H))).astype(jnp.float32),
        "b_hh":    (s * jax.random.normal(ks[5], (1, 4 * H))).astype(jnp.float32),
        # nn.Linear(H, D)
        "w_out_t": (s * jax.random.normal(ks[6], (H, D))).astype(jnp.float32),
        "b_out":   (s * jax.random.normal(ks[7], (1, D))).astype(jnp.float32),
    }


if __name__ == "__main__":
    # Small TPU-friendly shapes (module uses D=H=300, seq 20; scaled down to
    # lane/sublane-aligned 128/8 so gate slices and stores are dense).
    T, B, D, H = 8, 8, 128, 128

    key = jax.random.PRNGKey(0)
    k_seq, k_topic, k_par = jax.random.split(key, 3)

    sequence = jax.random.normal(k_seq, (T, B, D), dtype=jnp.float32)
    topic = jax.random.normal(k_topic, (1, B, H), dtype=jnp.float32)
    params = make_params(k_par, D, H)

    out, h_T, c_T = rnn_forward(sequence, topic, params)
    jax.block_until_ready((out, h_T, c_T))

    ref_out, ref_h, ref_c = rnn_reference(sequence, topic, params)
    assert jnp.allclose(out, ref_out, atol=1e-2, rtol=1e-2)
    assert jnp.allclose(h_T, ref_h, atol=1e-2, rtol=1e-2)
    assert jnp.allclose(c_T, ref_c, atol=1e-2, rtol=1e-2)

    print("KERNEL_OK")
</pallas_src>

<mosaic_0001>
module attributes {stable_mosaic.version = 11 : i64} {
  func.func @rnn_fused_kernel(%arg0: i32, %arg1: memref<64x128xf32, #tpu.memory_space<vmem>>, %arg2: memref<8x128xf32, #tpu.memory_space<vmem>>, %arg3: memref<128x512xf32, #tpu.memory_space<vmem>>, %arg4: memref<1x512xf32, #tpu.memory_space<vmem>>, %arg5: memref<128x512xf32, #tpu.memory_space<vmem>>, %arg6: memref<128x128xf32, #tpu.memory_space<vmem>>, %arg7: memref<1x128xf32, #tpu.memory_space<vmem>>, %arg8: memref<64x128xf32, #tpu.memory_space<vmem>>, %arg9: memref<8x128xf32, #tpu.memory_space<vmem>>, %arg10: memref<8x128xf32, #tpu.memory_space<vmem>>, %arg11: memref<64x512xf32, #tpu.memory_space<vmem>>, %arg12: memref<64x128xf32, #tpu.memory_space<vmem>>) attributes {dimension_semantics = [#tpu.dimension_semantics<arbitrary>], iteration_bounds = array<i64: 1>, scalar_prefetch = 0 : i64, scratch_operands = 2 : i64, tpu.core_type = #tpu.core_type<tc>, window_params = [{pipeline_mode = #tpu.pipeline_mode<synchronous>, transform_indices = @transform_0, window_bounds = array<i64: 64, 128>}, {pipeline_mode = #tpu.pipeline_mode<synchronous>, transform_indices = @transform_1, window_bounds = array<i64: 8, 128>}, {pipeline_mode = #tpu.pipeline_mode<synchronous>, transform_indices = @transform_2, window_bounds = array<i64: 128, 512>}, {pipeline_mode = #tpu.pipeline_mode<synchronous>, transform_indices = @transform_3, window_bounds = array<i64: 1, 512>}, {pipeline_mode = #tpu.pipeline_mode<synchronous>, transform_indices = @transform_4, window_bounds = array<i64: 128, 512>}, {pipeline_mode = #tpu.pipeline_mode<synchronous>, transform_indices = @transform_5, window_bounds = array<i64: 128, 128>}, {pipeline_mode = #tpu.pipeline_mode<synchronous>, transform_indices = @transform_6, window_bounds = array<i64: 1, 128>}, {pipeline_mode = #tpu.pipeline_mode<synchronous>, transform_indices = @transform_7, window_bounds = array<i64: 64, 128>}, {pipeline_mode = #tpu.pipeline_mode<synchronous>, transform_indices = @transform_8, window_bounds = array<i64: 8, 128>}, {pipeline_mode = #tpu.pipeline_mode<synchronous>, transform_indices = @transform_9, window_bounds = array<i64: 8, 128>}]} {
    %c0 = arith.constant 0 : index
    %c0_0 = arith.constant 0 : index
    %0 = vector.load %arg1[%c0, %c0_0] : memref<64x128xf32, #tpu.memory_space<vmem>>, vector<64x128xf32>
    %c0_1 = arith.constant 0 : index
    %c0_2 = arith.constant 0 : index
    %1 = vector.load %arg3[%c0_1, %c0_2] : memref<128x512xf32, #tpu.memory_space<vmem>>, vector<128x512xf32>
    %cst = arith.constant dense<0.000000e+00> : vector<64x512xf32>
    %2 = tpu.matmul %0, %1, %cst {dimension_numbers = #tpu.dot_dimension_numbers<[1], [0], [0], [1], [0, 0, 1, 1], [], []>} : vector<64x128xf32>, vector<128x512xf32>, vector<64x512xf32> -> vector<64x512xf32>
    %c0_3 = arith.constant 0 : index
    %c0_4 = arith.constant 0 : index
    %3 = vector.load %arg4[%c0_3, %c0_4] : memref<1x512xf32, #tpu.memory_space<vmem>>, vector<1x512xf32>
    %4 = vector.broadcast %3 : vector<1x512xf32> to vector<64x512xf32>
    %5 = arith.addf %2, %4 : vector<64x512xf32>
    %c0_5 = arith.constant 0 : index
    %c0_6 = arith.constant 0 : index
    %6 = vector.load %arg11[%c0_5, %c0_6] : memref<64x512xf32, #tpu.memory_space<vmem>>, vector<64x512xf32>
    tpu.vector_store %arg11[%c0_5, %c0_6], %5 {strides = array<i32>} : memref<64x512xf32, #tpu.memory_space<vmem>>, vector<64x512xf32>,
    %c0_7 = arith.constant 0 : index
    %c0_8 = arith.constant 0 : index
    %7 = vector.load %arg2[%c0_7, %c0_8] : memref<8x128xf32, #tpu.memory_space<vmem>>, vector<8x128xf32>
    %c0_i32 = arith.constant 0 : i32
    %c8_i32 = arith.constant 8 : i32
    %8 = arith.muli %c0_i32, %c8_i32 : i32
    %9 = tpu.assume_multiple %8, 8 : i32
    %10 = arith.index_cast %9 : i32 to index
    %c0_9 = arith.constant 0 : index
    %11 = vector.load %arg11[%10, %c0_9] : memref<64x512xf32, #tpu.memory_space<vmem>>, vector<8x512xf32>
    %c0_10 = arith.constant 0 : index
    %c0_11 = arith.constant 0 : index
    %12 = vector.load %arg5[%c0_10, %c0_11] : memref<128x512xf32, #tpu.memory_space<vmem>>, vector<128x512xf32>
    %cst_12 = arith.constant dense<0.000000e+00> : vector<8x512xf32>
    %13 = tpu.matmul %7, %12, %cst_12 {dimension_numbers = #tpu.dot_dimension_numbers<[1], [0], [0], [1], [0, 0, 1, 1], [], []>} : vector<8x128xf32>, vector<128x512xf32>, vector<8x512xf32> -> vector<8x512xf32>
    %14 = arith.addf %11, %13 : vector<8x512xf32>
    %15 = vector.extract_strided_slice %14 {offsets = [0, 0], sizes = [8, 128], strides = [1, 1]} : vector<8x512xf32> to vector<8x128xf32>
    %16 = arith.negf %15 : vector<8x128xf32>
    %17 = math.exp %16 : vector<8x128xf32>
    %cst_13 = arith.constant 1.000000e+00 : f32
    %18 = vector.broadcast %cst_13 : f32 to vector<8x128xf32>
    %19 = arith.addf %18, %17 : vector<8x128xf32>
    %20 = arith.divf %18, %19 : vector<8x128xf32>
    %21 = vector.extract_strided_slice %14 {offsets = [0, 128], sizes = [8, 128], strides = [1, 1]} : vector<8x512xf32> to vector<8x128xf32>
    %22 = arith.negf %21 : vector<8x128xf32>
    %23 = math.exp %22 : vector<8x128xf32>
    %cst_14 = arith.constant 1.000000e+00 : f32
    %24 = vector.broadcast %cst_14 : f32 to vector<8x128xf32>
    %25 = arith.addf %24, %23 : vector<8x128xf32>
    %26 = arith.divf %24, %25 : vector<8x128xf32>
    %27 = vector.extract_strided_slice %14 {offsets = [0, 256], sizes = [8, 128], strides = [1, 1]} : vector<8x512xf32> to vector<8x128xf32>
    %28 = math.tanh %27 : vector<8x128xf32>
    %29 = vector.extract_strided_slice %14 {offsets = [0, 384], sizes = [8, 128], strides = [1, 1]} : vector<8x512xf32> to vector<8x128xf32>
    %30 = arith.negf %29 : vector<8x128xf32>
    %31 = math.exp %30 : vector<8x128xf32>
    %cst_15 = arith.constant 1.000000e+00 : f32
    %32 = vector.broadcast %cst_15 : f32 to vector<8x128xf32>
    %33 = arith.addf %32, %31 : vector<8x128xf32>
    %34 = arith.divf %32, %33 : vector<8x128xf32>
    %35 = arith.mulf %26, %7 : vector<8x128xf32>
    %36 = arith.mulf %20, %28 : vector<8x128xf32>
    %37 = arith.addf %35, %36 : vector<8x128xf32>
    %38 = math.tanh %37 : vector<8x128xf32>
    %39 = arith.mulf %34, %38 : vector<8x128xf32>
    %40 = arith.index_cast %9 : i32 to index
    %c0_16 = arith.constant 0 : index
    %41 = vector.load %arg12[%40, %c0_16] : memref<64x128xf32, #tpu.memory_space<vmem>>, vector<8x128xf32>
    tpu.vector_store %arg12[%40, %c0_16], %39 {strides = array<i32>} : memref<64x128xf32, #tpu.memory_space<vmem>>, vector<8x128xf32>,
    %c1_i32 = arith.constant 1 : i32
    %c8_i32_17 = arith.constant 8 : i32
    %42 = arith.muli %c1_i32, %c8_i32_17 : i32
    %43 = tpu.assume_multiple %42, 8 : i32
    %44 = arith.index_cast %43 : i32 to index
    %c0_18 = arith.constant 0 : index
    %45 = vector.load %arg11[%44, %c0_18] : memref<64x512xf32, #tpu.memory_space<vmem>>, vector<8x512xf32>
    %c0_19 = arith.constant 0 : index
    %c0_20 = arith.constant 0 : index
    %46 = vector.load %arg5[%c0_19, %c0_20] : memref<128x512xf32, #tpu.memory_space<vmem>>, vector<128x512xf32>
    %cst_21 = arith.constant dense<0.000000e+00> : vector<8x512xf32>
    %47 = tpu.matmul %39, %46, %cst_21 {dimension_numbers = #tpu.dot_dimension_numbers<[1], [0], [0], [1], [0, 0, 1, 1], [], []>} : vector<8x128xf32>, vector<128x512xf32>, vector<8x512xf32> -> vector<8x512xf32>
    %48 = arith.addf %45, %47 : vector<8x512xf32>
    %49 = vector.extract_strided_slice %48 {offsets = [0, 0], sizes = [8, 128], strides = [1, 1]} : vector<8x512xf32> to vector<8x128xf32>
    %50 = arith.negf %49 : vector<8x128xf32>
    %51 = math.exp %50 : vector<8x128xf32>
    %cst_22 = arith.constant 1.000000e+00 : f32
    %52 = vector.broadcast %cst_22 : f32 to vector<8x128xf32>
    %53 = arith.addf %52, %51 : vector<8x128xf32>
    %54 = arith.divf %52, %53 : vector<8x128xf32>
    %55 = vector.extract_strided_slice %48 {offsets = [0, 128], sizes = [8, 128], strides = [1, 1]} : vector<8x512xf32> to vector<8x128xf32>
    %56 = arith.negf %55 : vector<8x128xf32>
    %57 = math.exp %56 : vector<8x128xf32>
    %cst_23 = arith.constant 1.000000e+00 : f32
    %58 = vector.broadcast %cst_23 : f32 to vector<8x128xf32>
    %59 = arith.addf %58, %57 : vector<8x128xf32>
    %60 = arith.divf %58, %59 : vector<8x128xf32>
    %61 = vector.extract_strided_slice %48 {offsets = [0, 256], sizes = [8, 128], strides = [1, 1]} : vector<8x512xf32> to vector<8x128xf32>
    %62 = math.tanh %61 : vector<8x128xf32>
    %63 = vector.extract_strided_slice %48 {offsets = [0, 384], sizes = [8, 128], strides = [1, 1]} : vector<8x512xf32> to vector<8x128xf32>
    %64 = arith.negf %63 : vector<8x128xf32>
    %65 = math.exp %64 : vector<8x128xf32>
    %cst_24 = arith.constant 1.000000e+00 : f32
    %66 = vector.broadcast %cst_24 : f32 to vector<8x128xf32>
    %67 = arith.addf %66, %65 : vector<8x128xf32>
    %68 = arith.divf %66, %67 : vector<8x128xf32>
    %69 = arith.mulf %60, %37 : vector<8x128xf32>
    %70 = arith.mulf %54, %62 : vector<8x128xf32>
    %71 = arith.addf %69, %70 : vector<8x128xf32>
    %72 = math.tanh %71 : vector<8x128xf32>
    %73 = arith.mulf %68, %72 : vector<8x128xf32>
    %74 = arith.index_cast %43 : i32 to index
    %c0_25 = arith.constant 0 : index
    %75 = vector.load %arg12[%74, %c0_25] : memref<64x128xf32, #tpu.memory_space<vmem>>, vector<8x128xf32>
    tpu.vector_store %arg12[%74, %c0_25], %73 {strides = array<i32>} : memref<64x128xf32, #tpu.memory_space<vmem>>, vector<8x128xf32>,
    %c2_i32 = arith.constant 2 : i32
    %c8_i32_26 = arith.constant 8 : i32
    %76 = arith.muli %c2_i32, %c8_i32_26 : i32
    %77 = tpu.assume_multiple %76, 8 : i32
    %78 = arith.index_cast %77 : i32 to index
    %c0_27 = arith.constant 0 : index
    %79 = vector.load %arg11[%78, %c0_27] : memref<64x512xf32, #tpu.memory_space<vmem>>, vector<8x512xf32>
    %c0_28 = arith.constant 0 : index
    %c0_29 = arith.constant 0 : index
    %80 = vector.load %arg5[%c0_28, %c0_29] : memref<128x512xf32, #tpu.memory_space<vmem>>, vector<128x512xf32>
    %cst_30 = arith.constant dense<0.000000e+00> : vector<8x512xf32>
    %81 = tpu.matmul %73, %80, %cst_30 {dimension_numbers = #tpu.dot_dimension_numbers<[1], [0], [0], [1], [0, 0, 1, 1], [], []>} : vector<8x128xf32>, vector<128x512xf32>, vector<8x512xf32> -> vector<8x512xf32>
    %82 = arith.addf %79, %81 : vector<8x512xf32>
    %83 = vector.extract_strided_slice %82 {offsets = [0, 0], sizes = [8, 128], strides = [1, 1]} : vector<8x512xf32> to vector<8x128xf32>
    %84 = arith.negf %83 : vector<8x128xf32>
    %85 = math.exp %84 : vector<8x128xf32>
    %cst_31 = arith.constant 1.000000e+00 : f32
    %86 = vector.broadcast %cst_31 : f32 to vector<8x128xf32>
    %87 = arith.addf %86, %85 : vector<8x128xf32>
    %88 = arith.divf %86, %87 : vector<8x128xf32>
    %89 = vector.extract_strided_slice %82 {offsets = [0, 128], sizes = [8, 128], strides = [1, 1]} : vector<8x512xf32> to vector<8x128xf32>
    %90 = arith.negf %89 : vector<8x128xf32>
    %91 = math.exp %90 : vector<8x128xf32>
    %cst_32 = arith.constant 1.000000e+00 : f32
    %92 = vector.broadcast %cst_32 : f32 to vector<8x128xf32>
    %93 = arith.addf %92, %91 : vector<8x128xf32>
    %94 = arith.divf %92, %93 : vector<8x128xf32>
    %95 = vector.extract_strided_slice %82 {offsets = [0, 256], sizes = [8, 128], strides = [1, 1]} : vector<8x512xf32> to vector<8x128xf32>
    %96 = math.tanh %95 : vector<8x128xf32>
    %97 = vector.extract_strided_slice %82 {offsets = [0, 384], sizes = [8, 128], strides = [1, 1]} : vector<8x512xf32> to vector<8x128xf32>
    %98 = arith.negf %97 : vector<8x128xf32>
    %99 = math.exp %98 : vector<8x128xf32>
    %cst_33 = arith.constant 1.000000e+00 : f32
    %100 = vector.broadcast %cst_33 : f32 to vector<8x128xf32>
    %101 = arith.addf %100, %99 : vector<8x128xf32>
    %102 = arith.divf %100, %101 : vector<8x128xf32>
    %103 = arith.mulf %94, %71 : vector<8x128xf32>
    %104 = arith.mulf %88, %96 : vector<8x128xf32>
    %105 = arith.addf %103, %104 : vector<8x128xf32>
    %106 = math.tanh %105 : vector<8x128xf32>
    %107 = arith.mulf %102, %106 : vector<8x128xf32>
    %108 = arith.index_cast %77 : i32 to index
    %c0_34 = arith.constant 0 : index
    %109 = vector.load %arg12[%108, %c0_34] : memref<64x128xf32, #tpu.memory_space<vmem>>, vector<8x128xf32>
    tpu.vector_store %arg12[%108, %c0_34], %107 {strides = array<i32>} : memref<64x128xf32, #tpu.memory_space<vmem>>, vector<8x128xf32>,
    %c3_i32 = arith.constant 3 : i32
    %c8_i32_35 = arith.constant 8 : i32
    %110 = arith.muli %c3_i32, %c8_i32_35 : i32
    %111 = tpu.assume_multiple %110, 8 : i32
    %112 = arith.index_cast %111 : i32 to index
    %c0_36 = arith.constant 0 : index
    %113 = vector.load %arg11[%112, %c0_36] : memref<64x512xf32, #tpu.memory_space<vmem>>, vector<8x512xf32>
    %c0_37 = arith.constant 0 : index
    %c0_38 = arith.constant 0 : index
    %114 = vector.load %arg5[%c0_37, %c0_38] : memref<128x512xf32, #tpu.memory_space<vmem>>, vector<128x512xf32>
    %cst_39 = arith.constant dense<0.000000e+00> : vector<8x512xf32>
    %115 = tpu.matmul %107, %114, %cst_39 {dimension_numbers = #tpu.dot_dimension_numbers<[1], [0], [0], [1], [0, 0, 1, 1], [], []>} : vector<8x128xf32>, vector<128x512xf32>, vector<8x512xf32> -> vector<8x512xf32>
    %116 = arith.addf %113, %115 : vector<8x512xf32>
    %117 = vector.extract_strided_slice %116 {offsets = [0, 0], sizes = [8, 128], strides = [1, 1]} : vector<8x512xf32> to vector<8x128xf32>
    %118 = arith.negf %117 : vector<8x128xf32>
    %119 = math.exp %118 : vector<8x128xf32>
    %cst_40 = arith.constant 1.000000e+00 : f32
    %120 = vector.broadcast %cst_40 : f32 to vector<8x128xf32>
    %121 = arith.addf %120, %119 : vector<8x128xf32>
    %122 = arith.divf %120, %121 : vector<8x128xf32>
    %123 = vector.extract_strided_slice %116 {offsets = [0, 128], sizes = [8, 128], strides = [1, 1]} : vector<8x512xf32> to vector<8x128xf32>
    %124 = arith.negf %123 : vector<8x128xf32>
    %125 = math.exp %124 : vector<8x128xf32>
    %cst_41 = arith.constant 1.000000e+00 : f32
    %126 = vector.broadcast %cst_41 : f32 to vector<8x128xf32>
    %127 = arith.addf %126, %125 : vector<8x128xf32>
    %128 = arith.divf %126, %127 : vector<8x128xf32>
    %129 = vector.extract_strided_slice %116 {offsets = [0, 256], sizes = [8, 128], strides = [1, 1]} : vector<8x512xf32> to vector<8x128xf32>
    %130 = math.tanh %129 : vector<8x128xf32>
    %131 = vector.extract_strided_slice %116 {offsets = [0, 384], sizes = [8, 128], strides = [1, 1]} : vector<8x512xf32> to vector<8x128xf32>
    %132 = arith.negf %131 : vector<8x128xf32>
    %133 = math.exp %132 : vector<8x128xf32>
    %cst_42 = arith.constant 1.000000e+00 : f32
    %134 = vector.broadcast %cst_42 : f32 to vector<8x128xf32>
    %135 = arith.addf %134, %133 : vector<8x128xf32>
    %136 = arith.divf %134, %135 : vector<8x128xf32>
    %137 = arith.mulf %128, %105 : vector<8x128xf32>
    %138 = arith.mulf %122, %130 : vector<8x128xf32>
    %139 = arith.addf %137, %138 : vector<8x128xf32>
    %140 = math.tanh %139 : vector<8x128xf32>
    %141 = arith.mulf %136, %140 : vector<8x128xf32>
    %142 = arith.index_cast %111 : i32 to index
    %c0_43 = arith.constant 0 : index
    %143 = vector.load %arg12[%142, %c0_43] : memref<64x128xf32, #tpu.memory_space<vmem>>, vector<8x128xf32>
    tpu.vector_store %arg12[%142, %c0_43], %141 {strides = array<i32>} : memref<64x128xf32, #tpu.memory_space<vmem>>, vector<8x128xf32>,
    %c4_i32 = arith.constant 4 : i32
    %c8_i32_44 = arith.constant 8 : i32
    %144 = arith.muli %c4_i32, %c8_i32_44 : i32
    %145 = tpu.assume_multiple %144, 8 : i32
    %146 = arith.index_cast %145 : i32 to index
    %c0_45 = arith.constant 0 : index
    %147 = vector.load %arg11[%146, %c0_45] : memref<64x512xf32, #tpu.memory_space<vmem>>, vector<8x512xf32>
    %c0_46 = arith.constant 0 : index
    %c0_47 = arith.constant 0 : index
    %148 = vector.load %arg5[%c0_46, %c0_47] : memref<128x512xf32, #tpu.memory_space<vmem>>, vector<128x512xf32>
    %cst_48 = arith.constant dense<0.000000e+00> : vector<8x512xf32>
    %149 = tpu.matmul %141, %148, %cst_48 {dimension_numbers = #tpu.dot_dimension_numbers<[1], [0], [0], [1], [0, 0, 1, 1], [], []>} : vector<8x128xf32>, vector<128x512xf32>, vector<8x512xf32> -> vector<8x512xf32>
    %150 = arith.addf %147, %149 : vector<8x512xf32>
    %151 = vector.extract_strided_slice %150 {offsets = [0, 0], sizes = [8, 128], strides = [1, 1]} : vector<8x512xf32> to vector<8x128xf32>
    %152 = arith.negf %151 : vector<8x128xf32>
    %153 = math.exp %152 : vector<8x128xf32>
    %cst_49 = arith.constant 1.000000e+00 : f32
    %154 = vector.broadcast %cst_49 : f32 to vector<8x128xf32>
    %155 = arith.addf %154, %153 : vector<8x128xf32>
    %156 = arith.divf %154, %155 : vector<8x128xf32>
    %157 = vector.extract_strided_slice %150 {offsets = [0, 128], sizes = [8, 128], strides = [1, 1]} : vector<8x512xf32> to vector<8x128xf32>
    %158 = arith.negf %157 : vector<8x128xf32>
    %159 = math.exp %158 : vector<8x128xf32>
    %cst_50 = arith.constant 1.000000e+00 : f32
    %160 = vector.broadcast %cst_50 : f32 to vector<8x128xf32>
    %161 = arith.addf %160, %159 : vector<8x128xf32>
    %162 = arith.divf %160, %161 : vector<8x128xf32>
    %163 = vector.extract_strided_slice %150 {offsets = [0, 256], sizes = [8, 128], strides = [1, 1]} : vector<8x512xf32> to vector<8x128xf32>
    %164 = math.tanh %163 : vector<8x128xf32>
    %165 = vector.extract_strided_slice %150 {offsets = [0, 384], sizes = [8, 128], strides = [1, 1]} : vector<8x512xf32> to vector<8x128xf32>
    %166 = arith.negf %165 : vector<8x128xf32>
    %167 = math.exp %166 : vector<8x128xf32>
    %cst_51 = arith.constant 1.000000e+00 : f32
    %168 = vector.broadcast %cst_51 : f32 to vector<8x128xf32>
    %169 = arith.addf %168, %167 : vector<8x128xf32>
    %170 = arith.divf %168, %169 : vector<8x128xf32>
    %171 = arith.mulf %162, %139 : vector<8x128xf32>
    %172 = arith.mulf %156, %164 : vector<8x128xf32>
    %173 = arith.addf %171, %172 : vector<8x128xf32>
    %174 = math.tanh %173 : vector<8x128xf32>
    %175 = arith.mulf %170, %174 : vector<8x128xf32>
    %176 = arith.index_cast %145 : i32 to index
    %c0_52 = arith.constant 0 : index
    %177 = vector.load %arg12[%176, %c0_52] : memref<64x128xf32, #tpu.memory_space<vmem>>, vector<8x128xf32>
    tpu.vector_store %arg12[%176, %c0_52], %175 {strides = array<i32>} : memref<64x128xf32, #tpu.memory_space<vmem>>, vector<8x128xf32>,
    %c5_i32 = arith.constant 5 : i32
    %c8_i32_53 = arith.constant 8 : i32
    %178 = arith.muli %c5_i32, %c8_i32_53 : i32
    %179 = tpu.assume_multiple %178, 8 : i32
    %180 = arith.index_cast %179 : i32 to index
    %c0_54 = arith.constant 0 : index
    %181 = vector.load %arg11[%180, %c0_54] : memref<64x512xf32, #tpu.memory_space<vmem>>, vector<8x512xf32>
    %c0_55 = arith.constant 0 : index
    %c0_56 = arith.constant 0 : index
    %182 = vector.load %arg5[%c0_55, %c0_56] : memref<128x512xf32, #tpu.memory_space<vmem>>, vector<128x512xf32>
    %cst_57 = arith.constant dense<0.000000e+00> : vector<8x512xf32>
    %183 = tpu.matmul %175, %182, %cst_57 {dimension_numbers = #tpu.dot_dimension_numbers<[1], [0], [0], [1], [0, 0, 1, 1], [], []>} : vector<8x128xf32>, vector<128x512xf32>, vector<8x512xf32> -> vector<8x512xf32>
    %184 = arith.addf %181, %183 : vector<8x512xf32>
    %185 = vector.extract_strided_slice %184 {offsets = [0, 0], sizes = [8, 128], strides = [1, 1]} : vector<8x512xf32> to vector<8x128xf32>
    %186 = arith.negf %185 : vector<8x128xf32>
    %187 = math.exp %186 : vector<8x128xf32>
    %cst_58 = arith.constant 1.000000e+00 : f32
    %188 = vector.broadcast %cst_58 : f32 to vector<8x128xf32>
    %189 = arith.addf %188, %187 : vector<8x128xf32>
    %190 = arith.divf %188, %189 : vector<8x128xf32>
    %191 = vector.extract_strided_slice %184 {offsets = [0, 128], sizes = [8, 128], strides = [1, 1]} : vector<8x512xf32> to vector<8x128xf32>
    %192 = arith.negf %191 : vector<8x128xf32>
    %193 = math.exp %192 : vector<8x128xf32>
    %cst_59 = arith.constant 1.000000e+00 : f32
    %194 = vector.broadcast %cst_59 : f32 to vector<8x128xf32>
    %195 = arith.addf %194, %193 : vector<8x128xf32>
    %196 = arith.divf %194, %195 : vector<8x128xf32>
    %197 = vector.extract_strided_slice %184 {offsets = [0, 256], sizes = [8, 128], strides = [1, 1]} : vector<8x512xf32> to vector<8x128xf32>
    %198 = math.tanh %197 : vector<8x128xf32>
    %199 = vector.extract_strided_slice %184 {offsets = [0, 384], sizes = [8, 128], strides = [1, 1]} : vector<8x512xf32> to vector<8x128xf32>
    %200 = arith.negf %199 : vector<8x128xf32>
    %201 = math.exp %200 : vector<8x128xf32>
    %cst_60 = arith.constant 1.000000e+00 : f32
    %202 = vector.broadcast %cst_60 : f32 to vector<8x128xf32>
    %203 = arith.addf %202, %201 : vector<8x128xf32>
    %204 = arith.divf %202, %203 : vector<8x128xf32>
    %205 = arith.mulf %196, %173 : vector<8x128xf32>
    %206 = arith.mulf %190, %198 : vector<8x128xf32>
    %207 = arith.addf %205, %206 : vector<8x128xf32>
    %208 = math.tanh %207 : vector<8x128xf32>
    %209 = arith.mulf %204, %208 : vector<8x128xf32>
    %210 = arith.index_cast %179 : i32 to index
    %c0_61 = arith.constant 0 : index
    %211 = vector.load %arg12[%210, %c0_61] : memref<64x128xf32, #tpu.memory_space<vmem>>, vector<8x128xf32>
    tpu.vector_store %arg12[%210, %c0_61], %209 {strides = array<i32>} : memref<64x128xf32, #tpu.memory_space<vmem>>, vector<8x128xf32>,
    %c6_i32 = arith.constant 6 : i32
    %c8_i32_62 = arith.constant 8 : i32
    %212 = arith.muli %c6_i32, %c8_i32_62 : i32
    %213 = tpu.assume_multiple %212, 8 : i32
    %214 = arith.index_cast %213 : i32 to index
    %c0_63 = arith.constant 0 : index
    %215 = vector.load %arg11[%214, %c0_63] : memref<64x512xf32, #tpu.memory_space<vmem>>, vector<8x512xf32>
    %c0_64 = arith.constant 0 : index
    %c0_65 = arith.constant 0 : index
    %216 = vector.load %arg5[%c0_64, %c0_65] : memref<128x512xf32, #tpu.memory_space<vmem>>, vector<128x512xf32>
    %cst_66 = arith.constant dense<0.000000e+00> : vector<8x512xf32>
    %217 = tpu.matmul %209, %216, %cst_66 {dimension_numbers = #tpu.dot_dimension_numbers<[1], [0], [0], [1], [0, 0, 1, 1], [], []>} : vector<8x128xf32>, vector<128x512xf32>, vector<8x512xf32> -> vector<8x512xf32>
    %218 = arith.addf %215, %217 : vector<8x512xf32>
    %219 = vector.extract_strided_slice %218 {offsets = [0, 0], sizes = [8, 128], strides = [1, 1]} : vector<8x512xf32> to vector<8x128xf32>
    %220 = arith.negf %219 : vector<8x128xf32>
    %221 = math.exp %220 : vector<8x128xf32>
    %cst_67 = arith.constant 1.000000e+00 : f32
    %222 = vector.broadcast %cst_67 : f32 to vector<8x128xf32>
    %223 = arith.addf %222, %221 : vector<8x128xf32>
    %224 = arith.divf %222, %223 : vector<8x128xf32>
    %225 = vector.extract_strided_slice %218 {offsets = [0, 128], sizes = [8, 128], strides = [1, 1]} : vector<8x512xf32> to vector<8x128xf32>
    %226 = arith.negf %225 : vector<8x128xf32>
    %227 = math.exp %226 : vector<8x128xf32>
    %cst_68 = arith.constant 1.000000e+00 : f32
    %228 = vector.broadcast %cst_68 : f32 to vector<8x128xf32>
    %229 = arith.addf %228, %227 : vector<8x128xf32>
    %230 = arith.divf %228, %229 : vector<8x128xf32>
    %231 = vector.extract_strided_slice %218 {offsets = [0, 256], sizes = [8, 128], strides = [1, 1]} : vector<8x512xf32> to vector<8x128xf32>
    %232 = math.tanh %231 : vector<8x128xf32>
    %233 = vector.extract_strided_slice %218 {offsets = [0, 384], sizes = [8, 128], strides = [1, 1]} : vector<8x512xf32> to vector<8x128xf32>
    %234 = arith.negf %233 : vector<8x128xf32>
    %235 = math.exp %234 : vector<8x128xf32>
    %cst_69 = arith.constant 1.000000e+00 : f32
    %236 = vector.broadcast %cst_69 : f32 to vector<8x128xf32>
    %237 = arith.addf %236, %235 : vector<8x128xf32>
    %238 = arith.divf %236, %237 : vector<8x128xf32>
    %239 = arith.mulf %230, %207 : vector<8x128xf32>
    %240 = arith.mulf %224, %232 : vector<8x128xf32>
    %241 = arith.addf %239, %240 : vector<8x128xf32>
    %242 = math.tanh %241 : vector<8x128xf32>
    %243 = arith.mulf %238, %242 : vector<8x128xf32>
    %244 = arith.index_cast %213 : i32 to index
    %c0_70 = arith.constant 0 : index
    %245 = vector.load %arg12[%244, %c0_70] : memref<64x128xf32, #tpu.memory_space<vmem>>, vector<8x128xf32>
    tpu.vector_store %arg12[%244, %c0_70], %243 {strides = array<i32>} : memref<64x128xf32, #tpu.memory_space<vmem>>, vector<8x128xf32>,
    %c7_i32 = arith.constant 7 : i32
    %c8_i32_71 = arith.constant 8 : i32
    %246 = arith.muli %c7_i32, %c8_i32_71 : i32
    %247 = tpu.assume_multiple %246, 8 : i32
    %248 = arith.index_cast %247 : i32 to index
    %c0_72 = arith.constant 0 : index
    %249 = vector.load %arg11[%248, %c0_72] : memref<64x512xf32, #tpu.memory_space<vmem>>, vector<8x512xf32>
    %c0_73 = arith.constant 0 : index
    %c0_74 = arith.constant 0 : index
    %250 = vector.load %arg5[%c0_73, %c0_74] : memref<128x512xf32, #tpu.memory_space<vmem>>, vector<128x512xf32>
    %cst_75 = arith.constant dense<0.000000e+00> : vector<8x512xf32>
    %251 = tpu.matmul %243, %250, %cst_75 {dimension_numbers = #tpu.dot_dimension_numbers<[1], [0], [0], [1], [0, 0, 1, 1], [], []>} : vector<8x128xf32>, vector<128x512xf32>, vector<8x512xf32> -> vector<8x512xf32>
    %252 = arith.addf %249, %251 : vector<8x512xf32>
    %253 = vector.extract_strided_slice %252 {offsets = [0, 0], sizes = [8, 128], strides = [1, 1]} : vector<8x512xf32> to vector<8x128xf32>
    %254 = arith.negf %253 : vector<8x128xf32>
    %255 = math.exp %254 : vector<8x128xf32>
    %cst_76 = arith.constant 1.000000e+00 : f32
    %256 = vector.broadcast %cst_76 : f32 to vector<8x128xf32>
    %257 = arith.addf %256, %255 : vector<8x128xf32>
    %258 = arith.divf %256, %257 : vector<8x128xf32>
    %259 = vector.extract_strided_slice %252 {offsets = [0, 128], sizes = [8, 128], strides = [1, 1]} : vector<8x512xf32> to vector<8x128xf32>
    %260 = arith.negf %259 : vector<8x128xf32>
    %261 = math.exp %260 : vector<8x128xf32>
    %cst_77 = arith.constant 1.000000e+00 : f32
    %262 = vector.broadcast %cst_77 : f32 to vector<8x128xf32>
    %263 = arith.addf %262, %261 : vector<8x128xf32>
    %264 = arith.divf %262, %263 : vector<8x128xf32>
    %265 = vector.extract_strided_slice %252 {offsets = [0, 256], sizes = [8, 128], strides = [1, 1]} : vector<8x512xf32> to vector<8x128xf32>
    %266 = math.tanh %265 : vector<8x128xf32>
    %267 = vector.extract_strided_slice %252 {offsets = [0, 384], sizes = [8, 128], strides = [1, 1]} : vector<8x512xf32> to vector<8x128xf32>
    %268 = arith.negf %267 : vector<8x128xf32>
    %269 = math.exp %268 : vector<8x128xf32>
    %cst_78 = arith.constant 1.000000e+00 : f32
    %270 = vector.broadcast %cst_78 : f32 to vector<8x128xf32>
    %271 = arith.addf %270, %269 : vector<8x128xf32>
    %272 = arith.divf %270, %271 : vector<8x128xf32>
    %273 = arith.mulf %264, %241 : vector<8x128xf32>
    %274 = arith.mulf %258, %266 : vector<8x128xf32>
    %275 = arith.addf %273, %274 : vector<8x128xf32>
    %276 = math.tanh %275 : vector<8x128xf32>
    %277 = arith.mulf %272, %276 : vector<8x128xf32>
    %278 = arith.index_cast %247 : i32 to index
    %c0_79 = arith.constant 0 : index
    %279 = vector.load %arg12[%278, %c0_79] : memref<64x128xf32, #tpu.memory_space<vmem>>, vector<8x128xf32>
    tpu.vector_store %arg12[%278, %c0_79], %277 {strides = array<i32>} : memref<64x128xf32, #tpu.memory_space<vmem>>, vector<8x128xf32>,
    %c8_i32_80 = arith.constant 8 : i32
    %c0_81 = arith.constant 0 : index
    %c0_82 = arith.constant 0 : index
    %280 = vector.load %arg12[%c0_81, %c0_82] : memref<64x128xf32, #tpu.memory_space<vmem>>, vector<64x128xf32>
    %c0_83 = arith.constant 0 : index
    %c0_84 = arith.constant 0 : index
    %281 = vector.load %arg6[%c0_83, %c0_84] : memref<128x128xf32, #tpu.memory_space<vmem>>, vector<128x128xf32>
    %cst_85 = arith.constant dense<0.000000e+00> : vector<64x128xf32>
    %282 = tpu.matmul %280, %281, %cst_85 {dimension_numbers = #tpu.dot_dimension_numbers<[1], [0], [0], [1], [0, 0, 1, 1], [], []>} : vector<64x128xf32>, vector<128x128xf32>, vector<64x128xf32> -> vector<64x128xf32>
    %c0_86 = arith.constant 0 : index
    %c0_87 = arith.constant 0 : index
    %283 = vector.load %arg7[%c0_86, %c0_87] : memref<1x128xf32, #tpu.memory_space<vmem>>, vector<1x128xf32>
    %284 = vector.broadcast %283 : vector<1x128xf32> to vector<64x128xf32>
    %285 = arith.addf %282, %284 : vector<64x128xf32>
    %c0_88 = arith.constant 0 : index
    %c0_89 = arith.constant 0 : index
    %286 = vector.load %arg8[%c0_88, %c0_89] : memref<64x128xf32, #tpu.memory_space<vmem>>, vector<64x128xf32>
    tpu.vector_store %arg8[%c0_88, %c0_89], %285 {strides = array<i32>} : memref<64x128xf32, #tpu.memory_space<vmem>>, vector<64x128xf32>,
    %c0_90 = arith.constant 0 : index
    %c0_91 = arith.constant 0 : index
    %287 = vector.load %arg9[%c0_90, %c0_91] : memref<8x128xf32, #tpu.memory_space<vmem>>, vector<8x128xf32>
    tpu.vector_store %arg9[%c0_90, %c0_91], %277 {strides = array<i32>} : memref<8x128xf32, #tpu.memory_space<vmem>>, vector<8x128xf32>,
    %c0_92 = arith.constant 0 : index
    %c0_93 = arith.constant 0 : index
    %288 = vector.load %arg10[%c0_92, %c0_93] : memref<8x128xf32, #tpu.memory_space<vmem>>, vector<8x128xf32>
    tpu.vector_store %arg10[%c0_92, %c0_93], %275 {strides = array<i32>} : memref<8x128xf32, #tpu.memory_space<vmem>>, vector<8x128xf32>,
    return
  }
  func.func @transform_0(%arg0: i32) -> (i32, i32) {
    %c0_i32 = arith.constant 0 : i32
    %c0_i32_0 = arith.constant 0 : i32
    %c0_i32_1 = arith.constant 0 : i32
    return %c0_i32, %c0_i32_0 : i32, i32
  }
  func.func @transform_1(%arg0: i32) -> (i32, i32) {
    %c0_i32 = arith.constant 0 : i32
    %c0_i32_0 = arith.constant 0 : i32
    %c0_i32_1 = arith.constant 0 : i32
    return %c0_i32, %c0_i32_0 : i32, i32
  }
  func.func @transform_2(%arg0: i32) -> (i32, i32) {
    %c0_i32 = arith.constant 0 : i32
    %c0_i32_0 = arith.constant 0 : i32
    %c0_i32_1 = arith.constant 0 : i32
    return %c0_i32, %c0_i32_0 : i32, i32
  }
  func.func @transform_3(%arg0: i32) -> (i32, i32) {
    %c0_i32 = arith.constant 0 : i32
    %c0_i32_0 = arith.constant 0 : i32
    %c0_i32_1 = arith.constant 0 : i32
    return %c0_i32, %c0_i32_0 : i32, i32
  }
  func.func @transform_4(%arg0: i32) -> (i32, i32) {
    %c0_i32 = arith.constant 0 : i32
    %c0_i32_0 = arith.constant 0 : i32
    %c0_i32_1 = arith.constant 0 : i32
    return %c0_i32, %c0_i32_0 : i32, i32
  }
  func.func @transform_5(%arg0: i32) -> (i32, i32) {
    %c0_i32 = arith.constant 0 : i32
    %c0_i32_0 = arith.constant 0 : i32
    %c0_i32_1 = arith.constant 0 : i32
    return %c0_i32, %c0_i32_0 : i32, i32
  }
  func.func @transform_6(%arg0: i32) -> (i32, i32) {
    %c0_i32 = arith.constant 0 : i32
    %c0_i32_0 = arith.constant 0 : i32
    %c0_i32_1 = arith.constant 0 : i32
    return %c0_i32, %c0_i32_0 : i32, i32
  }
  func.func @transform_7(%arg0: i32) -> (i32, i32) {
    %c0_i32 = arith.constant 0 : i32
    %c0_i32_0 = arith.constant 0 : i32
    %c0_i32_1 = arith.constant 0 : i32
    return %c0_i32, %c0_i32_0 : i32, i32
  }
  func.func @transform_8(%arg0: i32) -> (i32, i32) {
    %c0_i32 = arith.constant 0 : i32
    %c0_i32_0 = arith.constant 0 : i32
    %c0_i32_1 = arith.constant 0 : i32
    return %c0_i32, %c0_i32_0 : i32, i32
  }
  func.func @transform_9(%arg0: i32) -> (i32, i32) {
    %c0_i32 = arith.constant 0 : i32
    %c0_i32_0 = arith.constant 0 : i32
    %c0_i32_1 = arith.constant 0 : i32
    return %c0_i32, %c0_i32_0 : i32, i32
  }
}

</mosaic_0001>

<bundles_post_ra>
// kernel: rnn_forward.1
= control target key start
LH: loop header
LB: loop body
LE: loop exit
PB: predicated region body
PF: predicated region fallthrough
CT: control target
= control target key end

     0   :  { %15 = vsyncpa [#allocation5], 0  ;;  %s4527_s0 = inlined_call_operand.vmem [shape: f32[64,128], index: 0, kind: input, shape index: {}]   ;;  %s4528_s1 = inlined_call_operand.vmem [shape: f32[8,128], index: 1, kind: input, shape index: {}]   ;;  %s4529_s2 = inlined_call_operand.vmem [shape: f32[128,512], index: 2, kind: input, shape index: {}]   ;;  %s4530_s3 = inlined_call_operand.vmem [shape: f32[1,512], index: 3, kind: input, shape index: {}]   ;;  %s4531_s4 = inlined_call_operand.vmem [shape: f32[128,512], index: 4, kind: input, shape index: {}]   ;;  %s4532_s5 = inlined_call_operand.vmem [shape: f32[128,128], index: 5, kind: input, shape index: {}]   ;;  %s4533_s6 = inlined_call_operand.vmem [shape: f32[1,128], index: 6, kind: input, shape index: {}]   ;;  %s4534_s7 = inlined_call_operand.hbm [shape: f32[64,128], index: 7, kind: output, shape index: {0}]   ;;  %s4535_s8 = inlined_call_operand.hbm [shape: f32[8,128], index: 8, kind: output, shape index: {1}]   ;;  %s4536_s9 = inlined_call_operand.hbm [shape: f32[8,128], index: 9, kind: output, shape index: {2}]  }
   0x1   :  { %v99_v0 = vld [vmem:[%s4529_s2 + $0x1e0] sm:$0xff]  ;;  %v102_v1 = vld [vmem:[%s4529_s2 + $0x1f8] sm:$0xff] }
   0x2   :  { %v95_v2 = vld [vmem:[%s4529_s2 + $0x1c0] sm:$0xff]  ;;  %113 = vmatpush.msra.mxu1 %v99_v0  ;;  %2228 = vmatpush.msra.mxu2 %v99_v0  ;;  %v98_v3 = vld [vmem:[%s4529_s2 + $0x1d8] sm:$0xff] }
   0x3   :  { %v2524_v4 = vld [vmem:[%s4531_s4 + $0x1e0] sm:$0xff]  ;;  %236 = vmatpush.msra.mxu3 %v102_v1  ;;  %v94_v7 = vld [vmem:[%s4529_s2 + $0x1b8] sm:$0xff] }
   0x4   :  { %381 = vmatpush.msra.mxu0 %v2524_v4  ;;  %v91_v5 = vld [vmem:[%s4529_s2 + $0x1a0] sm:$0xff]  ;;  %114 = vmatpush.msra.mxu1 %v95_v2  ;;  %v90_v10 = vld [vmem:[%s4529_s2 + $0x198] sm:$0xff] }
   0x5   :  { %v2533_v6 = vld [vmem:[%s4531_s4 + $0x1c0] sm:$0xff]  ;;  %2229 = vmatpush.msra.mxu2 %v95_v2  ;;  %237 = vmatpush.msra.mxu3 %v98_v3  ;;  %v86_v13 = vld [vmem:[%s4529_s2 + $0x178] sm:$0xff] }
   0x6   :  { %v2541_v8 = vld [vmem:[%s4531_s4 + $0x1a0] sm:$0xff]  ;;  %382 = vmatpush.msra.mxu0 %v2533_v6  ;;  %115 = vmatpush.msra.mxu1 %v91_v5  ;;  %v82_v16 = vld [vmem:[%s4529_s2 + $0x158] sm:$0xff] }
   0x7   :  { %v87_v9 = vld [vmem:[%s4529_s2 + $0x180] sm:$0xff]  ;;  %2230 = vmatpush.msra.mxu2 %v91_v5  ;;  %238 = vmatpush.msra.mxu3 %v94_v7  ;;  %v78_v19 = vld [vmem:[%s4529_s2 + $0x138] sm:$0xff] }
   0x8   :  { %v2553_v11 = vld [vmem:[%s4531_s4 + $0x180] sm:$0xff]  ;;  %383 = vmatpush.msra.mxu0 %v2541_v8  ;;  %116 = vmatpush.msra.mxu1 %v87_v9  ;;  %v74_v22 = vld [vmem:[%s4529_s2 + $0x118] sm:$0xff] }
   0x9   :  { %v83_v12 = vld [vmem:[%s4529_s2 + $0x160] sm:$0xff]  ;;  %2231 = vmatpush.msra.mxu2 %v87_v9  ;;  %239 = vmatpush.msra.mxu3 %v90_v10  ;;  %v70_v25 = vld [vmem:[%s4529_s2 + $0xf8] sm:$0xff] }
   0xa   :  { %v2565_v14 = vld [vmem:[%s4531_s4 + $0x160] sm:$0xff]  ;;  %384 = vmatpush.msra.mxu0 %v2553_v11  ;;  %117 = vmatpush.msra.mxu1 %v83_v12  ;;  %v66_v28 = vld [vmem:[%s4529_s2 + $0xd8] sm:$0xff] }
   0xb   :  { %v79_v15 = vld [vmem:[%s4529_s2 + $0x140] sm:$0xff]  ;;  %2232 = vmatpush.msra.mxu2 %v83_v12  ;;  %240 = vmatpush.msra.mxu3 %v86_v13  ;;  %v62_v31 = vld [vmem:[%s4529_s2 + $0xb8] sm:$0xff] }
   0xc   :  { %v2577_v17 = vld [vmem:[%s4531_s4 + $0x140] sm:$0xff]  ;;  %385 = vmatpush.msra.mxu0 %v2565_v14  ;;  %118 = vmatpush.msra.mxu1 %v79_v15  ;;  %v58_v34 = vld [vmem:[%s4529_s2 + $0x98] sm:$0xff] }
   0xd   :  { %v75_v18 = vld [vmem:[%s4529_s2 + $0x120] sm:$0xff]  ;;  %2233 = vmatpush.msra.mxu2 %v79_v15  ;;  %241 = vmatpush.msra.mxu3 %v82_v16  ;;  %v54_v37 = vld [vmem:[%s4529_s2 + $0x78] sm:$0xff] }
   0xe   :  { %v2589_v20 = vld [vmem:[%s4531_s4 + $0x120] sm:$0xff]  ;;  %386 = vmatpush.msra.mxu0 %v2577_v17  ;;  %119 = vmatpush.msra.mxu1 %v75_v18  ;;  %v50_v40 = vld [vmem:[%s4529_s2 + $0x58] sm:$0xff] }
   0xf   :  { %v71_v21 = vld [vmem:[%s4529_s2 + $0x100] sm:$0xff]  ;;  %2234 = vmatpush.msra.mxu2 %v75_v18  ;;  %242 = vmatpush.msra.mxu3 %v78_v19  ;;  %v46_v43 = vld [vmem:[%s4529_s2 + $0x38] sm:$0xff] }
  0x10   :  { %v2601_v23 = vld [vmem:[%s4531_s4 + $0x100] sm:$0xff]  ;;  %387 = vmatpush.msra.mxu0 %v2589_v20  ;;  %120 = vmatpush.msra.mxu1 %v71_v21  ;;  %v42_v46 = vld [vmem:[%s4529_s2 + $0x18] sm:$0xff] }
  0x11   :  { %v67_v24 = vld [vmem:[%s4529_s2 + $0xe0] sm:$0xff]  ;;  %2235 = vmatpush.msra.mxu2 %v71_v21  ;;  %243 = vmatpush.msra.mxu3 %v74_v22 }
  0x12   :  { %v2613_v26 = vld [vmem:[%s4531_s4 + $0xe0] sm:$0xff]  ;;  %388 = vmatpush.msra.mxu0 %v2601_v23  ;;  %121 = vmatpush.msra.mxu1 %v67_v24 }
  0x13   :  { %v63_v27 = vld [vmem:[%s4529_s2 + $0xc0] sm:$0xff]  ;;  %2236 = vmatpush.msra.mxu2 %v67_v24  ;;  %244 = vmatpush.msra.mxu3 %v70_v25 }
  0x14   :  { %v2625_v29 = vld [vmem:[%s4531_s4 + $0xc0] sm:$0xff]  ;;  %389 = vmatpush.msra.mxu0 %v2613_v26  ;;  %122 = vmatpush.msra.mxu1 %v63_v27 }
  0x15   :  { %v59_v30 = vld [vmem:[%s4529_s2 + $0xa0] sm:$0xff]  ;;  %2237 = vmatpush.msra.mxu2 %v63_v27  ;;  %245 = vmatpush.msra.mxu3 %v66_v28 }
  0x16   :  { %v2637_v32 = vld [vmem:[%s4531_s4 + $0xa0] sm:$0xff]  ;;  %390 = vmatpush.msra.mxu0 %v2625_v29  ;;  %123 = vmatpush.msra.mxu1 %v59_v30 }
  0x17   :  { %v55_v33 = vld [vmem:[%s4529_s2 + $0x80] sm:$0xff]  ;;  %2238 = vmatpush.msra.mxu2 %v59_v30  ;;  %246 = vmatpush.msra.mxu3 %v62_v31 }
  0x18   :  { %v2649_v35 = vld [vmem:[%s4531_s4 + $0x80] sm:$0xff]  ;;  %391 = vmatpush.msra.mxu0 %v2637_v32  ;;  %124 = vmatpush.msra.mxu1 %v55_v33 }
  0x19   :  { %v51_v36 = vld [vmem:[%s4529_s2 + $0x60] sm:$0xff]  ;;  %2239 = vmatpush.msra.mxu2 %v55_v33  ;;  %247 = vmatpush.msra.mxu3 %v58_v34 }
  0x1a   :  { %v2661_v38 = vld [vmem:[%s4531_s4 + $0x60] sm:$0xff]  ;;  %392 = vmatpush.msra.mxu0 %v2649_v35  ;;  %125 = vmatpush.msra.mxu1 %v51_v36 }
  0x1b   :  { %v47_v39 = vld [vmem:[%s4529_s2 + $0x40] sm:$0xff]  ;;  %2240 = vmatpush.msra.mxu2 %v51_v36  ;;  %248 = vmatpush.msra.mxu3 %v54_v37 }
  0x1c   :  { %v2673_v41 = vld [vmem:[%s4531_s4 + $0x40] sm:$0xff]  ;;  %393 = vmatpush.msra.mxu0 %v2661_v38  ;;  %126 = vmatpush.msra.mxu1 %v47_v39 }
  0x1d   :  { %v43_v42 = vld [vmem:[%s4529_s2 + $0x20] sm:$0xff]  ;;  %2241 = vmatpush.msra.mxu2 %v47_v39  ;;  %249 = vmatpush.msra.mxu3 %v50_v40 }
  0x1e   :  { %v2685_v44 = vld [vmem:[%s4531_s4 + $0x20] sm:$0xff]  ;;  %394 = vmatpush.msra.mxu0 %v2673_v41  ;;  %127 = vmatpush.msra.mxu1 %v43_v42 }
  0x1f   :  { %v39_v45 = vld [vmem:[%s4529_s2] sm:$0xff]  ;;  %2242 = vmatpush.msra.mxu2 %v43_v42 }
  0x20   :  { %v2697_v47 = vld [vmem:[%s4527_s0] sm:$0xff] }
  0x21   :  { %16 = vsyncpa [#allocation7], 0  ;;  %250 = vmatpush.msra.mxu3 %v46_v43  ;;  %395 = vmatpush.msra.mxu0 %v2685_v44  ;;  %v2703_v48 = vld [vmem:[%s4527_s0 + $0x20] sm:$0xff]  ;;  %v100_v49 = vld [vmem:[%s4529_s2 + $0x1e8] sm:$0xff]  ;;  %s2168_s30 = sshll.u32 %s4535_s8, 4  ;;  %s2455_s10 = smov [#allocation8]   ;;  %s2169_s30 = int_to_ptr.hbm [resolvable:$true] %s2168_s30 }
  0x22   :  { %128 = vmatpush.msra.mxu1 %v39_v45  ;;  %2243 = vmatpush.msra.mxu2 %v39_v45  ;;  %v101_v50 = vld [vmem:[%s4529_s2 + $0x1f0] sm:$0xff]  ;;  %v2715_v51 = vld [vmem:[%s4531_s4] sm:$0xff]  ;;  %v96_v52 = vld [vmem:[%s4529_s2 + $0x1c8] sm:$0xff]  ;;  %s2177_s11 = sshll.u32 %s2455_s10, 4  ;;  %s2179_s14 = sshll.u32 %s4536_s9, 4  ;;  %s2178_s11 = int_to_ptr.vmem [resolvable:$true] %s2177_s11  ;;  %s2180_s14 = int_to_ptr.hbm [resolvable:$true] %s2179_s14 }
  0x23   :  { %251 = vmatpush.msra.mxu3 %v42_v46  ;;  %129 = vmatmul.f32.vlgmr.msra.gmra.mxu1 %v2697_v47  ;;  %v2724_v53 = vld [vmem:[%s4528_s1] sm:$0xff]  ;;  %v97_v54 = vld [vmem:[%s4529_s2 + $0x1d0] sm:$0xff]  ;;  %v92_v55 = vld [vmem:[%s4529_s2 + $0x1a8] sm:$0xff]  ;;  %s2456_s8 = smov [#allocation4]   ;;  %s2154_s1 = sshll.u32 %s4534_s7, 4  ;;  %s2155_s1 = int_to_ptr.hbm [resolvable:$true] %s2154_s1 }
  0x24   :  { %141 = vmatmul.f32.vlgmr.msra.gmra.mxu2 %v2703_v48  ;;  %154 = vmatpush.msrb.mxu1 %v100_v49  ;;  %v2736_v56 = vld [vmem:[%s4531_s4 + $0x1f8] sm:$0xff]  ;;  %v93_v57 = vld [vmem:[%s4529_s2 + $0x1b0] sm:$0xff]  ;;  %v88_v58 = vld [vmem:[%s4529_s2 + $0x188] sm:$0xff]  ;;  %s2152_s15 = sshll.u32 %s2456_s8, 4  ;;  %s2457_s9 = smov 128   ;;  %s2153_s15 = int_to_ptr.vmem [resolvable:$true] %s2152_s15 }
  0x25   :  { %252 = vmatmul.f32.vlgmr.msra.gmra.mxu3 %v2697_v47  ;;  %195 = vmatpush.msrb.mxu2 %v101_v50  ;;  %v2749_v59 = vld [vmem:[%s4531_s4 + $0x1d8] sm:$0xff]  ;;  %v89_v60 = vld [vmem:[%s4529_s2 + $0x190] sm:$0xff]  ;;  %v2757_v61 = vld [vmem:[%s4527_s0 + $0x8] sm:$0xff] }
  0x26   :  { %396 = vmatpush.msra.mxu0 %v2715_v51  ;;  %155 = vmatpush.msrb.mxu1 %v96_v52  ;;  %v2763_v62 = vld [vmem:[%s4527_s0 + $0x28] sm:$0xff]  ;;  %v85_v0 = vld [vmem:[%s4529_s2 + $0x170] sm:$0xff]  ;;  %v2780_v2 = vld [vmem:[%s4531_s4 + $0x1b8] sm:$0xff] }
  0x27   :  { %397 = vmatmul.f32.vlgmr.msra.gmra.mxu0 %v2724_v53  ;;  %196 = vmatpush.msrb.mxu2 %v97_v54  ;;  %v84_v63 = vld [vmem:[%s4529_s2 + $0x168] sm:$0xff]  ;;  %v81_v3 = vld [vmem:[%s4529_s2 + $0x150] sm:$0xff]  ;;  %v2793_v5 = vld [vmem:[%s4531_s4 + $0x198] sm:$0xff] }
  0x28   :  { %156 = vmatpush.msrb.mxu1 %v92_v55  ;;  %441 = vmatpush.msrb.mxu3 %v2736_v56  ;;  %v80_v1 = vld [vmem:[%s4529_s2 + $0x148] sm:$0xff]  ;;  %v77_v7 = vld [vmem:[%s4529_s2 + $0x130] sm:$0xff]  ;;  %v2805_v10 = vld [vmem:[%s4531_s4 + $0x178] sm:$0xff] }
  0x29   :  { %197 = vmatpush.msrb.mxu2 %v93_v57  ;;  %600 = vmatpush.msrb.mxu0 %v2524_v4  ;;  %v76_v4 = vld [vmem:[%s4529_s2 + $0x128] sm:$0xff]  ;;  %v73_v12 = vld [vmem:[%s4529_s2 + $0x110] sm:$0xff]  ;;  %v2837_v19 = vld [vmem:[%s4531_s4 + $0x158] sm:$0xff] }
  0x2a   :  { %157 = vmatpush.msrb.mxu1 %v88_v58  ;;  %442 = vmatpush.msrb.mxu3 %v2749_v59  ;;  %v72_v9 = vld [vmem:[%s4529_s2 + $0x108] sm:$0xff]  ;;  %v2814_v13 = vld [vmem:[%s4527_s0 + $0x10] sm:$0xff]  ;;  %v2850_v22 = vld [vmem:[%s4531_s4 + $0x138] sm:$0xff] }
  0x2b   :  { %198 = vmatpush.msrb.mxu2 %v89_v60  ;;  %132 = vmatmul.f32.gmra.mxu1 %v2757_v61  ;;  %v2820_v15 = vld [vmem:[%s4527_s0 + $0x30] sm:$0xff]  ;;  %v64_v18 = vld [vmem:[%s4529_s2 + $0xc8] sm:$0xff]  ;;  %v2862_v27 = vld [vmem:[%s4531_s4 + $0x118] sm:$0xff] }
  0x2c   :  { %144 = vmatmul.f32.gmra.mxu2 %v2763_v62  ;;  %158 = vmatpush.msrb.mxu1 %v84_v63  ;;  %v69_v16 = vld [vmem:[%s4529_s2 + $0xf0] sm:$0xff]  ;;  %v60_v21 = vld [vmem:[%s4529_s2 + $0xa8] sm:$0xff]  ;;  %v2871_v30 = vld [vmem:[%s4527_s0 + $0x18] sm:$0xff] }
  0x2d   :  { %255 = vmatmul.f32.gmra.mxu3 %v2757_v61  ;;  %199 = vmatpush.msrb.mxu2 %v85_v0  ;;  %v61_v24 = vld [vmem:[%s4529_s2 + $0xb0] sm:$0xff]  ;;  %v56_v25 = vld [vmem:[%s4529_s2 + $0x88] sm:$0xff]  ;;  %v2877_v31 = vld [vmem:[%s4527_s0 + $0x38] sm:$0xff] }
  0x2e   :  { %159 = vmatpush.msrb.mxu1 %v80_v1  ;;  %443 = vmatpush.msrb.mxu3 %v2780_v2  ;;  %v57_v28 = vld [vmem:[%s4529_s2 + $0x90] sm:$0xff]  ;;  %v48_v34 = vld [vmem:[%s4529_s2 + $0x48] sm:$0xff]  ;;  %v2894_v36 = vld [vmem:[%s4531_s4 + $0xf8] sm:$0xff] }
  0x2f   :  { %200 = vmatpush.msrb.mxu2 %v81_v3  ;;  %601 = vmatpush.msrb.mxu0 %v2533_v6  ;;  %v68_v6 = vld [vmem:[%s4529_s2 + $0xe8] sm:$0xff]  ;;  %v53_v33 = vld [vmem:[%s4529_s2 + $0x70] sm:$0xff]  ;;  %v2907_v39 = vld [vmem:[%s4531_s4 + $0xd8] sm:$0xff] }
  0x30   :  { %160 = vmatpush.msrb.mxu1 %v76_v4  ;;  %444 = vmatpush.msrb.mxu3 %v2793_v5  ;;  %v44_v37 = vld [vmem:[%s4529_s2 + $0x28] sm:$0xff]  ;;  %v45_v40 = vld [vmem:[%s4529_s2 + $0x30] sm:$0xff]  ;;  %v2919_v43 = vld [vmem:[%s4531_s4 + $0xb8] sm:$0xff] }
  0x31   :  { %201 = vmatpush.msrb.mxu2 %v77_v7  ;;  %602 = vmatpush.msrb.mxu0 %v2541_v8  ;;  %v65_v8 = vld [vmem:[%s4529_s2 + $0xd0] sm:$0xff]  ;;  %v40_v42 = vld [vmem:[%s4529_s2 + $0x8] sm:$0xff]  ;;  %v2984_v57 = vld [vmem:[%s4531_s4 + $0x58] sm:$0xff] }
  0x32   :  { %161 = vmatpush.msrb.mxu1 %v72_v9  ;;  %445 = vmatpush.msrb.mxu3 %v2805_v10  ;;  %v41_v45 = vld [vmem:[%s4529_s2 + $0x10] sm:$0xff]  ;;  %v2929_v46 = vld [vmem:[%s4531_s4 + $0x1e8] sm:$0xff] }
  0x33   :  { %202 = vmatpush.msrb.mxu2 %v73_v12  ;;  %135 = vmatmul.f32.gmra.mxu1 %v2814_v13  ;;  %v2942_v49 = vld [vmem:[%s4531_s4 + $0x1c8] sm:$0xff]  ;;  %v2954_v50 = vld [vmem:[%s4531_s4 + $0x1d0] sm:$0xff] }
  0x34   :  { %147 = vmatmul.f32.gmra.mxu2 %v2820_v15  ;;  %162 = vmatpush.msrb.mxu1 %v68_v6  ;;  %v2960_v52 = vld [vmem:[%s4531_s4 + $0x1a8] sm:$0xff]  ;;  %v2972_v54 = vld [vmem:[%s4531_s4 + $0x1b0] sm:$0xff] }
  0x35   :  { %258 = vmatmul.f32.gmra.mxu3 %v2814_v13  ;;  %203 = vmatpush.msrb.mxu2 %v69_v16  ;;  %v2978_v55 = vld [vmem:[%s4531_s4 + $0x188] sm:$0xff]  ;;  %v2992_v58 = vld [vmem:[%s4531_s4 + $0x190] sm:$0xff] }
  0x36   :  { %163 = vmatpush.msrb.mxu1 %v64_v18  ;;  %446 = vmatpush.msrb.mxu3 %v2837_v19  ;;  %v2997_v60 = vld [vmem:[%s4531_s4 + $0x168] sm:$0xff]  ;;  %v3025_v0 = vld [vmem:[%s4531_s4 + $0x150] sm:$0xff] }
  0x37   :  { %204 = vmatpush.msrb.mxu2 %v65_v8  ;;  %603 = vmatpush.msrb.mxu0 %v2553_v11  ;;  %v52_v11 = vld [vmem:[%s4529_s2 + $0x68] sm:$0xff]  ;;  %v3044_v3 = vld [vmem:[%s4531_s4 + $0x130] sm:$0xff] }
  0x38   :  { %164 = vmatpush.msrb.mxu1 %v60_v21  ;;  %447 = vmatpush.msrb.mxu3 %v2850_v22  ;;  %v3012_v63 = vld [vmem:[%s4531_s4 + $0x148] sm:$0xff]  ;;  %v3058_v7 = vld [vmem:[%s4531_s4 + $0x110] sm:$0xff] }
  0x39   :  { %205 = vmatpush.msrb.mxu2 %v61_v24  ;;  %604 = vmatpush.msrb.mxu0 %v2565_v14  ;;  %v49_v14 = vld [vmem:[%s4529_s2 + $0x50] sm:$0xff]  ;;  %v3031_v1 = vld [vmem:[%s4531_s4 + $0x128] sm:$0xff] }
  0x3a   :  { %165 = vmatpush.msrb.mxu1 %v56_v25  ;;  %448 = vmatpush.msrb.mxu3 %v2862_v27  ;;  %v3049_v4 = vld [vmem:[%s4531_s4 + $0x108] sm:$0xff]  ;;  %v3086_v6 = vld [vmem:[%s4531_s4 + $0xd0] sm:$0xff] }
  0x3b   :  { %206 = vmatpush.msrb.mxu2 %v57_v28  ;;  %138 = vmatmul.f32.gmra.mxu1 %v2871_v30  ;;  %v3063_v9 = vld [vmem:[%s4531_s4 + $0xe8] sm:$0xff]  ;;  %v3113_v18 = vld [vmem:[%s4531_s4 + $0x90] sm:$0xff] }
  0x3c   :  { %150 = vmatmul.f32.gmra.mxu2 %v2877_v31  ;;  %166 = vmatpush.msrb.mxu1 %v52_v11  ;;  %v3078_v12 = vld [vmem:[%s4531_s4 + $0xc8] sm:$0xff]  ;;  %v3142_v21 = vld [vmem:[%s4531_s4 + $0x50] sm:$0xff] }
  0x3d   :  { %261 = vmatmul.f32.gmra.mxu3 %v2871_v30  ;;  %207 = vmatpush.msrb.mxu2 %v53_v33  ;;  %v3105_v16 = vld [vmem:[%s4531_s4 + $0x88] sm:$0xff]  ;;  %v3155_v25 = vld [vmem:[%s4531_s4 + $0x30] sm:$0xff] }
  0x3e   :  { %167 = vmatpush.msrb.mxu1 %v48_v34  ;;  %449 = vmatpush.msrb.mxu3 %v2894_v36  ;;  %v3119_v8 = vld [vmem:[%s4531_s4 + $0x68] sm:$0xff] }
  0x3f   :  { %208 = vmatpush.msrb.mxu2 %v49_v14  ;;  %605 = vmatpush.msrb.mxu0 %v2577_v17  ;;  %v2935_v17 = vld [vmem:[%s4531_s4 + $0x1f0] sm:$0xff]  ;;  %v3148_v24 = vld [vmem:[%s4531_s4 + $0x28] sm:$0xff] }
  0x40   :  { %168 = vmatpush.msrb.mxu1 %v44_v37  ;;  %450 = vmatpush.msrb.mxu3 %v2907_v39  ;;  %v3162_v28 = vld [vmem:[%s4531_s4 + $0x8] sm:$0xff] }
  0x41   :  { %209 = vmatpush.msrb.mxu2 %v45_v40  ;;  %606 = vmatpush.msrb.mxu0 %v2589_v20  ;;  %v2947_v20 = vld [vmem:[%s4531_s4 + $0x98] sm:$0xff] }
  0x42   :  { %169 = vmatpush.msrb.mxu1 %v40_v42  ;;  %451 = vmatpush.msrb.mxu3 %v2919_v43 }
  0x43   :  { %210 = vmatpush.msrb.mxu2 %v41_v45  ;;  %170 = vmatmul.f32.vlgmr.msrb.gmra.mxu1 %v2697_v47 }
  0x44   :  { %211 = vmatmul.f32.vlgmr.msrb.gmra.mxu2 %v2697_v47  ;;  %401 = vmatpush.msra.mxu1 %v2929_v46  ;;  %v2966_v47 = vld [vmem:[%s4531_s4 + $0x78] sm:$0xff] }
  0x45   :  { %264 = vmatmul.f32.gmra.mxu3 %v2703_v48  ;;  %421 = vmatpush.msra.mxu2 %v2935_v17 }
  0x46   :  { %402 = vmatpush.msra.mxu1 %v2942_v49  ;;  %452 = vmatpush.msrb.mxu3 %v2947_v20 }
  0x47   :  { %422 = vmatpush.msra.mxu2 %v2954_v50  ;;  %607 = vmatpush.msrb.mxu0 %v2601_v23  ;;  %v3006_v23 = vld [vmem:[%s4531_s4 + $0x170] sm:$0xff] }
  0x48   :  { %403 = vmatpush.msra.mxu1 %v2960_v52  ;;  %453 = vmatpush.msrb.mxu3 %v2966_v47 }
  0x49   :  { %423 = vmatpush.msra.mxu2 %v2972_v54  ;;  %608 = vmatpush.msrb.mxu0 %v2613_v26  ;;  %v3018_v26 = vld [vmem:[%s4531_s4 + $0x38] sm:$0xff] }
  0x4a   :  { %404 = vmatpush.msra.mxu1 %v2978_v55  ;;  %454 = vmatpush.msrb.mxu3 %v2984_v57 }
  0x4b   :  { %173 = vmatmul.f32.gmra.mxu1 %v2757_v61  ;;  %424 = vmatpush.msra.mxu2 %v2992_v58 }
  0x4c   :  { %214 = vmatmul.f32.gmra.mxu2 %v2757_v61  ;;  %405 = vmatpush.msra.mxu1 %v2997_v60  ;;  %v3037_v61 = vld [vmem:[%s4531_s4 + $0x18] sm:$0xff] }
  0x4d   :  { %267 = vmatmul.f32.gmra.mxu3 %v2763_v62  ;;  %425 = vmatpush.msra.mxu2 %v3006_v23 }
  0x4e   :  { %406 = vmatpush.msra.mxu1 %v3012_v63  ;;  %455 = vmatpush.msrb.mxu3 %v3018_v26 }
  0x4f   :  { %426 = vmatpush.msra.mxu2 %v3025_v0  ;;  %609 = vmatpush.msrb.mxu0 %v2625_v29  ;;  %v3071_v29 = vld [vmem:[%s4531_s4 + $0xf0] sm:$0xff] }
  0x50   :  { %407 = vmatpush.msra.mxu1 %v3031_v1  ;;  %456 = vmatpush.msrb.mxu3 %v3037_v61 }
  0x51   :  { %427 = vmatpush.msra.mxu2 %v3044_v3  ;;  %610 = vmatpush.msrb.mxu0 %v2637_v32  ;;  %v3092_v32 = vld [vmem:[%s4531_s4 + $0xa8] sm:$0xff] }
  0x52   :  { %660 = vmatpush.msra.mxu3 %v2736_v56  ;;  %408 = vmatpush.msra.mxu1 %v3049_v4 }
  0x53   :  { %176 = vmatmul.f32.gmra.mxu1 %v2814_v13  ;;  %428 = vmatpush.msra.mxu2 %v3058_v7 }
  0x54   :  { %217 = vmatmul.f32.gmra.mxu2 %v2814_v13  ;;  %409 = vmatpush.msra.mxu1 %v3063_v9  ;;  %v3099_v13 = vld [vmem:[%s4531_s4 + $0xb0] sm:$0xff] }
  0x55   :  { %270 = vmatmul.f32.gmra.mxu3 %v2820_v15  ;;  %429 = vmatpush.msra.mxu2 %v3071_v29 }
  0x56   :  { %410 = vmatpush.msra.mxu1 %v3078_v12  ;;  %661 = vmatpush.msra.mxu3 %v2749_v59 }
  0x57   :  { %430 = vmatpush.msra.mxu2 %v3086_v6  ;;  %611 = vmatpush.msrb.mxu0 %v2649_v35  ;;  %v3129_v35 = vld [vmem:[%s4531_s4 + $0x48] sm:$0xff] }
  0x58   :  { %411 = vmatpush.msra.mxu1 %v3092_v32  ;;  %662 = vmatpush.msra.mxu3 %v2780_v2 }
  0x59   :  { %431 = vmatpush.msra.mxu2 %v3099_v13  ;;  %612 = vmatpush.msrb.mxu0 %v2661_v38  ;;  %v3137_v38 = vld [vmem:[%s4531_s4 + $0x70] sm:$0xff] }
  0x5a   :  { %412 = vmatpush.msra.mxu1 %v3105_v16  ;;  %663 = vmatpush.msra.mxu3 %v2793_v5 }
  0x5b   :  { %179 = vmatmul.f32.gmra.mxu1 %v2871_v30  ;;  %432 = vmatpush.msra.mxu2 %v3113_v18 }
  0x5c   :  { %220 = vmatmul.f32.gmra.mxu2 %v2871_v30  ;;  %413 = vmatpush.msra.mxu1 %v3119_v8  ;;  %v3169_v30 = vld [vmem:[%s4531_s4 + $0x10] sm:$0xff] }
  0x5d   :  { %273 = vmatmul.f32.gmra.mxu3 %v2877_v31  ;;  %433 = vmatpush.msra.mxu2 %v3137_v38 }
  0x5e   :  { %414 = vmatpush.msra.mxu1 %v3129_v35  ;;  %664 = vmatpush.msra.mxu3 %v2805_v10 }
  0x5f   :  { %434 = vmatpush.msra.mxu2 %v3142_v21  ;;  %613 = vmatpush.msrb.mxu0 %v2673_v41 }
  0x60   :  { %415 = vmatpush.msra.mxu1 %v3148_v24  ;;  %665 = vmatpush.msra.mxu3 %v2837_v19 }
  0x61   :  { %435 = vmatpush.msra.mxu2 %v3155_v25  ;;  %614 = vmatpush.msrb.mxu0 %v2685_v44  ;;  %v103_v44 = vld [vmem:[%s4530_s3] sm:$0xf]  ;;  %s2458_s3 = smov 8  }
  0x62   :  { %416 = vmatpush.msra.mxu1 %v3162_v28  ;;  %666 = vmatpush.msra.mxu3 %v2850_v22 }
  0x63   :  { %182 = vmatmul.f32.gmra.mxu1 %v2703_v48  ;;  %436 = vmatpush.msra.mxu2 %v3169_v30 }
  0x64   :  { %223 = vmatmul.f32.gmra.mxu2 %v2703_v48  ;;  %620 = vmatpush.msrb.mxu1 %v2929_v46  ;;  %v105_v48 = vperm.slane %v103_v44, 0 }
  0x65   :  { %457 = vmatmul.f32.vlgmr.msrb.gmra.mxu3 %v2724_v53  ;;  %640 = vmatpush.msrb.mxu2 %v2935_v17 }
  0x66   :  { %621 = vmatpush.msrb.mxu1 %v2942_v49  ;;  %667 = vmatpush.msra.mxu3 %v2862_v27 }
  0x67   :  { %641 = vmatpush.msrb.mxu2 %v2954_v50  ;;  %615 = vmatpush.msrb.mxu0 %v2715_v51 }
  0x68   :  { %622 = vmatpush.msrb.mxu1 %v2960_v52  ;;  %668 = vmatpush.msra.mxu3 %v2894_v36 }
  0x69   :  { %642 = vmatpush.msrb.mxu2 %v2972_v54 }
  0x6a   :  { %623 = vmatpush.msrb.mxu1 %v2978_v55  ;;  %669 = vmatpush.msra.mxu3 %v2907_v39 }
  0x6b   :  { %185 = vmatmul.f32.gmra.mxu1 %v2763_v62  ;;  %643 = vmatpush.msrb.mxu2 %v2992_v58 }
  0x6c   :  { %226 = vmatmul.f32.gmra.mxu2 %v2763_v62  ;;  %624 = vmatpush.msrb.mxu1 %v2997_v60 }
  0x6d   :  { %644 = vmatpush.msrb.mxu2 %v3006_v23  ;;  %670 = vmatpush.msra.mxu3 %v2919_v43 }
  0x6e   :  { %625 = vmatpush.msrb.mxu1 %v3012_v63 }
  0x6f   :  { %645 = vmatpush.msrb.mxu2 %v3025_v0  ;;  %671 = vmatpush.msra.mxu3 %v2947_v20 }
  0x70   :  { %626 = vmatpush.msrb.mxu1 %v3031_v1 }
  0x71   :  { %646 = vmatpush.msrb.mxu2 %v3044_v3  ;;  %672 = vmatpush.msra.mxu3 %v2966_v47 }
  0x72   :  { %627 = vmatpush.msrb.mxu1 %v3049_v4 }
  0x73   :  { %188 = vmatmul.f32.gmra.mxu1 %v2820_v15  ;;  %647 = vmatpush.msrb.mxu2 %v3058_v7 }
  0x74   :  { %229 = vmatmul.f32.gmra.mxu2 %v2820_v15  ;;  %628 = vmatpush.msrb.mxu1 %v3063_v9 }
  0x75   :  { %648 = vmatpush.msrb.mxu2 %v3071_v29  ;;  %673 = vmatpush.msra.mxu3 %v2984_v57 }
  0x76   :  { %629 = vmatpush.msrb.mxu1 %v3078_v12 }
  0x77   :  { %649 = vmatpush.msrb.mxu2 %v3086_v6  ;;  %674 = vmatpush.msra.mxu3 %v3018_v26 }
  0x78   :  { %630 = vmatpush.msrb.mxu1 %v3092_v32 }
  0x79   :  { %650 = vmatpush.msrb.mxu2 %v3099_v13  ;;  %675 = vmatpush.msra.mxu3 %v3037_v61 }
  0x7a   :  { %631 = vmatpush.msrb.mxu1 %v3105_v16 }
  0x7b   :  { %880 = vmatpush.msrb.mxu3 %v2736_v56  ;;  %191 = vmatmul.f32.gmra.mxu1 %v2877_v31 }
  0x7c   :  { %651 = vmatpush.msrb.mxu2 %v3113_v18  ;;  %632 = vmatpush.msrb.mxu1 %v3119_v8 }
  0x7d   :  { %232 = vmatmul.f32.gmra.mxu2 %v2877_v31  ;;  %881 = vmatpush.msrb.mxu3 %v2749_v59 }
  0x7e   :  { %652 = vmatpush.msrb.mxu2 %v3137_v38  ;;  %633 = vmatpush.msrb.mxu1 %v3129_v35 }
  0x7f   :  { %882 = vmatpush.msrb.mxu3 %v2780_v2 }
  0x80   :  { %653 = vmatpush.msrb.mxu2 %v3142_v21  ;;  %634 = vmatpush.msrb.mxu1 %v3148_v24 }
  0x81   :  { %883 = vmatpush.msrb.mxu3 %v2793_v5  ;;  %v108_v5 = vperm.slane %v103_v44, 3 }
  0x82   :  { %654 = vmatpush.msrb.mxu2 %v3155_v25  ;;  %635 = vmatpush.msrb.mxu1 %v3162_v28 }
  0x83   :  { %417 = vmatmul.f32.vlgmr.msra.gmra.mxu1 %v2724_v53  ;;  %884 = vmatpush.msrb.mxu3 %v2805_v10 }
  0x84   :  { %655 = vmatpush.msrb.mxu2 %v3169_v30  ;;  %840 = vmatpush.msra.mxu1 %v2929_v46  ;;  %v106_v46 = vperm.slane %v103_v44, 1 }
  0x85   :  { %437 = vmatmul.f32.vlgmr.msra.gmra.mxu2 %v2724_v53  ;;  %885 = vmatpush.msrb.mxu3 %v2837_v19 }
  0x86   :  { %860 = vmatpush.msra.mxu2 %v2935_v17  ;;  %841 = vmatpush.msra.mxu1 %v2942_v49 }
  0x87   :  { %886 = vmatpush.msrb.mxu3 %v2850_v22 }
  0x88   :  { %861 = vmatpush.msra.mxu2 %v2954_v50  ;;  %842 = vmatpush.msra.mxu1 %v2960_v52 }
  0x89   :  { %887 = vmatpush.msrb.mxu3 %v2862_v27 }
  0x8a   :  { %862 = vmatpush.msra.mxu2 %v2972_v54  ;;  %843 = vmatpush.msra.mxu1 %v2978_v55 }
  0x8b   :  { %888 = vmatpush.msrb.mxu3 %v2894_v36 }
  0x8c   :  { %863 = vmatpush.msra.mxu2 %v2992_v58  ;;  %844 = vmatpush.msra.mxu1 %v2997_v60 }
  0x8d   :  { %889 = vmatpush.msrb.mxu3 %v2907_v39 }
  0x8e   :  { %864 = vmatpush.msra.mxu2 %v3006_v23  ;;  %845 = vmatpush.msra.mxu1 %v3012_v63 }
  0x8f   :  { %890 = vmatpush.msrb.mxu3 %v2919_v43 }
  0x90   :  { %865 = vmatpush.msra.mxu2 %v3025_v0  ;;  %846 = vmatpush.msra.mxu1 %v3031_v1 }
  0x91   :  { %891 = vmatpush.msrb.mxu3 %v2947_v20 }
  0x92   :  { %866 = vmatpush.msra.mxu2 %v3044_v3  ;;  %847 = vmatpush.msra.mxu1 %v3049_v4 }
  0x93   :  { %892 = vmatpush.msrb.mxu3 %v2966_v47  ;;  %v107_v47 = vperm.slane %v103_v44, 2 }
  0x94   :  { %867 = vmatpush.msra.mxu2 %v3058_v7  ;;  %848 = vmatpush.msra.mxu1 %v3063_v9 }
  0x95   :  { %893 = vmatpush.msrb.mxu3 %v2984_v57 }
  0x96   :  { %868 = vmatpush.msra.mxu2 %v3071_v29  ;;  %849 = vmatpush.msra.mxu1 %v3078_v12 }
  0x97   :  { %894 = vmatpush.msrb.mxu3 %v3018_v26 }
  0x98   :  { %869 = vmatpush.msra.mxu2 %v3086_v6  ;;  %850 = vmatpush.msra.mxu1 %v3092_v32 }
  0x99   :  { %895 = vmatpush.msrb.mxu3 %v3037_v61 }
  0x9a   :  { %870 = vmatpush.msra.mxu2 %v3099_v13  ;;  %851 = vmatpush.msra.mxu1 %v3105_v16 }
  0x9c   :  { %871 = vmatpush.msra.mxu2 %v3113_v18  ;;  %852 = vmatpush.msra.mxu1 %v3119_v8 }
  0x9e   :  { %872 = vmatpush.msra.mxu2 %v3137_v38  ;;  %853 = vmatpush.msra.mxu1 %v3129_v35 }
  0xa0   :  { %873 = vmatpush.msra.mxu2 %v3142_v21  ;;  %v130_v41 = vpop.f32.mrf.mxu1  ;;  %854 = vmatpush.msra.mxu1 %v3148_v24 }
  0xa1   :  { %v131_v18 = vadd.f32 %v130_v41, %v105_v48 }
  0xa2   :  { %874 = vmatpush.msra.mxu2 %v3155_v25  ;;  %855 = vmatpush.msra.mxu1 %v3162_v28 }
  0xa4   :  { %875 = vmatpush.msra.mxu2 %v3169_v30  ;;  %v398_v35 = vpop.f32.mrf.mxu0 }
  0xa5   :  { %v461_v38 = vadd.f32 %v398_v35, %v131_v18 }
  0xa7   :  { %v142_v51 = vpop.f32.mrf.mxu2  ;;  %v2204_v28 = vmul.f32 -1.442695, %v461_v38 }
  0xa8   :  { %v3281_v56 = vadd.f32 %v142_v51, %v105_v48  ;;  %v253_v59 = vpop.f32.mrf.mxu3  ;;  %v133_v62 = vpop.f32.mrf.mxu1 }
  0xa9   :  { %v3283_v2 = vadd.f32 %v133_v62, %v105_v48  ;;  %2250 = vpow2.f32 %v2204_v28  ;;  %v254_v51 = vadd.f32 %v253_v59, %v108_v5 }
  0xaa   :  { %4543 = vst [vmem:[#allocation11_spill] sm:$0xff] %v3281_v56 }
  0xaf   :  { %v145_v10 = vpop.f32.mrf.mxu2 }
  0xb0   :  { %v3285_v15 = vadd.f32 %v145_v10, %v105_v48  ;;  %v256_v19 = vpop.f32.mrf.mxu3  ;;  %v136_v22 = vpop.f32.mrf.mxu1 }
  0xb1   :  { %v3287_v27 = vadd.f32 %v256_v19, %v108_v5  ;;  %v3289_v31 = vadd.f32 %v136_v22, %v105_v48 }
  0xb2   :  { %4544 = vst [vmem:[#allocation12_spill] sm:$0xff] %v3285_v15 }
  0xb7   :  { %v148_v11 = vpop.f32.mrf.mxu2 }
  0xb8   :  { %v3291_v33 = vadd.f32 %v148_v11, %v105_v48  ;;  %v259_v34 = vpop.f32.mrf.mxu3  ;;  %v139_v36 = vpop.f32.mrf.mxu1 }
  0xb9   :  { %v3293_v14 = vadd.f32 %v259_v34, %v108_v5  ;;  %v3295_v37 = vadd.f32 %v139_v36, %v105_v48 }
  0xba   :  { %4545 = vst [vmem:[#allocation13_spill] sm:$0xff] %v3291_v33 }
  0xbb   :  { %4546 = vst [vmem:[#allocation14_spill] sm:$0xff] %v3295_v37 }
  0xbf   :  { %v151_v39 = vpop.f32.mrf.mxu2 }
  0xc0   :  { %v3297_v40 = vadd.f32 %v151_v39, %v105_v48  ;;  %v262_v42 = vpop.f32.mrf.mxu3  ;;  %v171_v43 = vpop.f32.mrf.mxu1 }
  0xc1   :  { %v3299_v45 = vadd.f32 %v262_v42, %v108_v5  ;;  %v2251_v48 = vpop.eup %2250  ;;  %v172_v36 = vadd.f32 %v171_v43, %v106_v46 }
  0xc2   :  { %4547 = vst [vmem:[#allocation15_spill] sm:$0xff] %v3297_v40  ;;  %v468_v34 = vadd.f32 1.0, %v2251_v48 }
  0xc3   :  { %4548 = vst [vmem:[#allocation16_spill] sm:$0xff] %v3299_v45 }
  0xc4   :  { %vm474_vm1 = vweird.f32 %v468_v34 }
  0xc7   :  { %v3301_v17 = vpop.f32.mrf.mxu2 }
  0xc8   :  { %v265_v49 = vpop.f32.mrf.mxu3  ;;  %v174_v20 = vpop.f32.mrf.mxu1  ;;  %v213_v43 = vadd.f32 %v3301_v17, %v107_v47 }
  0xc9   :  { %v3303_v50 = vadd.f32 %v265_v49, %v108_v5  ;;  %v3305_v52 = vadd.f32 %v174_v20, %v106_v46 }
  0xcb   :  { %4549 = vst [vmem:[#allocation17_spill] sm:$0xff] %v3303_v50 }
  0xcf   :  { %v215_v54 = vpop.f32.mrf.mxu2 }
  0xd0   :  { %v3307_v55 = vadd.f32 %v215_v54, %v107_v47  ;;  %v268_v57 = vpop.f32.mrf.mxu3  ;;  %v177_v58 = vpop.f32.mrf.mxu1 }
  0xd1   :  { %v3309_v60 = vadd.f32 %v268_v57, %v108_v5  ;;  %v3311_v23 = vadd.f32 %v177_v58, %v106_v46 }
  0xd3   :  { %4550 = vst [vmem:[#allocation18_spill] sm:$0xff] %v3309_v60 }
  0xd7   :  { %v218_v63 = vpop.f32.mrf.mxu2 }
  0xd8   :  { %v3313_v26 = vadd.f32 %v218_v63, %v107_v47  ;;  %v271_v0 = vpop.f32.mrf.mxu3  ;;  %v180_v1 = vpop.f32.mrf.mxu1 }
  0xd9   :  { %v3315_v61 = vadd.f32 %v271_v0, %v108_v5  ;;  %v3317_v3 = vadd.f32 %v180_v1, %v106_v46 }
  0xdb   :  { %4551 = vst [vmem:[#allocation19_spill] sm:$0xff] %v3315_v61  ;;  %v3765_v61 = vld [vmem:[%s4531_s4 + $0x8] sm:$0xff] }
  0xdc   :  { %4552 = vst [vmem:[#allocation20_spill] sm:$0xff] %v3317_v3 }
  0xdf   :  { %v221_v4 = vpop.f32.mrf.mxu2 }
  0xe0   :  { %v3319_v7 = vadd.f32 %v221_v4, %v107_v47  ;;  %v274_v9 = vpop.f32.mrf.mxu3  ;;  %v183_v29 = vpop.f32.mrf.mxu1 }
  0xe1   :  { %v3321_v12 = vadd.f32 %v274_v9, %v108_v5  ;;  %v3323_v6 = vadd.f32 %v183_v29, %v106_v46 }
  0xe2   :  { %4553 = vst [vmem:[#allocation21_spill] sm:$0xff] %v3319_v7 }
  0xe3   :  { %4554 = vst [vmem:[#allocation22_spill] sm:$0xff] %v3321_v12  ;;  %v3722_v12 = vld [vmem:[%s4531_s4 + $0x78] sm:$0xff] }
  0xe4   :  { %4555 = vst [vmem:[#allocation23_spill] sm:$0xff] %v3323_v6 }
  0xe7   :  { %v224_v32 = vpop.f32.mrf.mxu2 }
  0xe8   :  { %v3325_v13 = vadd.f32 %v224_v32, %v107_v47  ;;  %v186_v16 = vpop.f32.mrf.mxu1  ;;  %v458_v44 = vpop.f32.mrf.mxu3 }
  0xe9   :  { %v3327_v8 = vadd.f32 %v186_v16, %v106_v46  ;;  %v464_v10 = vadd.f32 %v458_v44, %v254_v51  ;;  %v478_v44 = vand.u32 2147483647, %v468_v34 }
  0xea   :  { %4556 = vst [vmem:[#allocation24_spill] sm:$0xff] %v3325_v13 }
  0xeb   :  { %4557 = vst [vmem:[#allocation25_spill] sm:$0xff] %v3327_v8  ;;  %v2206_v11 = vmul.f32 -1.442695, %v464_v10  ;;  %vm479_vm6 = vcmp.eq.f32.partialorder %v478_v44, 8.507059e+37 }
  0xed   :  { %2252 = vpow2.f32 %v2206_v11 }
  0xee   :  { %2254 = vrcp.f32 %v468_v34 }
  0xef   :  { %v227_v21 = vpop.f32.mrf.mxu2 }
  0xf0   :  { %v3329_v24 = vadd.f32 %v227_v21, %v107_v47  ;;  %v189_v25 = vpop.f32.mrf.mxu1 }
  0xf1   :  { %v3331_v30 = vadd.f32 %v189_v25, %v106_v46  ;;  %v480_v25 = vand.u32 2147483648, %v468_v34 }
  0xf2   :  { %4558 = vst [vmem:[#allocation26_spill] sm:$0xff] %v3329_v24 }
  0xf3   :  { %4559 = vst [vmem:[#allocation27_spill] sm:$0xff] %v3331_v30  ;;  %v2253_v59 = vpop.eup %2252  ;;  %v481_v48 = vor.u32 1.1754944e-38, %v480_v25  ;;  %v3407_v25 = vld [vmem:[%s4531_s4 + $0xc0] sm:$0xff]  ;;  %v3770_v30 = vld [vmem:[%s4531_s4 + $0x10] sm:$0xff] }
  0xf4   :  { %v2255_v5 = vpop.eup %2254  ;;  %v507_v57 = vadd.f32 1.0, %v2253_v59 }
  0xf5   :  { %v470_v63 = vmul.f32 %v2255_v5, %v468_v34  ;;  %vm475_vm0 = vweird.f32 %v2255_v5 }
  0xf6   :  { %vm476_vm3 = vmor %vm474_vm1, %vm475_vm0  ;;  %vm513_vm9 = vweird.f32 %v507_v57 }
  0xf7   :  { %v230_v62 = vpop.f32.mrf.mxu2  ;;  %v471_v1 = vsub.f32 1.0, %v470_v63 }
  0xf8   :  { %v3333_v19 = vadd.f32 %v230_v62, %v107_v47  ;;  %v192_v22 = vpop.f32.mrf.mxu1 }
  0xf9   :  { %v3335_v41 = vadd.f32 %v192_v22, %v106_v46  ;;  %v472_v29 = vmul.f32 %v2255_v5, %v471_v1 }
  0xfa   :  { %4560 = vst [vmem:[#allocation28_spill] sm:$0xff] %v3333_v19  ;;  %v3752_v19 = vld [vmem:[%s4531_s4 + $0x30] sm:$0xff] }
  0xfb   :  { %4561 = vst [vmem:[#allocation29_spill] sm:$0xff] %v3335_v41  ;;  %v473_v38 = vadd.f32 %v2255_v5, %v472_v29  ;;  %v3377_v29 = vld [vmem:[%s4531_s4 + $0x160] sm:$0xff]  ;;  %v3733_v41 = vld [vmem:[%s4531_s4 + $0x50] sm:$0xff] }
  0xfd   :  { %v477_v17 = vsel %vm476_vm3, %v2255_v5, %v473_v38  ;;  %v517_v5 = vand.u32 2147483647, %v507_v57 }
  0xff   :  { %vm518_vm11 = vcmp.eq.f32.partialorder %v517_v5, 8.507059e+37 }
 0x100   :  { %v233_v39 = vpop.f32.mrf.mxu2  ;;  %v418_v49 = vpop.f32.mrf.mxu1 }
 0x101   :  { %v3337_v42 = vadd.f32 %v233_v39, %v107_v47  ;;  %v462_v20 = vadd.f32 %v418_v49, %v172_v36  ;;  %v482_v39 = vsel %vm479_vm6, %v481_v48, %v477_v17  ;;  %v3439_v48 = vld [vmem:[%s4531_s4 + $0x20] sm:$0xff] }
 0x103   :  { %4562 = vst [vmem:[#allocation30_spill] sm:$0xff] %v3337_v42  ;;  %v2205_v54 = vmul.f32 -1.442695, %v462_v20  ;;  %v3717_v42 = vld [vmem:[%s4531_s4 + $0x70] sm:$0xff] }
 0x105   :  { %2256 = vpow2.f32 %v2205_v54 }
 0x106   :  { %2258 = vrcp.f32 %v507_v57 }
 0x108   :  { %v438_v4 = vpop.f32.mrf.mxu2 }
 0x109   :  { %v463_v46 = vadd.f32 %v438_v4, %v213_v43 }
 0x10b   :  { %v2257_v58 = vpop.eup %2256 }
 0x10c   :  { %v487_v0 = vadd.f32 1.0, %v2257_v58  ;;  %v2259_v9 = vpop.eup %2258  ;;  %v519_v58 = vand.u32 2147483648, %v507_v57 }
 0x10d   :  { %v509_v18 = vmul.f32 %v2259_v9, %v507_v57  ;;  %vm514_vm8 = vweird.f32 %v2259_v9  ;;  %v3359_v57 = vld [vmem:[%s4531_s4 + $0x1c0] sm:$0xff] }
 0x10e   :  { %2260 = vrcp.f32 %v487_v0  ;;  %v499_v21 = vand.u32 2147483648, %v487_v0  ;;  %v497_v51 = vand.u32 2147483647, %v487_v0  ;;  %vm493_vm4 = vweird.f32 %v487_v0  ;;  %vm515_vm10 = vmor %vm513_vm9, %vm514_vm8 }
 0x10f   :  { %2262 = vtanh.f32 %v463_v46  ;;  %v510_v62 = vsub.f32 1.0, %v509_v18  ;;  %v3365_v46 = vld [vmem:[%s4531_s4 + $0x1a0] sm:$0xff] }
 0x110   :  { %v500_v22 = vor.u32 1.1754944e-38, %v499_v21  ;;  %vm498_vm7 = vcmp.eq.f32.partialorder %v497_v51, 8.507059e+37  ;;  %v3395_v18 = vld [vmem:[%s4531_s4 + $0x100] sm:$0xff] }
 0x111   :  { %v511_v36 = vmul.f32 %v2259_v9, %v510_v62  ;;  %v3415_v51 = vld [vmem:[%s4531_s4 + $0xa0] sm:$0xff] }
 0x113   :  { %v512_v59 = vadd.f32 %v2259_v9, %v511_v36  ;;  %v3445_v36 = vld [vmem:[%s4531_s4] sm:$0xff] }
 0x114   :  { %v2261_v32 = vpop.eup %2260 }
 0x115   :  { %v489_v16 = vmul.f32 %v2261_v32, %v487_v0  ;;  %vm494_vm2 = vweird.f32 %v2261_v32  ;;  %v2263_v10 = vpop.eup %2262  ;;  %v516_v63 = vsel %vm515_vm10, %v2259_v9, %v512_v59  ;;  %v520_v0 = vor.u32 1.1754944e-38, %v519_v58  ;;  %v3371_v9 = vld [vmem:[%s4531_s4 + $0x180] sm:$0xff] }
 0x116   :  { %vm495_vm5 = vmor %vm493_vm4, %vm494_vm2  ;;  %v524_v54 = vmul.f32 %v2263_v10, %v482_v39 }
 0x117   :  { %v490_v35 = vsub.f32 1.0, %v489_v16  ;;  %v521_v4 = vsel %vm518_vm11, %v520_v0, %v516_v63  ;;  %v3389_v16 = vld [vmem:[%s4531_s4 + $0x120] sm:$0xff] }
 0x119   :  { %v491_v28 = vmul.f32 %v2261_v32, %v490_v35  ;;  %v3401_v35 = vld [vmem:[%s4531_s4 + $0xe0] sm:$0xff] }
 0x11b   :  { %v492_v47 = vadd.f32 %v2261_v32, %v491_v28 }
 0x11d   :  { %v496_v11 = vsel %vm495_vm5, %v2261_v32, %v492_v47  ;;  %v3383_v32 = vld [vmem:[%s4531_s4 + $0x140] sm:$0xff] }
 0x11e   :  { %v501_v49 = vsel %vm498_vm7, %v500_v22, %v496_v11  ;;  %v3421_v47 = vld [vmem:[%s4531_s4 + $0x80] sm:$0xff] }
 0x11f   :  { %v523_v20 = vmul.f32 %v501_v49, %v2724_v53  ;;  %v3353_v53 = vld [vmem:[%s4531_s4 + $0x1e0] sm:$0xff] }
 0x120   :  { %820 = vmatpush.msra.mxu0 %v3353_v53 }
 0x121   :  { %v3341_v34 = vadd.f32 %v524_v54, %v523_v20 }
 0x122   :  { %821 = vmatpush.msra.mxu0 %v3359_v57 }
 0x123   :  { %2264 = vtanh.f32 %v3341_v34 }
 0x124   :  { %822 = vmatpush.msra.mxu0 %v3365_v46 }
 0x126   :  { %823 = vmatpush.msra.mxu0 %v3371_v9 }
 0x128   :  { %824 = vmatpush.msra.mxu0 %v3377_v29 }
 0x129   :  { %v2265_v1 = vpop.eup %2264 }
 0x12a   :  { %v3344_v43 = vmul.f32 %v2265_v1, %v521_v4  ;;  %825 = vmatpush.msra.mxu0 %v3383_v32 }
 0x12c   :  { %4563 = vst [vmem:[#allocation31_spill] sm:$0xff] %v3344_v43  ;;  %616 = vmatmul.f32.vlgmr.msrb.gmra.mxu0 %v3344_v43  ;;  %636 = vmatmul.f32.vlgmr.msrb.gmra.mxu1 %v3344_v43 }
 0x12d   :  { %656 = vmatmul.f32.vlgmr.msrb.gmra.mxu2 %v3344_v43  ;;  %676 = vmatmul.f32.vlgmr.msra.gmra.mxu3 %v3344_v43  ;;  %v3747_v43 = vld [vmem:[%s4531_s4 + $0x28] sm:$0xff] }
 0x12e   :  { %826 = vmatpush.msra.mxu0 %v3389_v16 }
 0x130   :  { %827 = vmatpush.msra.mxu0 %v3395_v18 }
 0x132   :  { %828 = vmatpush.msra.mxu0 %v3401_v35 }
 0x134   :  { %829 = vmatpush.msra.mxu0 %v3407_v25 }
 0x136   :  { %830 = vmatpush.msra.mxu0 %v3415_v51 }
 0x138   :  { %831 = vmatpush.msra.mxu0 %v3421_v47 }
 0x1a9   :  { %v617_v38 = vpop.f32.mrf.mxu0  ;;  %v637_v21 = vpop.f32.mrf.mxu1 }
 0x1aa   :  { %v680_v28 = vadd.f32 %v617_v38, %v3283_v2  ;;  %v681_v44 = vadd.f32 %v637_v21, %v3305_v52  ;;  %v3426_v2 = vld [vmem:[%s4531_s4 + $0x60] sm:$0xff] }
 0x1ab   :  { %v3432_v52 = vld [vmem:[%s4531_s4 + $0x40] sm:$0xff]  ;;  %832 = vmatpush.msra.mxu0 %v3426_v2 }
 0x1ac   :  { %v2207_v62 = vmul.f32 -1.442695, %v680_v28  ;;  %v2208_v17 = vmul.f32 -1.442695, %v681_v44 }
 0x1ad   :  { %833 = vmatpush.msra.mxu0 %v3432_v52 }
 0x1ae   :  { %2266 = vpow2.f32 %v2207_v62 }
 0x1af   :  { %2268 = vpow2.f32 %v2208_v17  ;;  %834 = vmatpush.msra.mxu0 %v3439_v48 }
 0x1b0   :  { %v677_v10 = vpop.f32.mrf.mxu3  ;;  %v657_v54 = vpop.f32.mrf.mxu2 }
 0x1b1   :  { %v683_v22 = vadd.f32 %v677_v10, %v3287_v27  ;;  %835 = vmatpush.msra.mxu0 %v3445_v36  ;;  %v682_v63 = vadd.f32 %v657_v54, %v3307_v55 }
 0x1b3   :  { %v2209_v11 = vmul.f32 -1.442695, %v683_v22  ;;  %1040 = vmatpush.msrb.mxu0 %v3353_v53 }
 0x1b4   :  { %v2267_v39 = vpop.eup %2266 }
 0x1b5   :  { %v2269_v49 = vpop.eup %2268  ;;  %v687_v20 = vadd.f32 1.0, %v2267_v39  ;;  %2270 = vpow2.f32 %v2209_v11  ;;  %1041 = vmatpush.msrb.mxu0 %v3359_v57 }
 0x1b6   :  { %v706_v27 = vadd.f32 1.0, %v2269_v49 }
 0x1b7   :  { %2272 = vrcp.f32 %v687_v20  ;;  %1042 = vmatpush.msrb.mxu0 %v3365_v46  ;;  %v699_v28 = vand.u32 2147483648, %v687_v20  ;;  %v697_v17 = vand.u32 2147483647, %v687_v20  ;;  %vm693_vm14 = vweird.f32 %v687_v20 }
 0x1b8   :  { %2274 = vrcp.f32 %v706_v27  ;;  %v718_v44 = vand.u32 2147483648, %v706_v27  ;;  %v716_v55 = vand.u32 2147483647, %v706_v27  ;;  %vm712_vm15 = vweird.f32 %v706_v27 }
 0x1b9   :  { %1043 = vmatpush.msrb.mxu0 %v3371_v9  ;;  %v700_v39 = vor.u32 1.1754944e-38, %v699_v28  ;;  %vm698_vm2 = vcmp.eq.f32.partialorder %v697_v17, 8.507059e+37 }
 0x1ba   :  { %vm717_vm3 = vcmp.eq.f32.partialorder %v716_v55, 8.507059e+37 }
 0x1bb   :  { %v2271_v59 = vpop.eup %2270  ;;  %1044 = vmatpush.msrb.mxu0 %v3377_v29 }
 0x1bc   :  { %v726_v58 = vadd.f32 1.0, %v2271_v59  ;;  %v719_v59 = vor.u32 1.1754944e-38, %v718_v44 }
 0x1bd   :  { %v2273_v5 = vpop.eup %2272  ;;  %1045 = vmatpush.msrb.mxu0 %v3383_v32 }
 0x1be   :  { %v2275_v0 = vpop.eup %2274  ;;  %v689_v1 = vmul.f32 %v2273_v5, %v687_v20  ;;  %2276 = vrcp.f32 %v726_v58  ;;  %vm694_vm12 = vweird.f32 %v2273_v5  ;;  %vm732_vm5 = vweird.f32 %v726_v58 }
 0x1bf   :  { %v708_v4 = vmul.f32 %v2275_v0, %v706_v27  ;;  %2278 = vtanh.f32 %v682_v63  ;;  %vm713_vm13 = vweird.f32 %v2275_v0  ;;  %1046 = vmatpush.msrb.mxu0 %v3389_v16  ;;  %vm695_vm0 = vmor %vm693_vm14, %vm694_vm12  ;;  %v736_v44 = vand.u32 2147483647, %v726_v58 }
 0x1c0   :  { %v690_v38 = vsub.f32 1.0, %v689_v1  ;;  %vm714_vm1 = vmor %vm712_vm15, %vm713_vm13 }
 0x1c1   :  { %v709_v21 = vsub.f32 1.0, %v708_v4  ;;  %1047 = vmatpush.msrb.mxu0 %v3395_v18  ;;  %vm737_vm7 = vcmp.eq.f32.partialorder %v736_v44, 8.507059e+37 }
 0x1c2   :  { %v691_v62 = vmul.f32 %v2273_v5, %v690_v38 }
 0x1c3   :  { %v710_v10 = vmul.f32 %v2275_v0, %v709_v21  ;;  %1048 = vmatpush.msrb.mxu0 %v3401_v35 }
 0x1c4   :  { %v2277_v22 = vpop.eup %2276  ;;  %v692_v11 = vadd.f32 %v2273_v5, %v691_v62 }
 0x1c5   :  { %v711_v49 = vadd.f32 %v2275_v0, %v710_v10  ;;  %v728_v54 = vmul.f32 %v2277_v22, %v726_v58  ;;  %v2279_v1 = vpop.eup %2278  ;;  %1049 = vmatpush.msrb.mxu0 %v3407_v25  ;;  %vm733_vm4 = vweird.f32 %v2277_v22 }
 0x1c6   :  { %v696_v63 = vsel %vm695_vm0, %v2273_v5, %v692_v11  ;;  %vm734_vm6 = vmor %vm732_vm5, %vm733_vm4 }
 0x1c7   :  { %v701_v4 = vsel %vm698_vm2, %v700_v39, %v696_v63  ;;  %v715_v38 = vsel %vm714_vm1, %v2275_v0, %v711_v49  ;;  %v729_v21 = vsub.f32 1.0, %v728_v54  ;;  %1050 = vmatpush.msrb.mxu0 %v3415_v51  ;;  %v738_v0 = vand.u32 2147483648, %v726_v58  ;;  %v3590_v58 = vld [vmem:[%s4531_s4 + $0x150] sm:$0xff]  ;;  %v3603_v49 = vld [vmem:[%s4531_s4 + $0x128] sm:$0xff] }
 0x1c8   :  { %v720_v62 = vsel %vm717_vm3, %v719_v59, %v715_v38  ;;  %v743_v20 = vmul.f32 %v2279_v1, %v701_v4  ;;  %4565 = vst [vmem:[#allocation33_spill] sm:$0xff] %v3590_v58  ;;  %v3608_v54 = vld [vmem:[%s4531_s4 + $0x130] sm:$0xff]  ;;  %v3613_v59 = vld [vmem:[%s4531_s4 + $0x138] sm:$0xff]  ;;  %v3621_v63 = vld [vmem:[%s4531_s4 + $0x108] sm:$0xff] }
 0x1c9   :  { %v742_v27 = vmul.f32 %v720_v62, %v3341_v34  ;;  %v730_v28 = vmul.f32 %v2277_v22, %v729_v21  ;;  %1051 = vmatpush.msrb.mxu0 %v3421_v47  ;;  %v739_v17 = vor.u32 1.1754944e-38, %v738_v0  ;;  %4567 = vst [vmem:[#allocation35_spill] sm:$0xff] %v3603_v49  ;;  %v3626_v1 = vld [vmem:[%s4531_s4 + $0x110] sm:$0xff]  ;;  %v3631_v4 = vld [vmem:[%s4531_s4 + $0x118] sm:$0xff]  ;;  %v3639_v38 = vld [vmem:[%s4531_s4 + $0xe8] sm:$0xff] }
 0x1ca   :  { %4568 = vst [vmem:[#allocation36_spill] sm:$0xff] %v3613_v59  ;;  %v3644_v21 = vld [vmem:[%s4531_s4 + $0xf0] sm:$0xff]  ;;  %v3649_v62 = vld [vmem:[%s4531_s4 + $0xf8] sm:$0xff] }
 0x1cb   :  { %v3461_v10 = vadd.f32 %v743_v20, %v742_v27  ;;  %v731_v5 = vadd.f32 %v2277_v22, %v730_v28  ;;  %1052 = vmatpush.msrb.mxu0 %v3426_v2  ;;  %v3657_v28 = vld [vmem:[%s4531_s4 + $0xc8] sm:$0xff]  ;;  %v3667_v0 = vld [vmem:[%s4531_s4 + $0xd8] sm:$0xff] }
 0x1cd   :  { %2280 = vtanh.f32 %v3461_v10  ;;  %v735_v34 = vsel %vm734_vm6, %v2277_v22, %v731_v5  ;;  %1053 = vmatpush.msrb.mxu0 %v3432_v52  ;;  %v3595_v22 = vld [vmem:[%s4531_s4 + $0x158] sm:$0xff]  ;;  %v3662_v5 = vld [vmem:[%s4531_s4 + $0xd0] sm:$0xff] }
 0x1ce   :  { %v740_v11 = vsel %vm737_vm7, %v739_v17, %v735_v34  ;;  %4566 = vst [vmem:[#allocation34_spill] sm:$0xff] %v3595_v22  ;;  %v3677_v17 = vld [vmem:[%s4531_s4 + $0xa8] sm:$0xff] }
 0x1cf   :  { %1054 = vmatpush.msrb.mxu0 %v3439_v48 }
 0x1d1   :  { %1055 = vmatpush.msrb.mxu0 %v3445_v36 }
 0x1d3   :  { %v2281_v55 = vpop.eup %2280 }
 0x1d4   :  { %v3469_v39 = vmul.f32 %v2281_v55, %v740_v11  ;;  %v3682_v55 = vld [vmem:[%s4531_s4 + $0xb0] sm:$0xff] }
 0x1d6   :  { %4564 = vst [vmem:[#allocation32_spill] sm:$0xff] %v3469_v39  ;;  %836 = vmatmul.f32.vlgmr.msra.gmra.mxu0 %v3469_v39  ;;  %856 = vmatmul.f32.vlgmr.msra.gmra.mxu1 %v3469_v39 }
 0x1d7   :  { %876 = vmatmul.f32.vlgmr.msra.gmra.mxu2 %v3469_v39  ;;  %896 = vmatmul.f32.vlgmr.msrb.gmra.mxu3 %v3469_v39 }
 0x1d8   :  { %1260 = vmatpush.msra.mxu0 %v3353_v53  ;;  %v3495_v53 = vld [vmem:[%s4531_s4 + $0x1e8] sm:$0xff] }
 0x1d9   :  { %1060 = vmatpush.msrb.mxu1 %v3495_v53 }
 0x1da   :  { %1261 = vmatpush.msra.mxu0 %v3359_v57  ;;  %v3500_v57 = vld [vmem:[%s4531_s4 + $0x1f0] sm:$0xff] }
 0x1db   :  { %1080 = vmatpush.msrb.mxu2 %v3500_v57 }
 0x1dc   :  { %1262 = vmatpush.msra.mxu0 %v3365_v46  ;;  %v3505_v46 = vld [vmem:[%s4531_s4 + $0x1f8] sm:$0xff] }
 0x1dd   :  { %1100 = vmatpush.msra.mxu3 %v3505_v46 }
 0x1de   :  { %1263 = vmatpush.msra.mxu0 %v3371_v9  ;;  %v3513_v9 = vld [vmem:[%s4531_s4 + $0x1c8] sm:$0xff] }
 0x1df   :  { %1061 = vmatpush.msrb.mxu1 %v3513_v9 }
 0x1e0   :  { %1264 = vmatpush.msra.mxu0 %v3377_v29  ;;  %v3518_v29 = vld [vmem:[%s4531_s4 + $0x1d0] sm:$0xff] }
 0x1e1   :  { %1081 = vmatpush.msrb.mxu2 %v3518_v29 }
 0x1e2   :  { %1265 = vmatpush.msra.mxu0 %v3383_v32  ;;  %v3523_v32 = vld [vmem:[%s4531_s4 + $0x1d8] sm:$0xff] }
 0x1e3   :  { %1101 = vmatpush.msra.mxu3 %v3523_v32 }
 0x1e4   :  { %1266 = vmatpush.msra.mxu0 %v3389_v16  ;;  %v3531_v16 = vld [vmem:[%s4531_s4 + $0x1a8] sm:$0xff] }
 0x1e5   :  { %1062 = vmatpush.msrb.mxu1 %v3531_v16 }
 0x1e6   :  { %1267 = vmatpush.msra.mxu0 %v3395_v18  ;;  %v3536_v18 = vld [vmem:[%s4531_s4 + $0x1b0] sm:$0xff] }
 0x1e7   :  { %1082 = vmatpush.msrb.mxu2 %v3536_v18 }
 0x1e8   :  { %1268 = vmatpush.msra.mxu0 %v3401_v35  ;;  %v3541_v35 = vld [vmem:[%s4531_s4 + $0x1b8] sm:$0xff] }
 0x1e9   :  { %1102 = vmatpush.msra.mxu3 %v3541_v35 }
 0x1ea   :  { %1269 = vmatpush.msra.mxu0 %v3407_v25  ;;  %v3549_v25 = vld [vmem:[%s4531_s4 + $0x188] sm:$0xff] }
 0x1eb   :  { %1063 = vmatpush.msrb.mxu1 %v3549_v25 }
 0x1ec   :  { %1270 = vmatpush.msra.mxu0 %v3415_v51  ;;  %v3554_v51 = vld [vmem:[%s4531_s4 + $0x190] sm:$0xff] }
 0x1ed   :  { %1083 = vmatpush.msrb.mxu2 %v3554_v51 }
 0x1ee   :  { %1271 = vmatpush.msra.mxu0 %v3421_v47  ;;  %v3559_v47 = vld [vmem:[%s4531_s4 + $0x198] sm:$0xff] }
 0x1ef   :  { %1103 = vmatpush.msra.mxu3 %v3559_v47 }
 0x1f0   :  { %1272 = vmatpush.msra.mxu0 %v3426_v2  ;;  %v3567_v2 = vld [vmem:[%s4531_s4 + $0x168] sm:$0xff] }
 0x1f1   :  { %1064 = vmatpush.msrb.mxu1 %v3567_v2 }
 0x1f2   :  { %1273 = vmatpush.msra.mxu0 %v3432_v52  ;;  %v3572_v52 = vld [vmem:[%s4531_s4 + $0x170] sm:$0xff] }
 0x1f3   :  { %1084 = vmatpush.msrb.mxu2 %v3572_v52 }
 0x1f4   :  { %1274 = vmatpush.msra.mxu0 %v3439_v48  ;;  %v3577_v48 = vld [vmem:[%s4531_s4 + $0x178] sm:$0xff] }
 0x1f5   :  { %1104 = vmatpush.msra.mxu3 %v3577_v48  ;;  %1085 = vmatpush.msrb.mxu2 %v3590_v58 }
 0x1f6   :  { %1275 = vmatpush.msra.mxu0 %v3445_v36  ;;  %v3585_v36 = vld [vmem:[%s4531_s4 + $0x148] sm:$0xff] }
 0x1f7   :  { %1065 = vmatpush.msrb.mxu1 %v3585_v36  ;;  %1105 = vmatpush.msra.mxu3 %v3595_v22 }
 0x1f8   :  { %1086 = vmatpush.msrb.mxu2 %v3608_v54 }
 0x1f9   :  { %1066 = vmatpush.msrb.mxu1 %v3603_v49  ;;  %1106 = vmatpush.msra.mxu3 %v3613_v59 }
 0x1fa   :  { %1087 = vmatpush.msrb.mxu2 %v3626_v1 }
 0x1fb   :  { %1067 = vmatpush.msrb.mxu1 %v3621_v63  ;;  %1107 = vmatpush.msra.mxu3 %v3631_v4 }
 0x1fc   :  { %1088 = vmatpush.msrb.mxu2 %v3644_v21 }
 0x1fd   :  { %1068 = vmatpush.msrb.mxu1 %v3639_v38  ;;  %1108 = vmatpush.msra.mxu3 %v3649_v62 }
 0x1fe   :  { %1089 = vmatpush.msrb.mxu2 %v3662_v5 }
 0x1ff   :  { %1069 = vmatpush.msrb.mxu1 %v3657_v28  ;;  %1109 = vmatpush.msra.mxu3 %v3667_v0 }
 0x200   :  { %1090 = vmatpush.msrb.mxu2 %v3682_v55 }
 0x201   :  { %1070 = vmatpush.msrb.mxu1 %v3677_v17 }
 0x253   :  { %v837_v20 = vpop.f32.mrf.mxu0  ;;  %v857_v27 = vpop.f32.mrf.mxu1 }
 0x254   :  { %v900_v44 = vadd.f32 %v837_v20, %v3289_v31  ;;  %v901_v34 = vadd.f32 %v857_v27, %v3311_v23  ;;  %v3687_v31 = vld [vmem:[%s4531_s4 + $0xb8] sm:$0xff]  ;;  %v3695_v20 = vld [vmem:[%s4531_s4 + $0x88] sm:$0xff]  ;;  %v3700_v27 = vld [vmem:[%s4531_s4 + $0x90] sm:$0xff] }
 0x255   :  { %1110 = vmatpush.msra.mxu3 %v3687_v31  ;;  %1071 = vmatpush.msrb.mxu1 %v3695_v20 }
 0x256   :  { %v2210_v23 = vmul.f32 -1.442695, %v900_v44  ;;  %v2211_v11 = vmul.f32 -1.442695, %v901_v34  ;;  %v3705_v44 = vld [vmem:[%s4531_s4 + $0x98] sm:$0xff]  ;;  %1091 = vmatpush.msrb.mxu2 %v3700_v27  ;;  %v3712_v34 = vld [vmem:[%s4531_s4 + $0x68] sm:$0xff] }
 0x257   :  { %1111 = vmatpush.msra.mxu3 %v3705_v44  ;;  %1072 = vmatpush.msrb.mxu1 %v3712_v34 }
 0x258   :  { %2282 = vpow2.f32 %v2210_v23  ;;  %v3728_v23 = vld [vmem:[%s4531_s4 + $0x48] sm:$0xff]  ;;  %1092 = vmatpush.msrb.mxu2 %v3717_v42 }
 0x259   :  { %2284 = vpow2.f32 %v2211_v11  ;;  %v3740_v11 = vld [vmem:[%s4531_s4 + $0x58] sm:$0xff]  ;;  %1112 = vmatpush.msra.mxu3 %v3722_v12  ;;  %1073 = vmatpush.msrb.mxu1 %v3728_v23 }
 0x25a   :  { %v897_v40 = vpop.f32.mrf.mxu3  ;;  %1093 = vmatpush.msrb.mxu2 %v3733_v41 }
 0x25b   :  { %v903_v39 = vadd.f32 %v897_v40, %v3293_v14  ;;  %v3759_v14 = vld [vmem:[%s4531_s4 + $0x38] sm:$0xff]  ;;  %1113 = vmatpush.msra.mxu3 %v3740_v11  ;;  %1074 = vmatpush.msrb.mxu1 %v3747_v43 }
 0x25c   :  { %1094 = vmatpush.msrb.mxu2 %v3752_v19 }
 0x25d   :  { %v2212_v40 = vmul.f32 -1.442695, %v903_v39  ;;  %v3777_v39 = vld [vmem:[%s4531_s4 + $0x18] sm:$0xff]  ;;  %1114 = vmatpush.msra.mxu3 %v3759_v14  ;;  %1075 = vmatpush.msrb.mxu1 %v3765_v61 }
 0x25e   :  { %v2283_v33 = vpop.eup %2282  ;;  %1095 = vmatpush.msrb.mxu2 %v3770_v30 }
 0x25f   :  { %v2285_v24 = vpop.eup %2284  ;;  %v3779_v60 = vadd.f32 1.0, %v2283_v33  ;;  %2286 = vpow2.f32 %v2212_v40  ;;  %1115 = vmatpush.msra.mxu3 %v3777_v39  ;;  %1280 = vmatpush.msra.mxu1 %v3495_v53  ;;  %v877_v33 = vpop.f32.mrf.mxu2 }
 0x260   :  { %v3782_v8 = vadd.f32 1.0, %v2285_v24  ;;  %1300 = vmatpush.msra.mxu2 %v3500_v57  ;;  %v902_v13 = vadd.f32 %v877_v33, %v3313_v26 }
 0x261   :  { %2288 = vrcp.f32 %v3779_v60  ;;  %1320 = vmatpush.msrb.mxu3 %v3505_v46  ;;  %1281 = vmatpush.msra.mxu1 %v3513_v9  ;;  %v919_v33 = vand.u32 2147483648, %v3779_v60  ;;  %v917_v3 = vand.u32 2147483647, %v3779_v60  ;;  %vm913_vm10 = vweird.f32 %v3779_v60 }
 0x262   :  { %2290 = vrcp.f32 %v3782_v8  ;;  %1301 = vmatpush.msra.mxu2 %v3518_v29  ;;  %v938_v7 = vand.u32 2147483648, %v3782_v8  ;;  %v936_v37 = vand.u32 2147483647, %v3782_v8  ;;  %vm932_vm11 = vweird.f32 %v3782_v8 }
 0x263   :  { %1321 = vmatpush.msrb.mxu3 %v3523_v32  ;;  %1282 = vmatpush.msra.mxu1 %v3531_v16  ;;  %vm918_vm14 = vcmp.eq.f32.partialorder %v917_v3, 8.507059e+37 }
 0x264   :  { %1302 = vmatpush.msra.mxu2 %v3536_v18  ;;  %vm937_vm15 = vcmp.eq.f32.partialorder %v936_v37, 8.507059e+37 }
 0x265   :  { %v2287_v24 = vpop.eup %2286  ;;  %1322 = vmatpush.msrb.mxu3 %v3541_v35  ;;  %1283 = vmatpush.msra.mxu1 %v3549_v25 }
 0x266   :  { %v3796_v40 = vadd.f32 1.0, %v2287_v24  ;;  %1303 = vmatpush.msra.mxu2 %v3554_v51 }
 0x267   :  { %v2289_v15 = vpop.eup %2288  ;;  %1323 = vmatpush.msrb.mxu3 %v3559_v47  ;;  %1284 = vmatpush.msra.mxu1 %v3567_v2 }
 0x268   :  { %v2291_v50 = vpop.eup %2290  ;;  %v909_v6 = vmul.f32 %v2289_v15, %v3779_v60  ;;  %2292 = vrcp.f32 %v3796_v40  ;;  %1304 = vmatpush.msra.mxu2 %v3572_v52  ;;  %vm914_vm8 = vweird.f32 %v2289_v15  ;;  %vm952_vm1 = vweird.f32 %v3796_v40 }
 0x269   :  { %v928_v24 = vmul.f32 %v2291_v50, %v3782_v8  ;;  %1324 = vmatpush.msrb.mxu3 %v3577_v48  ;;  %2294 = vtanh.f32 %v902_v13  ;;  %1285 = vmatpush.msra.mxu1 %v3585_v36  ;;  %vm933_vm9 = vweird.f32 %v2291_v50  ;;  %vm915_vm12 = vmor %vm913_vm10, %vm914_vm8 }
 0x26a   :  { %v910_v56 = vsub.f32 1.0, %v909_v6  ;;  %1305 = vmatpush.msra.mxu2 %v3590_v58  ;;  %vm934_vm13 = vmor %vm932_vm11, %vm933_vm9 }
 0x26b   :  { %v929_v26 = vsub.f32 1.0, %v928_v24  ;;  %1325 = vmatpush.msrb.mxu3 %v3595_v22  ;;  %1286 = vmatpush.msra.mxu1 %v3603_v49  ;;  %v939_v22 = vor.u32 1.1754944e-38, %v938_v7  ;;  %v958_v7 = vand.u32 2147483648, %v3796_v40 }
 0x26c   :  { %v911_v45 = vmul.f32 %v2289_v15, %v910_v56  ;;  %1306 = vmatpush.msra.mxu2 %v3608_v54  ;;  %v920_v56 = vor.u32 1.1754944e-38, %v919_v33 }
 0x26d   :  { %v930_v6 = vmul.f32 %v2291_v50, %v929_v26  ;;  %1326 = vmatpush.msrb.mxu3 %v3613_v59  ;;  %1287 = vmatpush.msra.mxu1 %v3621_v63 }
 0x26e   :  { %v2293_v24 = vpop.eup %2292  ;;  %v912_v13 = vadd.f32 %v2289_v15, %v911_v45  ;;  %1307 = vmatpush.msra.mxu2 %v3626_v1 }
 0x26f   :  { %v931_v58 = vadd.f32 %v2291_v50, %v930_v6  ;;  %v948_v26 = vmul.f32 %v2293_v24, %v3796_v40  ;;  %1327 = vmatpush.msrb.mxu3 %v3631_v4  ;;  %v2295_v45 = vpop.eup %2294  ;;  %1288 = vmatpush.msra.mxu1 %v3639_v38  ;;  %vm953_vm0 = vweird.f32 %v2293_v24 }
 0x270   :  { %v916_v49 = vsel %vm915_vm12, %v2289_v15, %v912_v13  ;;  %1308 = vmatpush.msra.mxu2 %v3644_v21  ;;  %vm954_vm2 = vmor %vm952_vm1, %vm953_vm0 }
 0x271   :  { %v921_v60 = vsel %vm918_vm14, %v920_v56, %v916_v49  ;;  %v935_v59 = vsel %vm934_vm13, %v2291_v50, %v931_v58  ;;  %v949_v8 = vsub.f32 1.0, %v948_v26  ;;  %1328 = vmatpush.msrb.mxu3 %v3649_v62  ;;  %1289 = vmatpush.msra.mxu1 %v3657_v28 }
 0x272   :  { %v940_v33 = vsel %vm937_vm15, %v939_v22, %v935_v59  ;;  %v963_v6 = vmul.f32 %v2295_v45, %v921_v60  ;;  %1309 = vmatpush.msra.mxu2 %v3662_v5  ;;  %v959_v22 = vor.u32 1.1754944e-38, %v958_v7 }
 0x273   :  { %v962_v15 = vmul.f32 %v940_v33, %v3461_v10  ;;  %v950_v3 = vmul.f32 %v2293_v24, %v949_v8  ;;  %1329 = vmatpush.msrb.mxu3 %v3667_v0  ;;  %1290 = vmatpush.msra.mxu1 %v3677_v17  ;;  %v956_v10 = vand.u32 2147483647, %v3796_v40 }
 0x274   :  { %1310 = vmatpush.msra.mxu2 %v3682_v55 }
 0x275   :  { %v3833_v50 = vadd.f32 %v963_v6, %v962_v15  ;;  %v951_v37 = vadd.f32 %v2293_v24, %v950_v3  ;;  %1330 = vmatpush.msrb.mxu3 %v3687_v31  ;;  %1291 = vmatpush.msra.mxu1 %v3695_v20  ;;  %vm957_vm3 = vcmp.eq.f32.partialorder %v956_v10, 8.507059e+37 }
 0x276   :  { %1311 = vmatpush.msra.mxu2 %v3700_v27 }
 0x277   :  { %2296 = vtanh.f32 %v3833_v50  ;;  %1331 = vmatpush.msrb.mxu3 %v3705_v44  ;;  %1292 = vmatpush.msra.mxu1 %v3712_v34  ;;  %v955_v58 = vsel %vm954_vm2, %v2293_v24, %v951_v37 }
 0x278   :  { %1312 = vmatpush.msra.mxu2 %v3717_v42  ;;  %v960_v59 = vsel %vm957_vm3, %v959_v22, %v955_v58 }
 0x279   :  { %1332 = vmatpush.msrb.mxu3 %v3722_v12  ;;  %1293 = vmatpush.msra.mxu1 %v3728_v23 }
 0x27a   :  { %1313 = vmatpush.msra.mxu2 %v3733_v41 }
 0x27b   :  { %1333 = vmatpush.msrb.mxu3 %v3740_v11  ;;  %1294 = vmatpush.msra.mxu1 %v3747_v43 }
 0x27c   :  { %1314 = vmatpush.msra.mxu2 %v3752_v19 }
 0x27d   :  { %v2297_v49 = vpop.eup %2296  ;;  %1334 = vmatpush.msrb.mxu3 %v3759_v14  ;;  %1295 = vmatpush.msra.mxu1 %v3765_v61 }
 0x27e   :  { %v3852_v40 = vmul.f32 %v2297_v49, %v960_v59  ;;  %1315 = vmatpush.msra.mxu2 %v3770_v30  ;;  %v3934_v59 = vld [vmem:[%s4531_s4 + $0x1c0] sm:$0xff] }
 0x27f   :  { %1335 = vmatpush.msrb.mxu3 %v3777_v39 }
 0x280   :  { %1056 = vmatmul.f32.vlgmr.msrb.gmra.mxu0 %v3852_v40  ;;  %1076 = vmatmul.f32.vlgmr.msrb.gmra.mxu1 %v3852_v40 }
 0x281   :  { %1096 = vmatmul.f32.vlgmr.msrb.gmra.mxu2 %v3852_v40  ;;  %1116 = vmatmul.f32.vlgmr.msra.gmra.mxu3 %v3852_v40 }
 0x282   :  { %1500 = vmatpush.msrb.mxu1 %v3495_v53  ;;  %1520 = vmatpush.msrb.mxu2 %v3500_v57  ;;  %v4569_v53 = vld [vmem:[#allocation33_spill] sm:$0xff]  ;;  %v4570_v57 = vld [vmem:[#allocation34_spill] sm:$0xff] }
 0x283   :  { %1540 = vmatpush.msra.mxu3 %v3505_v46  ;;  %v4571_v46 = vld [vmem:[#allocation35_spill] sm:$0xff] }
 0x284   :  { %1501 = vmatpush.msrb.mxu1 %v3513_v9  ;;  %1521 = vmatpush.msrb.mxu2 %v3518_v29  ;;  %v4572_v9 = vld [vmem:[#allocation36_spill] sm:$0xff]  ;;  %v4573_v29 = vld [vmem:[#allocation14_spill] sm:$0xff] }
 0x285   :  { %1541 = vmatpush.msra.mxu3 %v3523_v32 }
 0x286   :  { %1502 = vmatpush.msrb.mxu1 %v3531_v16  ;;  %1522 = vmatpush.msrb.mxu2 %v3536_v18  ;;  %v4574_v16 = vld [vmem:[#allocation20_spill] sm:$0xff] }
 0x287   :  { %1542 = vmatpush.msra.mxu3 %v3541_v35 }
 0x288   :  { %1503 = vmatpush.msrb.mxu1 %v3549_v25  ;;  %1523 = vmatpush.msrb.mxu2 %v3554_v51 }
 0x289   :  { %1543 = vmatpush.msra.mxu3 %v3559_v47 }
 0x28a   :  { %1504 = vmatpush.msrb.mxu1 %v3567_v2  ;;  %1524 = vmatpush.msrb.mxu2 %v3572_v52 }
 0x28b   :  { %1544 = vmatpush.msra.mxu3 %v3577_v48 }
 0x28c   :  { %1505 = vmatpush.msrb.mxu1 %v3585_v36  ;;  %1525 = vmatpush.msrb.mxu2 %v4569_v53  ;;  %v3940_v53 = vld [vmem:[%s4531_s4 + $0x1a0] sm:$0xff] }
 0x28d   :  { %1545 = vmatpush.msra.mxu3 %v4570_v57  ;;  %v3946_v57 = vld [vmem:[%s4531_s4 + $0x180] sm:$0xff] }
 0x28e   :  { %1506 = vmatpush.msrb.mxu1 %v4571_v46  ;;  %1526 = vmatpush.msrb.mxu2 %v3608_v54  ;;  %v3952_v46 = vld [vmem:[%s4531_s4 + $0x160] sm:$0xff] }
 0x28f   :  { %1546 = vmatpush.msra.mxu3 %v4572_v9  ;;  %v3958_v9 = vld [vmem:[%s4531_s4 + $0x140] sm:$0xff] }
 0x290   :  { %1507 = vmatpush.msrb.mxu1 %v3621_v63  ;;  %1527 = vmatpush.msrb.mxu2 %v3626_v1  ;;  %v4576_v63 = vld [vmem:[#allocation21_spill] sm:$0xff] }
 0x291   :  { %1547 = vmatpush.msra.mxu3 %v3631_v4 }
 0x292   :  { %1508 = vmatpush.msrb.mxu1 %v3639_v38  ;;  %1528 = vmatpush.msrb.mxu2 %v3644_v21 }
 0x293   :  { %1548 = vmatpush.msra.mxu3 %v3649_v62 }
 0x294   :  { %1509 = vmatpush.msrb.mxu1 %v3657_v28  ;;  %1529 = vmatpush.msrb.mxu2 %v3662_v5 }
 0x295   :  { %1549 = vmatpush.msra.mxu3 %v3667_v0 }
 0x296   :  { %1510 = vmatpush.msrb.mxu1 %v3677_v17  ;;  %1530 = vmatpush.msrb.mxu2 %v3682_v55 }
 0x297   :  { %1550 = vmatpush.msra.mxu3 %v3687_v31 }
 0x298   :  { %1511 = vmatpush.msrb.mxu1 %v3695_v20  ;;  %1531 = vmatpush.msrb.mxu2 %v3700_v27 }
 0x299   :  { %1551 = vmatpush.msra.mxu3 %v3705_v44 }
 0x29a   :  { %1512 = vmatpush.msrb.mxu1 %v3712_v34  ;;  %1532 = vmatpush.msrb.mxu2 %v3717_v42 }
 0x29b   :  { %1552 = vmatpush.msra.mxu3 %v3722_v12 }
 0x29c   :  { %1513 = vmatpush.msrb.mxu1 %v3728_v23  ;;  %1533 = vmatpush.msrb.mxu2 %v3733_v41 }
 0x29d   :  { %1553 = vmatpush.msra.mxu3 %v3740_v11 }
 0x29e   :  { %1514 = vmatpush.msrb.mxu1 %v3747_v43  ;;  %1534 = vmatpush.msrb.mxu2 %v3752_v19  ;;  %v4575_v19 = vld [vmem:[#allocation16_spill] sm:$0xff] }
 0x29f   :  { %1554 = vmatpush.msra.mxu3 %v3759_v14 }
 0x2a0   :  { %1515 = vmatpush.msrb.mxu1 %v3765_v61  ;;  %1535 = vmatpush.msrb.mxu2 %v3770_v30 }
 0x2a1   :  { %1555 = vmatpush.msra.mxu3 %v3777_v39 }
 0x2fd   :  { %v1057_v42 = vpop.f32.mrf.mxu0  ;;  %v1077_v12 = vpop.f32.mrf.mxu1 }
 0x2fe   :  { %v1120_v32 = vadd.f32 %v1057_v42, %v4573_v29  ;;  %v1121_v41 = vadd.f32 %v1077_v12, %v4574_v16  ;;  %v3964_v42 = vld [vmem:[%s4531_s4 + $0x120] sm:$0xff] }
 0x2ff   :  { %v3970_v12 = vld [vmem:[%s4531_s4 + $0x100] sm:$0xff] }
 0x300   :  { %v2213_v18 = vmul.f32 -1.442695, %v1120_v32  ;;  %v2214_v35 = vmul.f32 -1.442695, %v1121_v41  ;;  %v3976_v29 = vld [vmem:[%s4531_s4 + $0xe0] sm:$0xff] }
 0x301   :  { %v3982_v41 = vld [vmem:[%s4531_s4 + $0xc0] sm:$0xff] }
 0x302   :  { %2298 = vpow2.f32 %v2213_v18  ;;  %v4577_v18 = vld [vmem:[#allocation11_spill] sm:$0xff] }
 0x303   :  { %2300 = vpow2.f32 %v2214_v35 }
 0x304   :  { %v1117_v43 = vpop.f32.mrf.mxu3  ;;  %v1097_v52 = vpop.f32.mrf.mxu2 }
 0x305   :  { %v1123_v25 = vadd.f32 %v1117_v43, %v4575_v19  ;;  %v1122_v1 = vadd.f32 %v1097_v52, %v4576_v63  ;;  %v4578_v43 = vld [vmem:[#allocation23_spill] sm:$0xff] }
 0x307   :  { %v2215_v51 = vmul.f32 -1.442695, %v1123_v25  ;;  %v3990_v25 = vld [vmem:[%s4531_s4 + $0xa0] sm:$0xff] }
 0x308   :  { %v2299_v47 = vpop.eup %2298 }
 0x309   :  { %v2301_v61 = vpop.eup %2300  ;;  %v1127_v2 = vadd.f32 1.0, %v2299_v47  ;;  %2302 = vpow2.f32 %v2215_v51 }
 0x30a   :  { %v1146_v30 = vadd.f32 1.0, %v2301_v61  ;;  %v3996_v61 = vld [vmem:[%s4531_s4 + $0x80] sm:$0xff] }
 0x30b   :  { %2304 = vrcp.f32 %v1127_v2  ;;  %v1139_v5 = vand.u32 2147483648, %v1127_v2  ;;  %v1137_v55 = vand.u32 2147483647, %v1127_v2  ;;  %vm1133_vm6 = vweird.f32 %v1127_v2 }
 0x30c   :  { %2306 = vrcp.f32 %v1146_v30  ;;  %v1158_v0 = vand.u32 2147483648, %v1146_v30  ;;  %v1156_v20 = vand.u32 2147483647, %v1146_v30  ;;  %vm1152_vm7 = vweird.f32 %v1146_v30 }
 0x30d   :  { %v1140_v34 = vor.u32 1.1754944e-38, %v1139_v5  ;;  %vm1138_vm10 = vcmp.eq.f32.partialorder %v1137_v55, 8.507059e+37  ;;  %v4580_v55 = vld [vmem:[#allocation24_spill] sm:$0xff] }
 0x30e   :  { %v1159_v14 = vor.u32 1.1754944e-38, %v1158_v0  ;;  %vm1157_vm11 = vcmp.eq.f32.partialorder %v1156_v20, 8.507059e+37 }
 0x30f   :  { %v2303_v48 = vpop.eup %2302 }
 0x310   :  { %v1166_v36 = vadd.f32 1.0, %v2303_v48  ;;  %v4579_v48 = vld [vmem:[#allocation17_spill] sm:$0xff] }
 0x311   :  { %v2305_v54 = vpop.eup %2304 }
 0x312   :  { %v2307_v4 = vpop.eup %2306  ;;  %v1129_v38 = vmul.f32 %v2305_v54, %v1127_v2  ;;  %2308 = vrcp.f32 %v1166_v36  ;;  %vm1134_vm4 = vweird.f32 %v2305_v54  ;;  %v1178_v3 = vand.u32 2147483648, %v1166_v36  ;;  %v4001_v2 = vld [vmem:[%s4531_s4 + $0x60] sm:$0xff] }
 0x313   :  { %v1148_v21 = vmul.f32 %v2307_v4, %v1146_v30  ;;  %2310 = vtanh.f32 %v1122_v1  ;;  %vm1153_vm5 = vweird.f32 %v2307_v4  ;;  %vm1135_vm8 = vmor %vm1133_vm6, %vm1134_vm4  ;;  %vm1172_vm13 = vweird.f32 %v1166_v36  ;;  %v4007_v30 = vld [vmem:[%s4531_s4 + $0x40] sm:$0xff] }
 0x314   :  { %v1130_v62 = vsub.f32 1.0, %v1129_v38  ;;  %vm1154_vm9 = vmor %vm1152_vm7, %vm1153_vm5  ;;  %v1176_v37 = vand.u32 2147483647, %v1166_v36  ;;  %v1179_v10 = vor.u32 1.1754944e-38, %v1178_v3  ;;  %v4020_v1 = vld [vmem:[%s4531_s4] sm:$0xff] }
 0x315   :  { %v1149_v28 = vsub.f32 1.0, %v1148_v21 }
 0x316   :  { %v1131_v17 = vmul.f32 %v2305_v54, %v1130_v62  ;;  %vm1177_vm15 = vcmp.eq.f32.partialorder %v1176_v37, 8.507059e+37 }
 0x317   :  { %v1150_v31 = vmul.f32 %v2307_v4, %v1149_v28 }
 0x318   :  { %v2309_v27 = vpop.eup %2308  ;;  %v1132_v44 = vadd.f32 %v2305_v54, %v1131_v17 }
 0x319   :  { %v1151_v23 = vadd.f32 %v2307_v4, %v1150_v31  ;;  %v1168_v11 = vmul.f32 %v2309_v27, %v1166_v36  ;;  %v2311_v24 = vpop.eup %2310  ;;  %vm1173_vm12 = vweird.f32 %v2309_v27 }
 0x31a   :  { %v1136_v39 = vsel %vm1135_vm8, %v2305_v54, %v1132_v44  ;;  %vm1174_vm14 = vmor %vm1172_vm13, %vm1173_vm12  ;;  %v4014_v54 = vld [vmem:[%s4531_s4 + $0x20] sm:$0xff] }
 0x31b   :  { %v1141_v13 = vsel %vm1138_vm10, %v1140_v34, %v1136_v39  ;;  %v1155_v56 = vsel %vm1154_vm9, %v2307_v4, %v1151_v23  ;;  %v1169_v26 = vsub.f32 1.0, %v1168_v11 }
 0x31c   :  { %v1160_v45 = vsel %vm1157_vm11, %v1159_v14, %v1155_v56  ;;  %v1183_v60 = vmul.f32 %v2311_v24, %v1141_v13 }
 0x31d   :  { %v1182_v8 = vmul.f32 %v1160_v45, %v3833_v50  ;;  %v1170_v33 = vmul.f32 %v2309_v27, %v1169_v26  ;;  %v3928_v50 = vld [vmem:[%s4531_s4 + $0x1e0] sm:$0xff] }
 0x31e   :  { %1480 = vmatpush.msrb.mxu0 %v3928_v50 }
 0x31f   :  { %v3916_v6 = vadd.f32 %v1183_v60, %v1182_v8  ;;  %v1171_v15 = vadd.f32 %v2309_v27, %v1170_v33 }
 0x320   :  { %1481 = vmatpush.msrb.mxu0 %v3934_v59 }
 0x321   :  { %2312 = vtanh.f32 %v3916_v6  ;;  %v1175_v7 = vsel %vm1174_vm14, %v2309_v27, %v1171_v15 }
 0x322   :  { %v1180_v22 = vsel %vm1177_vm15, %v1179_v10, %v1175_v7  ;;  %1482 = vmatpush.msrb.mxu0 %v3940_v53 }
 0x324   :  { %1483 = vmatpush.msrb.mxu0 %v3946_v57 }
 0x326   :  { %1484 = vmatpush.msrb.mxu0 %v3952_v46 }
 0x327   :  { %v2313_v58 = vpop.eup %2312 }
 0x328   :  { %v3919_v49 = vmul.f32 %v2313_v58, %v1180_v22  ;;  %1485 = vmatpush.msrb.mxu0 %v3958_v9 }
 0x32a   :  { %1276 = vmatmul.f32.vlgmr.msra.gmra.mxu0 %v3919_v49  ;;  %1296 = vmatmul.f32.vlgmr.msra.gmra.mxu1 %v3919_v49 }
 0x32b   :  { %1316 = vmatmul.f32.vlgmr.msra.gmra.mxu2 %v3919_v49  ;;  %1336 = vmatmul.f32.vlgmr.msrb.gmra.mxu3 %v3919_v49 }
 0x32c   :  { %1486 = vmatpush.msrb.mxu0 %v3964_v42 }
 0x32e   :  { %1487 = vmatpush.msrb.mxu0 %v3970_v12 }
 0x330   :  { %1488 = vmatpush.msrb.mxu0 %v3976_v29 }
 0x332   :  { %1489 = vmatpush.msrb.mxu0 %v3982_v41 }
 0x334   :  { %1490 = vmatpush.msrb.mxu0 %v3990_v25 }
 0x336   :  { %1491 = vmatpush.msrb.mxu0 %v3996_v61 }
 0x338   :  { %1492 = vmatpush.msrb.mxu0 %v4001_v2 }
 0x33a   :  { %1493 = vmatpush.msrb.mxu0 %v4007_v30 }
 0x33c   :  { %1494 = vmatpush.msrb.mxu0 %v4014_v54 }
 0x33e   :  { %1495 = vmatpush.msrb.mxu0 %v4020_v1 }
 0x340   :  { %1700 = vmatpush.msra.mxu0 %v3928_v50 }
 0x342   :  { %1701 = vmatpush.msra.mxu0 %v3934_v59 }
 0x344   :  { %1702 = vmatpush.msra.mxu0 %v3940_v53 }
 0x346   :  { %1703 = vmatpush.msra.mxu0 %v3946_v57 }
 0x348   :  { %1704 = vmatpush.msra.mxu0 %v3952_v46 }
 0x34a   :  { %1705 = vmatpush.msra.mxu0 %v3958_v9 }
 0x34c   :  { %1706 = vmatpush.msra.mxu0 %v3964_v42 }
 0x34e   :  { %1707 = vmatpush.msra.mxu0 %v3970_v12 }
 0x350   :  { %1708 = vmatpush.msra.mxu0 %v3976_v29 }
 0x352   :  { %1709 = vmatpush.msra.mxu0 %v3982_v41 }
 0x354   :  { %1710 = vmatpush.msra.mxu0 %v3990_v25 }
 0x356   :  { %1711 = vmatpush.msra.mxu0 %v3996_v61 }
 0x358   :  { %1712 = vmatpush.msra.mxu0 %v4001_v2 }
 0x35a   :  { %1713 = vmatpush.msra.mxu0 %v4007_v30 }
 0x35c   :  { %1714 = vmatpush.msra.mxu0 %v4014_v54 }
 0x35e   :  { %1715 = vmatpush.msra.mxu0 %v4020_v1 }
 0x3a7   :  { %v1277_v32 = vpop.f32.mrf.mxu0  ;;  %v1297_v16 = vpop.f32.mrf.mxu1 }
 0x3a8   :  { %v1340_v35 = vadd.f32 %v1277_v32, %v4577_v18  ;;  %v1341_v19 = vadd.f32 %v1297_v16, %v4578_v43 }
 0x3aa   :  { %v2216_v51 = vmul.f32 -1.442695, %v1340_v35  ;;  %v2217_v47 = vmul.f32 -1.442695, %v1341_v19 }
 0x3ac   :  { %2314 = vpow2.f32 %v2216_v51 }
 0x3ad   :  { %2316 = vpow2.f32 %v2217_v47 }
 0x3ae   :  { %v1337_v52 = vpop.f32.mrf.mxu3  ;;  %v1317_v28 = vpop.f32.mrf.mxu2 }
 0x3af   :  { %v1343_v36 = vadd.f32 %v1337_v52, %v4579_v48  ;;  %v1342_v31 = vadd.f32 %v1317_v28, %v4580_v55  ;;  %v4196_v28 = vld [vmem:[%s4531_s4 + $0x108] sm:$0xff]  ;;  %v4219_v55 = vld [vmem:[%s4531_s4 + $0xf0] sm:$0xff] }
 0x3b1   :  { %v2218_v63 = vmul.f32 -1.442695, %v1343_v36 }
 0x3b2   :  { %v2315_v4 = vpop.eup %2314 }
 0x3b3   :  { %v2317_v38 = vpop.eup %2316  ;;  %v1347_v21 = vadd.f32 1.0, %v2315_v4  ;;  %2318 = vpow2.f32 %v2218_v63  ;;  %v4160_v63 = vld [vmem:[%s4531_s4 + $0x148] sm:$0xff]  ;;  %v4170_v4 = vld [vmem:[%s4531_s4 + $0x158] sm:$0xff] }
 0x3b4   :  { %v1366_v62 = vadd.f32 1.0, %v2317_v38  ;;  %v4178_v38 = vld [vmem:[%s4531_s4 + $0x128] sm:$0xff] }
 0x3b5   :  { %2320 = vrcp.f32 %v1347_v21  ;;  %v1359_v11 = vand.u32 2147483648, %v1347_v21  ;;  %v1357_v24 = vand.u32 2147483647, %v1347_v21  ;;  %vm1353_vm2 = vweird.f32 %v1347_v21 }
 0x3b6   :  { %2322 = vrcp.f32 %v1366_v62  ;;  %v1378_v14 = vand.u32 2147483648, %v1366_v62  ;;  %v1376_v56 = vand.u32 2147483647, %v1366_v62  ;;  %vm1372_vm3 = vweird.f32 %v1366_v62 }
 0x3b7   :  { %v1360_v60 = vor.u32 1.1754944e-38, %v1359_v11  ;;  %vm1358_vm6 = vcmp.eq.f32.partialorder %v1357_v24, 8.507059e+37  ;;  %v4581_v11 = vld [vmem:[#allocation12_spill] sm:$0xff] }
 0x3b8   :  { %v1379_v15 = vor.u32 1.1754944e-38, %v1378_v14  ;;  %vm1377_vm7 = vcmp.eq.f32.partialorder %v1376_v56, 8.507059e+37  ;;  %v4257_v56 = vld [vmem:[%s4531_s4 + $0xb0] sm:$0xff] }
 0x3b9   :  { %v2319_v5 = vpop.eup %2318 }
 0x3ba   :  { %v1386_v0 = vadd.f32 1.0, %v2319_v5  ;;  %v4201_v5 = vld [vmem:[%s4531_s4 + $0x110] sm:$0xff] }
 0x3bb   :  { %v2321_v17 = vpop.eup %2320 }
 0x3bc   :  { %v2323_v20 = vpop.eup %2322  ;;  %v1349_v27 = vmul.f32 %v2321_v17, %v1347_v21  ;;  %2324 = vrcp.f32 %v1386_v0  ;;  %vm1354_vm0 = vweird.f32 %v2321_v17  ;;  %v1398_v19 = vand.u32 2147483648, %v1386_v0  ;;  %v4183_v21 = vld [vmem:[%s4531_s4 + $0x130] sm:$0xff] }
 0x3bd   :  { %v1368_v44 = vmul.f32 %v2323_v20, %v1366_v62  ;;  %2326 = vtanh.f32 %v1342_v31  ;;  %vm1373_vm1 = vweird.f32 %v2323_v20  ;;  %vm1355_vm4 = vmor %vm1353_vm2, %vm1354_vm0  ;;  %vm1392_vm9 = vweird.f32 %v1386_v0  ;;  %v4188_v62 = vld [vmem:[%s4531_s4 + $0x138] sm:$0xff] }
 0x3be   :  { %v1350_v34 = vsub.f32 1.0, %v1349_v27  ;;  %vm1374_vm5 = vmor %vm1372_vm3, %vm1373_vm1  ;;  %v1396_v51 = vand.u32 2147483647, %v1386_v0  ;;  %v1399_v47 = vor.u32 1.1754944e-38, %v1398_v19  ;;  %v4224_v31 = vld [vmem:[%s4531_s4 + $0xf8] sm:$0xff]  ;;  %v4327_v19 = vld [vmem:[%s4531_s4 + $0x30] sm:$0xff] }
 0x3bf   :  { %v1369_v23 = vsub.f32 1.0, %v1368_v44  ;;  %v4232_v44 = vld [vmem:[%s4531_s4 + $0xc8] sm:$0xff] }
 0x3c0   :  { %v1351_v39 = vmul.f32 %v2321_v17, %v1350_v34  ;;  %vm1397_vm11 = vcmp.eq.f32.partialorder %v1396_v51, 8.507059e+37  ;;  %v4237_v34 = vld [vmem:[%s4531_s4 + $0xd0] sm:$0xff]  ;;  %v4334_v51 = vld [vmem:[%s4531_s4 + $0x38] sm:$0xff] }
 0x3c1   :  { %v1370_v13 = vmul.f32 %v2323_v20, %v1369_v23  ;;  %v4242_v23 = vld [vmem:[%s4531_s4 + $0xd8] sm:$0xff] }
 0x3c2   :  { %v2325_v26 = vpop.eup %2324  ;;  %v1352_v45 = vadd.f32 %v2321_v17, %v1351_v39  ;;  %v4582_v39 = vld [vmem:[#allocation25_spill] sm:$0xff] }
 0x3c3   :  { %v1371_v8 = vadd.f32 %v2323_v20, %v1370_v13  ;;  %v1388_v33 = vmul.f32 %v2325_v26, %v1386_v0  ;;  %v2327_v37 = vpop.eup %2326  ;;  %vm1393_vm8 = vweird.f32 %v2325_v26  ;;  %v4206_v0 = vld [vmem:[%s4531_s4 + $0x118] sm:$0xff]  ;;  %v4252_v13 = vld [vmem:[%s4531_s4 + $0xa8] sm:$0xff] }
 0x3c4   :  { %v1356_v3 = vsel %vm1355_vm4, %v2321_v17, %v1352_v45  ;;  %vm1394_vm10 = vmor %vm1392_vm9, %vm1393_vm8  ;;  %v4214_v17 = vld [vmem:[%s4531_s4 + $0xe8] sm:$0xff] }
 0x3c5   :  { %v1361_v7 = vsel %vm1358_vm6, %v1360_v60, %v1356_v3  ;;  %v1375_v10 = vsel %vm1374_vm5, %v2323_v20, %v1371_v8  ;;  %v1389_v58 = vsub.f32 1.0, %v1388_v33  ;;  %v4270_v8 = vld [vmem:[%s4531_s4 + $0x88] sm:$0xff]  ;;  %v4275_v33 = vld [vmem:[%s4531_s4 + $0x90] sm:$0xff] }
 0x3c6   :  { %v1380_v22 = vsel %vm1377_vm7, %v1379_v15, %v1375_v10  ;;  %v1403_v32 = vmul.f32 %v2327_v37, %v1361_v7  ;;  %v4280_v15 = vld [vmem:[%s4531_s4 + $0x98] sm:$0xff]  ;;  %v4287_v3 = vld [vmem:[%s4531_s4 + $0x68] sm:$0xff]  ;;  %v4292_v37 = vld [vmem:[%s4531_s4 + $0x70] sm:$0xff] }
 0x3c7   :  { %v1402_v16 = vmul.f32 %v1380_v22, %v3916_v6  ;;  %v1390_v18 = vmul.f32 %v2325_v26, %v1389_v58  ;;  %v4297_v7 = vld [vmem:[%s4531_s4 + $0x78] sm:$0xff]  ;;  %v4303_v10 = vld [vmem:[%s4531_s4 + $0x48] sm:$0xff]  ;;  %v4308_v58 = vld [vmem:[%s4531_s4 + $0x50] sm:$0xff] }
 0x3c9   :  { %v4036_v35 = vadd.f32 %v1403_v32, %v1402_v16  ;;  %v1391_v43 = vadd.f32 %v2325_v26, %v1390_v18  ;;  %v4315_v32 = vld [vmem:[%s4531_s4 + $0x58] sm:$0xff]  ;;  %v4583_v16 = vld [vmem:[#allocation18_spill] sm:$0xff] }
 0x3cb   :  { %2328 = vtanh.f32 %v4036_v35  ;;  %v1395_v6 = vsel %vm1394_vm10, %v2325_v26, %v1391_v43  ;;  %v4262_v26 = vld [vmem:[%s4531_s4 + $0xb8] sm:$0xff]  ;;  %v4322_v43 = vld [vmem:[%s4531_s4 + $0x28] sm:$0xff] }
 0x3cc   :  { %v1400_v48 = vsel %vm1397_vm11, %v1399_v47, %v1395_v6  ;;  %v4340_v47 = vld [vmem:[%s4531_s4 + $0x8] sm:$0xff] }
 0x3d1   :  { %v2329_v52 = vpop.eup %2328 }
 0x3d2   :  { %v4044_v36 = vmul.f32 %v2329_v52, %v1400_v48  ;;  %v4345_v52 = vld [vmem:[%s4531_s4 + $0x10] sm:$0xff] }
 0x3d4   :  { %1496 = vmatmul.f32.vlgmr.msrb.gmra.mxu0 %v4044_v36  ;;  %1516 = vmatmul.f32.vlgmr.msrb.gmra.mxu1 %v4044_v36 }
 0x3d5   :  { %1536 = vmatmul.f32.vlgmr.msrb.gmra.mxu2 %v4044_v36  ;;  %1556 = vmatmul.f32.vlgmr.msra.gmra.mxu3 %v4044_v36 }
 0x3d6   :  { %1920 = vmatpush.msrb.mxu0 %v3928_v50  ;;  %v4070_v50 = vld [vmem:[%s4531_s4 + $0x1e8] sm:$0xff] }
 0x3d7   :  { %1720 = vmatpush.msra.mxu1 %v4070_v50 }
 0x3d8   :  { %1921 = vmatpush.msrb.mxu0 %v3934_v59  ;;  %v4075_v59 = vld [vmem:[%s4531_s4 + $0x1f0] sm:$0xff] }
 0x3d9   :  { %1740 = vmatpush.msra.mxu2 %v4075_v59 }
 0x3da   :  { %1922 = vmatpush.msrb.mxu0 %v3940_v53  ;;  %v4080_v53 = vld [vmem:[%s4531_s4 + $0x1f8] sm:$0xff] }
 0x3db   :  { %1760 = vmatpush.msrb.mxu3 %v4080_v53 }
 0x3dc   :  { %1923 = vmatpush.msrb.mxu0 %v3946_v57  ;;  %v4088_v57 = vld [vmem:[%s4531_s4 + $0x1c8] sm:$0xff] }
 0x3dd   :  { %1721 = vmatpush.msra.mxu1 %v4088_v57 }
 0x3de   :  { %1924 = vmatpush.msrb.mxu0 %v3952_v46  ;;  %v4093_v46 = vld [vmem:[%s4531_s4 + $0x1d0] sm:$0xff] }
 0x3df   :  { %1741 = vmatpush.msra.mxu2 %v4093_v46 }
 0x3e0   :  { %1925 = vmatpush.msrb.mxu0 %v3958_v9  ;;  %v4098_v9 = vld [vmem:[%s4531_s4 + $0x1d8] sm:$0xff] }
 0x3e1   :  { %1761 = vmatpush.msrb.mxu3 %v4098_v9 }
 0x3e2   :  { %1926 = vmatpush.msrb.mxu0 %v3964_v42  ;;  %v4106_v42 = vld [vmem:[%s4531_s4 + $0x1a8] sm:$0xff] }
 0x3e3   :  { %1722 = vmatpush.msra.mxu1 %v4106_v42 }
 0x3e4   :  { %1927 = vmatpush.msrb.mxu0 %v3970_v12  ;;  %v4111_v12 = vld [vmem:[%s4531_s4 + $0x1b0] sm:$0xff] }
 0x3e5   :  { %1742 = vmatpush.msra.mxu2 %v4111_v12 }
 0x3e6   :  { %1928 = vmatpush.msrb.mxu0 %v3976_v29  ;;  %v4116_v29 = vld [vmem:[%s4531_s4 + $0x1b8] sm:$0xff] }
 0x3e7   :  { %1762 = vmatpush.msrb.mxu3 %v4116_v29 }
 0x3e8   :  { %1929 = vmatpush.msrb.mxu0 %v3982_v41  ;;  %v4124_v41 = vld [vmem:[%s4531_s4 + $0x188] sm:$0xff] }
 0x3e9   :  { %1723 = vmatpush.msra.mxu1 %v4124_v41 }
 0x3ea   :  { %1930 = vmatpush.msrb.mxu0 %v3990_v25  ;;  %v4129_v25 = vld [vmem:[%s4531_s4 + $0x190] sm:$0xff] }
 0x3eb   :  { %1743 = vmatpush.msra.mxu2 %v4129_v25 }
 0x3ec   :  { %1931 = vmatpush.msrb.mxu0 %v3996_v61  ;;  %v4134_v61 = vld [vmem:[%s4531_s4 + $0x198] sm:$0xff] }
 0x3ed   :  { %1763 = vmatpush.msrb.mxu3 %v4134_v61 }
 0x3ee   :  { %1932 = vmatpush.msrb.mxu0 %v4001_v2  ;;  %v4142_v2 = vld [vmem:[%s4531_s4 + $0x168] sm:$0xff] }
 0x3ef   :  { %1724 = vmatpush.msra.mxu1 %v4142_v2 }
 0x3f0   :  { %1933 = vmatpush.msrb.mxu0 %v4007_v30  ;;  %v4147_v30 = vld [vmem:[%s4531_s4 + $0x170] sm:$0xff] }
 0x3f1   :  { %1744 = vmatpush.msra.mxu2 %v4147_v30  ;;  %1725 = vmatpush.msra.mxu1 %v4160_v63 }
 0x3f2   :  { %1934 = vmatpush.msrb.mxu0 %v4014_v54  ;;  %v4152_v54 = vld [vmem:[%s4531_s4 + $0x178] sm:$0xff] }
 0x3f3   :  { %1764 = vmatpush.msrb.mxu3 %v4152_v54  ;;  %1726 = vmatpush.msra.mxu1 %v4178_v38 }
 0x3f4   :  { %1935 = vmatpush.msrb.mxu0 %v4020_v1  ;;  %v4165_v1 = vld [vmem:[%s4531_s4 + $0x150] sm:$0xff] }
 0x3f5   :  { %1745 = vmatpush.msra.mxu2 %v4165_v1  ;;  %1765 = vmatpush.msrb.mxu3 %v4170_v4 }
 0x3f6   :  { %1727 = vmatpush.msra.mxu1 %v4196_v28 }
 0x3f7   :  { %1746 = vmatpush.msra.mxu2 %v4183_v21  ;;  %1766 = vmatpush.msrb.mxu3 %v4188_v62 }
 0x3f8   :  { %1728 = vmatpush.msra.mxu1 %v4214_v17 }
 0x3f9   :  { %1747 = vmatpush.msra.mxu2 %v4201_v5  ;;  %1767 = vmatpush.msrb.mxu3 %v4206_v0 }
 0x3fa   :  { %1729 = vmatpush.msra.mxu1 %v4232_v44 }
 0x3fb   :  { %1748 = vmatpush.msra.mxu2 %v4219_v55  ;;  %1768 = vmatpush.msrb.mxu3 %v4224_v31 }
 0x3fc   :  { %1730 = vmatpush.msra.mxu1 %v4252_v13 }
 0x3fd   :  { %1749 = vmatpush.msra.mxu2 %v4237_v34  ;;  %1769 = vmatpush.msrb.mxu3 %v4242_v23 }
 0x3fe   :  { %1731 = vmatpush.msra.mxu1 %v4270_v8 }
 0x3ff   :  { %1750 = vmatpush.msra.mxu2 %v4257_v56  ;;  %1770 = vmatpush.msrb.mxu3 %v4262_v26 }
 0x400   :  { %1732 = vmatpush.msra.mxu1 %v4287_v3 }
 0x401   :  { %1751 = vmatpush.msra.mxu2 %v4275_v33  ;;  %1771 = vmatpush.msrb.mxu3 %v4280_v15 }
 0x402   :  { %1733 = vmatpush.msra.mxu1 %v4303_v10 }
 0x403   :  { %1752 = vmatpush.msra.mxu2 %v4292_v37  ;;  %1772 = vmatpush.msrb.mxu3 %v4297_v7 }
 0x404   :  { %1734 = vmatpush.msra.mxu1 %v4322_v43 }
 0x405   :  { %1753 = vmatpush.msra.mxu2 %v4308_v58  ;;  %1773 = vmatpush.msrb.mxu3 %v4315_v32 }
 0x406   :  { %1735 = vmatpush.msra.mxu1 %v4340_v47 }
 0x407   :  { %1754 = vmatpush.msra.mxu2 %v4327_v19  ;;  %1774 = vmatpush.msrb.mxu3 %v4334_v51 }
 0x408   :  { %1940 = vmatpush.msrb.mxu1 %v4070_v50 }
 0x409   :  { %1755 = vmatpush.msra.mxu2 %v4345_v52 }
 0x40a   :  { %1941 = vmatpush.msrb.mxu1 %v4088_v57 }
 0x40b   :  { %1960 = vmatpush.msrb.mxu2 %v4075_v59  ;;  %v4584_v59 = vld [vmem:[#allocation26_spill] sm:$0xff] }
 0x40c   :  { %1942 = vmatpush.msrb.mxu1 %v4106_v42 }
 0x40d   :  { %1961 = vmatpush.msrb.mxu2 %v4093_v46 }
 0x40e   :  { %1943 = vmatpush.msrb.mxu1 %v4124_v41 }
 0x40f   :  { %1962 = vmatpush.msrb.mxu2 %v4111_v12 }
 0x410   :  { %1944 = vmatpush.msrb.mxu1 %v4142_v2 }
 0x411   :  { %1963 = vmatpush.msrb.mxu2 %v4129_v25 }
 0x412   :  { %1945 = vmatpush.msrb.mxu1 %v4160_v63 }
 0x413   :  { %1964 = vmatpush.msrb.mxu2 %v4147_v30 }
 0x414   :  { %1946 = vmatpush.msrb.mxu1 %v4178_v38 }
 0x415   :  { %1965 = vmatpush.msrb.mxu2 %v4165_v1 }
 0x416   :  { %1947 = vmatpush.msrb.mxu1 %v4196_v28 }
 0x417   :  { %1966 = vmatpush.msrb.mxu2 %v4183_v21 }
 0x418   :  { %1948 = vmatpush.msrb.mxu1 %v4214_v17 }
 0x419   :  { %1967 = vmatpush.msrb.mxu2 %v4201_v5 }
 0x41a   :  { %1949 = vmatpush.msrb.mxu1 %v4232_v44 }
 0x41b   :  { %1968 = vmatpush.msrb.mxu2 %v4219_v55 }
 0x41c   :  { %1950 = vmatpush.msrb.mxu1 %v4252_v13  ;;  %v2092_v13 = vld [vmem:[%s4532_s5 + $0x78] sm:$0xff] }
 0x41d   :  { %1969 = vmatpush.msrb.mxu2 %v4237_v34 }
 0x41e   :  { %1951 = vmatpush.msrb.mxu1 %v4270_v8  ;;  %v2089_v8 = vld [vmem:[%s4532_s5 + $0x60] sm:$0xff] }
 0x41f   :  { %1970 = vmatpush.msrb.mxu2 %v4257_v56  ;;  %v2091_v56 = vld [vmem:[%s4532_s5 + $0x70] sm:$0xff] }
 0x420   :  { %1952 = vmatpush.msrb.mxu1 %v4287_v3 }
 0x421   :  { %1971 = vmatpush.msrb.mxu2 %v4275_v33  ;;  %v2088_v33 = vld [vmem:[%s4532_s5 + $0x58] sm:$0xff] }
 0x422   :  { %1953 = vmatpush.msrb.mxu1 %v4303_v10 }
 0x423   :  { %1972 = vmatpush.msrb.mxu2 %v4292_v37  ;;  %v2087_v37 = vld [vmem:[%s4532_s5 + $0x50] sm:$0xff] }
 0x424   :  { %1954 = vmatpush.msrb.mxu1 %v4322_v43  ;;  %v2086_v43 = vld [vmem:[%s4532_s5 + $0x48] sm:$0xff] }
 0x425   :  { %1973 = vmatpush.msrb.mxu2 %v4308_v58  ;;  %v4586_v58 = vld [vmem:[#allocation27_spill] sm:$0xff] }
 0x426   :  { %1955 = vmatpush.msrb.mxu1 %v4340_v47  ;;  %v2085_v47 = vld [vmem:[%s4532_s5 + $0x40] sm:$0xff] }
 0x427   :  { %1974 = vmatpush.msrb.mxu2 %v4327_v19 }
 0x429   :  { %1975 = vmatpush.msrb.mxu2 %v4345_v52  ;;  %v2084_v52 = vld [vmem:[%s4532_s5 + $0x38] sm:$0xff] }
 0x451   :  { %v1497_v20 = vpop.f32.mrf.mxu0  ;;  %v1517_v27 = vpop.f32.mrf.mxu1 }
 0x452   :  { %v1560_v14 = vadd.f32 %v1497_v20, %v4581_v11  ;;  %v1561_v24 = vadd.f32 %v1517_v27, %v4582_v39  ;;  %v4352_v20 = vld [vmem:[%s4531_s4 + $0x18] sm:$0xff] }
 0x453   :  { %1775 = vmatpush.msrb.mxu3 %v4352_v20 }
 0x454   :  { %v2219_v45 = vmul.f32 -1.442695, %v1560_v14  ;;  %v2220_v60 = vmul.f32 -1.442695, %v1561_v24 }
 0x455   :  { %1980 = vmatpush.msra.mxu3 %v4080_v53 }
 0x456   :  { %2330 = vpow2.f32 %v2219_v45 }
 0x457   :  { %2332 = vpow2.f32 %v2220_v60  ;;  %1981 = vmatpush.msra.mxu3 %v4098_v9 }
 0x458   :  { %v1557_v22 = vpop.f32.mrf.mxu3  ;;  %v1537_v39 = vpop.f32.mrf.mxu2 }
 0x459   :  { %v1563_v18 = vadd.f32 %v1557_v22, %v4583_v16  ;;  %1982 = vmatpush.msra.mxu3 %v4116_v29  ;;  %v1562_v60 = vadd.f32 %v1537_v39, %v4584_v59 }
 0x45b   :  { %v2221_v6 = vmul.f32 -1.442695, %v1563_v18  ;;  %1983 = vmatpush.msra.mxu3 %v4134_v61 }
 0x45c   :  { %v2331_v48 = vpop.eup %2330 }
 0x45d   :  { %v2333_v27 = vpop.eup %2332  ;;  %v4354_v11 = vadd.f32 1.0, %v2331_v48  ;;  %2334 = vpow2.f32 %v2221_v6  ;;  %1984 = vmatpush.msra.mxu3 %v4152_v54 }
 0x45e   :  { %v4357_v14 = vadd.f32 1.0, %v2333_v27 }
 0x45f   :  { %2336 = vrcp.f32 %v4354_v11  ;;  %v1579_v12 = vand.u32 2147483648, %v4354_v11  ;;  %v1577_v25 = vand.u32 2147483647, %v4354_v11  ;;  %1985 = vmatpush.msra.mxu3 %v4170_v4  ;;  %vm1573_vm14 = vweird.f32 %v4354_v11 }
 0x460   :  { %2338 = vrcp.f32 %v4357_v14  ;;  %v1598_v29 = vand.u32 2147483648, %v4357_v14  ;;  %v1596_v2 = vand.u32 2147483647, %v4357_v14  ;;  %vm1592_vm15 = vweird.f32 %v4357_v14 }
 0x461   :  { %1986 = vmatpush.msra.mxu3 %v4188_v62  ;;  %v1580_v63 = vor.u32 1.1754944e-38, %v1579_v12  ;;  %vm1578_vm2 = vcmp.eq.f32.partialorder %v1577_v25, 8.507059e+37 }
 0x462   :  { %v1599_v22 = vor.u32 1.1754944e-38, %v1598_v29  ;;  %vm1597_vm3 = vcmp.eq.f32.partialorder %v1596_v2, 8.507059e+37  ;;  %v4588_v2 = vld [vmem:[#allocation28_spill] sm:$0xff] }
 0x463   :  { %v2335_v24 = vpop.eup %2334  ;;  %1987 = vmatpush.msra.mxu3 %v4206_v0 }
 0x464   :  { %v4371_v45 = vadd.f32 1.0, %v2335_v24  ;;  %v2082_v24 = vld [vmem:[%s4532_s5 + $0x28] sm:$0xff] }
 0x465   :  { %v2337_v50 = vpop.eup %2336  ;;  %1988 = vmatpush.msra.mxu3 %v4224_v31 }
 0x466   :  { %v2339_v53 = vpop.eup %2338  ;;  %v1569_v57 = vmul.f32 %v2337_v50, %v4354_v11  ;;  %2340 = vrcp.f32 %v4371_v45  ;;  %vm1574_vm12 = vweird.f32 %v2337_v50  ;;  %vm1612_vm5 = vweird.f32 %v4371_v45 }
 0x467   :  { %v1588_v46 = vmul.f32 %v2339_v53, %v4357_v14  ;;  %2342 = vtanh.f32 %v1562_v60  ;;  %vm1593_vm13 = vweird.f32 %v2339_v53  ;;  %vm1575_vm0 = vmor %vm1573_vm14, %vm1574_vm12  ;;  %1989 = vmatpush.msra.mxu3 %v4242_v23  ;;  %v1616_v17 = vand.u32 2147483647, %v4371_v45  ;;  %v4587_v14 = vld [vmem:[#allocation19_spill] sm:$0xff] }
 0x468   :  { %v1570_v9 = vsub.f32 1.0, %v1569_v57  ;;  %vm1594_vm1 = vmor %vm1592_vm15, %vm1593_vm13 }
 0x469   :  { %v1589_v42 = vsub.f32 1.0, %v1588_v46  ;;  %1990 = vmatpush.msra.mxu3 %v4262_v26  ;;  %vm1617_vm7 = vcmp.eq.f32.partialorder %v1616_v17, 8.507059e+37  ;;  %v2090_v26 = vld [vmem:[%s4532_s5 + $0x68] sm:$0xff]  ;;  %v2080_v46 = vld [vmem:[%s4532_s5 + $0x18] sm:$0xff] }
 0x46a   :  { %v1571_v41 = vmul.f32 %v2337_v50, %v1570_v9  ;;  %v2079_v9 = vld [vmem:[%s4532_s5 + $0x10] sm:$0xff] }
 0x46b   :  { %v1590_v61 = vmul.f32 %v2339_v53, %v1589_v42  ;;  %1991 = vmatpush.msra.mxu3 %v4280_v15  ;;  %v2078_v42 = vld [vmem:[%s4532_s5 + $0x8] sm:$0xff] }
 0x46c   :  { %v2341_v30 = vpop.eup %2340  ;;  %v1572_v54 = vadd.f32 %v2337_v50, %v1571_v41  ;;  %v2077_v41 = vld [vmem:[%s4532_s5] sm:$0xff] }
 0x46d   :  { %v1591_v1 = vadd.f32 %v2339_v53, %v1590_v61  ;;  %v1608_v4 = vmul.f32 %v2341_v30, %v4371_v45  ;;  %v2343_v21 = vpop.eup %2342  ;;  %vm1613_vm4 = vweird.f32 %v2341_v30  ;;  %1992 = vmatpush.msra.mxu3 %v4297_v7  ;;  %v4585_v7 = vld [vmem:[#allocation13_spill] sm:$0xff] }
 0x46e   :  { %v1576_v38 = vsel %vm1575_vm0, %v2337_v50, %v1572_v54  ;;  %vm1614_vm6 = vmor %vm1612_vm5, %vm1613_vm4  ;;  %v2081_v50 = vld [vmem:[%s4532_s5 + $0x20] sm:$0xff] }
 0x46f   :  { %v1581_v16 = vsel %vm1578_vm2, %v1580_v63, %v1576_v38  ;;  %v1595_v62 = vsel %vm1594_vm1, %v2339_v53, %v1591_v1  ;;  %v1609_v18 = vsub.f32 1.0, %v1608_v4  ;;  %1993 = vmatpush.msra.mxu3 %v4315_v32 }
 0x470   :  { %v1600_v6 = vsel %vm1597_vm3, %v1599_v22, %v1595_v62  ;;  %v1623_v48 = vmul.f32 %v2343_v21, %v1581_v16 }
 0x471   :  { %v1622_v28 = vmul.f32 %v1600_v6, %v4036_v35  ;;  %v1610_v27 = vmul.f32 %v2341_v30, %v1609_v18  ;;  %v1618_v35 = vand.u32 2147483648, %v4371_v45  ;;  %1994 = vmatpush.msra.mxu3 %v4334_v51 }
 0x473   :  { %v4408_v5 = vadd.f32 %v1623_v48, %v1622_v28  ;;  %v1611_v0 = vadd.f32 %v2341_v30, %v1610_v27  ;;  %v1619_v31 = vor.u32 1.1754944e-38, %v1618_v35  ;;  %1995 = vmatpush.msra.mxu3 %v4352_v20  ;;  %v2083_v20 = vld [vmem:[%s4532_s5 + $0x30] sm:$0xff] }
 0x475   :  { %2344 = vtanh.f32 %v4408_v5  ;;  %v1615_v55 = vsel %vm1614_vm6, %v2341_v30, %v1611_v0 }
 0x476   :  { %v1620_v34 = vsel %vm1617_vm7, %v1619_v31, %v1615_v55 }
 0x47b   :  { %v2345_v44 = vpop.eup %2344 }
 0x47c   :  { %v4427_v23 = vmul.f32 %v2345_v44, %v1620_v34 }
 0x47e   :  { %1716 = vmatmul.f32.vlgmr.msra.gmra.mxu0 %v4427_v23  ;;  %1736 = vmatmul.f32.vlgmr.msra.gmra.mxu1 %v4427_v23 }
 0x47f   :  { %1756 = vmatmul.f32.vlgmr.msra.gmra.mxu2 %v4427_v23  ;;  %1776 = vmatmul.f32.vlgmr.msrb.gmra.mxu3 %v4427_v23 }
 0x480   :  { %2097 = vmatpush.msra.mxu0 %v2092_v13 }
 0x482   :  { %2098 = vmatpush.msra.mxu0 %v2091_v56 }
 0x484   :  { %2099 = vmatpush.msra.mxu0 %v2090_v26 }
 0x486   :  { %2100 = vmatpush.msra.mxu0 %v2089_v8 }
 0x488   :  { %2101 = vmatpush.msra.mxu0 %v2088_v33 }
 0x48a   :  { %2102 = vmatpush.msra.mxu0 %v2087_v37 }
 0x48c   :  { %2103 = vmatpush.msra.mxu0 %v2086_v43 }
 0x48e   :  { %2104 = vmatpush.msra.mxu0 %v2085_v47 }
 0x490   :  { %2105 = vmatpush.msra.mxu0 %v2084_v52 }
 0x492   :  { %2106 = vmatpush.msra.mxu0 %v2083_v20  ;;  %v4591_v20 = vld [vmem:[#allocation15_spill] sm:$0xff] }
 0x494   :  { %2107 = vmatpush.msra.mxu0 %v2082_v24 }
 0x496   :  { %2108 = vmatpush.msra.mxu0 %v2081_v50 }
 0x498   :  { %2109 = vmatpush.msra.mxu0 %v2080_v46 }
 0x49a   :  { %2110 = vmatpush.msra.mxu0 %v2079_v9 }
 0x49c   :  { %2111 = vmatpush.msra.mxu0 %v2078_v42 }
 0x49e   :  { %2112 = vmatpush.msra.mxu0 %v2077_v41 }
 0x4fb   :  { %v1717_v15 = vpop.f32.mrf.mxu0  ;;  %v1737_v3 = vpop.f32.mrf.mxu1 }
 0x4fc   :  { %v1780_v10 = vadd.f32 %v1717_v15, %v4585_v7  ;;  %v1781_v32 = vadd.f32 %v1737_v3, %v4586_v58 }
 0x4fe   :  { %v2222_v19 = vmul.f32 -1.442695, %v1780_v10  ;;  %v2223_v51 = vmul.f32 -1.442695, %v1781_v32 }
 0x500   :  { %2346 = vpow2.f32 %v2222_v19 }
 0x501   :  { %2348 = vpow2.f32 %v2223_v51  ;;  %v4590_v51 = vld [vmem:[#allocation32_spill] sm:$0xff] }
 0x502   :  { %v1777_v11 = vpop.f32.mrf.mxu3  ;;  %v1757_v12 = vpop.f32.mrf.mxu2 }
 0x503   :  { %v1783_v39 = vadd.f32 %v1777_v11, %v4587_v14  ;;  %v1782_v30 = vadd.f32 %v1757_v12, %v4588_v2  ;;  %v4592_v14 = vld [vmem:[#allocation29_spill] sm:$0xff]  ;;  %v4594_v2 = vld [vmem:[#allocation30_spill] sm:$0xff] }
 0x505   :  { %v2224_v45 = vmul.f32 -1.442695, %v1783_v39 }
 0x506   :  { %v2347_v59 = vpop.eup %2346 }
 0x507   :  { %v2349_v60 = vpop.eup %2348  ;;  %v1787_v53 = vadd.f32 1.0, %v2347_v59  ;;  %2350 = vpow2.f32 %v2224_v45 }
 0x508   :  { %v1806_v57 = vadd.f32 1.0, %v2349_v60 }
 0x509   :  { %2352 = vrcp.f32 %v1787_v53  ;;  %v1799_v38 = vand.u32 2147483648, %v1787_v53  ;;  %v1797_v62 = vand.u32 2147483647, %v1787_v53  ;;  %vm1793_vm10 = vweird.f32 %v1787_v53 }
 0x50a   :  { %2354 = vrcp.f32 %v1806_v57  ;;  %v1818_v21 = vand.u32 2147483648, %v1806_v57  ;;  %v1816_v6 = vand.u32 2147483647, %v1806_v57  ;;  %vm1812_vm11 = vweird.f32 %v1806_v57 }
 0x50b   :  { %v1800_v27 = vor.u32 1.1754944e-38, %v1799_v38  ;;  %vm1798_vm14 = vcmp.eq.f32.partialorder %v1797_v62, 8.507059e+37 }
 0x50c   :  { %v1819_v17 = vor.u32 1.1754944e-38, %v1818_v21  ;;  %vm1817_vm15 = vcmp.eq.f32.partialorder %v1816_v6, 8.507059e+37 }
 0x50d   :  { %v2351_v29 = vpop.eup %2350 }
 0x50e   :  { %v1826_v25 = vadd.f32 1.0, %v2351_v29 }
 0x50f   :  { %v2353_v61 = vpop.eup %2352 }
 0x510   :  { %v2355_v54 = vpop.eup %2354  ;;  %v1789_v63 = vmul.f32 %v2353_v61, %v1787_v53  ;;  %2356 = vrcp.f32 %v1826_v25  ;;  %vm1794_vm8 = vweird.f32 %v2353_v61  ;;  %v1838_v37 = vand.u32 2147483648, %v1826_v25 }
 0x511   :  { %v1808_v1 = vmul.f32 %v2355_v54, %v1806_v57  ;;  %2358 = vtanh.f32 %v1782_v30  ;;  %vm1813_vm9 = vweird.f32 %v2355_v54  ;;  %vm1795_vm12 = vmor %vm1793_vm10, %vm1794_vm8  ;;  %vm1832_vm1 = vweird.f32 %v1826_v25 }
 0x512   :  { %v1790_v4 = vsub.f32 1.0, %v1789_v63  ;;  %vm1814_vm13 = vmor %vm1812_vm11, %vm1813_vm9  ;;  %v1836_v7 = vand.u32 2147483647, %v1826_v25  ;;  %v1839_v58 = vor.u32 1.1754944e-38, %v1838_v37 }
 0x513   :  { %v1809_v22 = vsub.f32 1.0, %v1808_v1 }
 0x514   :  { %v1791_v16 = vmul.f32 %v2353_v61, %v1790_v4  ;;  %vm1837_vm3 = vcmp.eq.f32.partialorder %v1836_v7, 8.507059e+37 }
 0x515   :  { %v1810_v18 = vmul.f32 %v2355_v54, %v1809_v22 }
 0x516   :  { %v2357_v48 = vpop.eup %2356  ;;  %v1792_v28 = vadd.f32 %v2353_v61, %v1791_v16 }
 0x517   :  { %v1811_v0 = vadd.f32 %v2355_v54, %v1810_v18  ;;  %v1828_v35 = vmul.f32 %v2357_v48, %v1826_v25  ;;  %v2359_v31 = vpop.eup %2358  ;;  %vm1833_vm0 = vweird.f32 %v2357_v48 }
 0x518   :  { %v1796_v55 = vsel %vm1795_vm12, %v2353_v61, %v1792_v28  ;;  %vm1834_vm2 = vmor %vm1832_vm1, %vm1833_vm0 }
 0x519   :  { %v1801_v44 = vsel %vm1798_vm14, %v1800_v27, %v1796_v55  ;;  %v1815_v34 = vsel %vm1814_vm13, %v2355_v54, %v1811_v0  ;;  %v1829_v13 = vsub.f32 1.0, %v1828_v35 }
 0x51a   :  { %v1820_v56 = vsel %vm1817_vm15, %v1819_v17, %v1815_v34  ;;  %v1843_v26 = vmul.f32 %v2359_v31, %v1801_v44 }
 0x51b   :  { %v1842_v8 = vmul.f32 %v1820_v56, %v4408_v5  ;;  %v1830_v33 = vmul.f32 %v2357_v48, %v1829_v13  ;;  %v4589_v5 = vld [vmem:[#allocation31_spill] sm:$0xff] }
 0x51d   :  { %v4491_v15 = vadd.f32 %v1843_v26, %v1842_v8  ;;  %v1831_v3 = vadd.f32 %v2357_v48, %v1830_v33 }
 0x51f   :  { %2360 = vtanh.f32 %v4491_v15  ;;  %v1835_v10 = vsel %vm1834_vm2, %v2357_v48, %v1831_v3 }
 0x520   :  { %v1840_v43 = vsel %vm1837_vm3, %v1839_v58, %v1835_v10 }
 0x525   :  { %v2361_v32 = vpop.eup %2360 }
 0x526   :  { %v1846_v19 = vmul.f32 %v2361_v32, %v1840_v43 }
 0x528   :  { %1936 = vmatmul.f32.vlgmr.msrb.gmra.mxu0 %v1846_v19  ;;  %1956 = vmatmul.f32.vlgmr.msrb.gmra.mxu1 %v1846_v19 }
 0x529   :  { %1976 = vmatmul.f32.vlgmr.msrb.gmra.mxu2 %v1846_v19  ;;  %1996 = vmatmul.f32.vlgmr.msra.gmra.mxu3 %v1846_v19 }
 0x530   :  { %2113 = vmatmul.f32.vlgmr.msra.gmra.mxu0 %v4589_v5 }
 0x538   :  { %2116 = vmatmul.f32.gmra.mxu0 %v4590_v51 }
 0x540   :  { %2119 = vmatmul.f32.gmra.mxu0 %v3852_v40  ;;  %v4505_v40 = vld [vmem:[%s4533_s6] ss:$0 sm:$0xff]  ;;  %s2454_s6 = smov [#allocation6]  }
 0x541   :  { %s2166_s27 = sshll.u32 %s2454_s6, 4  ;;  %s2167_s27 = int_to_ptr.vmem [resolvable:$true] %s2166_s27 }
 0x548   :  { %2122 = vmatmul.f32.gmra.mxu0 %v3919_v49 }
 0x550   :  { %2125 = vmatmul.f32.gmra.mxu0 %v4044_v36  ;;  %v4593_v36 = vld [vmem:[#allocation22_spill] sm:$0xff] }
 0x558   :  { %2128 = vmatmul.f32.gmra.mxu0 %v4427_v23 }
 0x560   :  { %2131 = vmatmul.f32.gmra.mxu0 %v1846_v19 }
 0x5a5   :  { %v1937_v47 = vpop.f32.mrf.mxu0  ;;  %v1957_v52 = vpop.f32.mrf.mxu1 }
 0x5a6   :  { %v2000_v11 = vadd.f32 %v1937_v47, %v4591_v20  ;;  %v2001_v39 = vadd.f32 %v1957_v52, %v4592_v14 }
 0x5a8   :  { %v2225_v24 = vmul.f32 -1.442695, %v2000_v11  ;;  %v2226_v45 = vmul.f32 -1.442695, %v2001_v39 }
 0x5aa   :  { %2362 = vpow2.f32 %v2225_v24 }
 0x5ab   :  { %2364 = vpow2.f32 %v2226_v45 }
 0x5ac   :  { %v1997_v49 = vpop.f32.mrf.mxu3  ;;  %v1977_v12 = vpop.f32.mrf.mxu2 }
 0x5ad   :  { %v2003_v50 = vadd.f32 %v1997_v49, %v4593_v36  ;;  %v2114_v23 = vpop.f32.mrf.mxu0  ;;  %v2002_v30 = vadd.f32 %v1977_v12, %v4594_v2 }
 0x5ae   :  { %v2115_v59 = vadd.f32 %v4505_v40, %v2114_v23 }
 0x5af   :  { %v2227_v60 = vmul.f32 -1.442695, %v2003_v50 }
 0x5b0   :  { %v2363_v53 = vpop.eup %2362  ;;  %2138 = vst [vmem:[#allocation4] sm:$0xff] %v2115_v59 }
 0x5b1   :  { %v2365_v57 = vpop.eup %2364  ;;  %v2007_v46 = vadd.f32 1.0, %v2363_v53  ;;  %2366 = vpow2.f32 %v2227_v60 }
 0x5b2   :  { %v2026_v9 = vadd.f32 1.0, %v2365_v57 }
 0x5b3   :  { %2368 = vrcp.f32 %v2007_v46  ;;  %v2017_v38 = vand.u32 2147483647, %v2007_v46  ;;  %v2019_v21 = vand.u32 2147483648, %v2007_v46  ;;  %vm2013_vm6 = vweird.f32 %v2007_v46 }
 0x5b4   :  { %2370 = vrcp.f32 %v2026_v9  ;;  %v2038_v62 = vand.u32 2147483648, %v2026_v9  ;;  %v2036_v28 = vand.u32 2147483647, %v2026_v9  ;;  %vm2032_vm7 = vweird.f32 %v2026_v9 }
 0x5b5   :  { %v2117_v42 = vpop.f32.mrf.mxu0  ;;  %v2020_v35 = vor.u32 1.1754944e-38, %v2019_v21  ;;  %vm2018_vm10 = vcmp.eq.f32.partialorder %v2017_v38, 8.507059e+37 }
 0x5b6   :  { %v2118_v29 = vadd.f32 %v4505_v40, %v2117_v42  ;;  %v2039_v31 = vor.u32 1.1754944e-38, %v2038_v62  ;;  %vm2037_vm11 = vcmp.eq.f32.partialorder %v2036_v28, 8.507059e+37 }
 0x5b7   :  { %v2367_v41 = vpop.eup %2366 }
 0x5b8   :  { %v2046_v25 = vadd.f32 1.0, %v2367_v41  ;;  %2139 = vst [vmem:[#allocation4 + $0x8] sm:$0xff] %v2118_v29 }
 0x5b9   :  { %v2369_v61 = vpop.eup %2368 }
 0x5ba   :  { %v2371_v54 = vpop.eup %2370  ;;  %v2009_v63 = vmul.f32 %v2369_v61, %v2007_v46  ;;  %2372 = vrcp.f32 %v2046_v25  ;;  %vm2014_vm4 = vweird.f32 %v2369_v61  ;;  %v2058_v43 = vand.u32 2147483648, %v2046_v25 }
 0x5bb   :  { %v2028_v1 = vmul.f32 %v2371_v54, %v2026_v9  ;;  %2374 = vtanh.f32 %v2002_v30  ;;  %vm2033_vm5 = vweird.f32 %v2371_v54  ;;  %vm2015_vm8 = vmor %vm2013_vm6, %vm2014_vm4  ;;  %vm2052_vm13 = vweird.f32 %v2046_v25 }
 0x5bc   :  { %v2010_v4 = vsub.f32 1.0, %v2009_v63  ;;  %vm2034_vm9 = vmor %vm2032_vm7, %vm2033_vm5  ;;  %v2056_v19 = vand.u32 2147483647, %v2046_v25  ;;  %v2059_v47 = vor.u32 1.1754944e-38, %v2058_v43 }
 0x5bd   :  { %v2029_v22 = vsub.f32 1.0, %v2028_v1  ;;  %v2120_v16 = vpop.f32.mrf.mxu0 }
 0x5be   :  { %v2011_v18 = vmul.f32 %v2369_v61, %v2010_v4  ;;  %v2121_v6 = vadd.f32 %v4505_v40, %v2120_v16  ;;  %vm2057_vm15 = vcmp.eq.f32.partialorder %v2056_v19, 8.507059e+37 }
 0x5bf   :  { %v2030_v48 = vmul.f32 %v2371_v54, %v2029_v22 }
 0x5c0   :  { %v2373_v27 = vpop.eup %2372  ;;  %v2012_v0 = vadd.f32 %v2369_v61, %v2011_v18  ;;  %2140 = vst [vmem:[#allocation4 + $0x10] sm:$0xff] %v2121_v6 }
 0x5c1   :  { %v2031_v17 = vadd.f32 %v2371_v54, %v2030_v48  ;;  %v2048_v55 = vmul.f32 %v2373_v27, %v2046_v25  ;;  %v2375_v34 = vpop.eup %2374  ;;  %vm2053_vm12 = vweird.f32 %v2373_v27 }
 0x5c2   :  { %v2016_v44 = vsel %vm2015_vm8, %v2369_v61, %v2012_v0  ;;  %vm2054_vm14 = vmor %vm2052_vm13, %vm2053_vm12 }
 0x5c3   :  { %v2021_v13 = vsel %vm2018_vm10, %v2020_v35, %v2016_v44  ;;  %v2035_v56 = vsel %vm2034_vm9, %v2371_v54, %v2031_v17  ;;  %v2049_v26 = vsub.f32 1.0, %v2048_v55 }
 0x5c4   :  { %v2040_v8 = vsel %vm2037_vm11, %v2039_v31, %v2035_v56  ;;  %v2063_v33 = vmul.f32 %v2375_v34, %v2021_v13 }
 0x5c5   :  { %v2062_v3 = vmul.f32 %v2040_v8, %v4491_v15  ;;  %v2123_v37 = vpop.f32.mrf.mxu0  ;;  %v2050_v7 = vmul.f32 %v2373_v27, %v2049_v26 }
 0x5c6   :  { %v2124_v10 = vadd.f32 %v4505_v40, %v2123_v37 }
 0x5c7   :  { %v2064_v58 = vadd.f32 %v2063_v33, %v2062_v3  ;;  %v2051_v32 = vadd.f32 %v2373_v27, %v2050_v7 }
 0x5c8   :  { %2141 = vst [vmem:[#allocation4 + $0x18] sm:$0xff] %v2124_v10 }
 0x5c9   :  { %2147 = vst [vmem:[#allocation8] sm:$0xff] %v2064_v58  ;;  %2376 = vtanh.f32 %v2064_v58  ;;  %v2055_v5 = vsel %vm2054_vm14, %v2373_v27, %v2051_v32 }
 0x5ca   :  { %v2060_v20 = vsel %vm2057_vm15, %v2059_v47, %v2055_v5 }
 0x5cd   :  { %v2126_v51 = vpop.f32.mrf.mxu0 }
 0x5ce   :  { %v2127_v52 = vadd.f32 %v4505_v40, %v2126_v51 }
 0x5cf   :  { %v2377_v15 = vpop.eup %2376 }
 0x5d0   :  { %2142 = vst [vmem:[#allocation4 + $0x20] sm:$0xff] %v2127_v52  ;;  %v2066_v11 = vmul.f32 %v2377_v15, %v2060_v20 }
 0x5d2   :  { %2134 = vmatmul.f32.gmra.mxu0 %v2066_v11  ;;  %2146 = vst [vmem:[#allocation6] sm:$0xff] %v2066_v11 }
 0x5d3   :  { %2171 = dma.vmem_to_hbm [thread:$0]  %s2167_s27, 128, %s2169_s30, [#allocation7]  }
 0x5d4   :  { %2182 = dma.vmem_to_hbm [thread:$0]  %s2178_s11, 128, %s2180_s14, [#allocation7]  }
 0x5d5   :  { %v2129_v14 = vpop.f32.mrf.mxu0 }
 0x5d6   :  { %v2130_v39 = vadd.f32 %v4505_v40, %v2129_v14 }
 0x5d8   :  { %2143 = vst [vmem:[#allocation4 + $0x28] sm:$0xff] %v2130_v39 }
 0x5dd   :  { %v2132_v24 = vpop.f32.mrf.mxu0 }
 0x5de   :  { %v2133_v45 = vadd.f32 %v4505_v40, %v2132_v24 }
 0x5e0   :  { %2144 = vst [vmem:[#allocation4 + $0x30] sm:$0xff] %v2133_v45 }
 0x64f   :  { %v2135_v49 = vpop.f32.mrf.mxu0 }
 0x650   :  { %v2136_v36 = vadd.f32 %v4505_v40, %v2135_v49 }
 0x652   :  { %2145 = vst [vmem:[#allocation4 + $0x38] sm:$0xff] %v2136_v36 }
 0x653   :  { %2160 = dma.vmem_to_hbm [thread:$0]  %s2153_s15, 1024, %s2155_s1, [#allocation5], %s2457_s9, %s2457_s9, %s2458_s3  }
 0x654   :  { %2450 = dma.done.wait [#allocation5], 1024  }
 0x655   :  { %2451 = vsyncadd [#allocation5], 4294966272 }
 0x656   :  { %2452 = dma.done.wait [#allocation7], 256  }
 0x657   :  { %2453 = vsyncadd [#allocation7], 4294967040 }
 0x658   :  { %2195 = vsyncpa [#allocation5], 1 }
 0x659   :  { %2196 = vsyncpa [#allocation7], 1 }

</bundles_post_ra>
